<compile_context>
chip_gen: v7x
topology: tpu7x:2x2x1
jax: 0.10.0
libtpu: 0.0.40
codegen_flags: <defaults>
</compile_context>

<pallas_src>
from functools import partial

import jax
import jax.numpy as jnp
from jax.experimental import pallas as pl
from jax.experimental.pallas import tpu as pltpu


def _conv_block_kernel(x_ref, wh_ref, bh_ref, wl_ref, bl_ref, mask_ref,
                       o_ref, apad_ref, patch_ref,
                       *, H, W, off, negative_slope=0.1):
    """Fused ConvBlock for G images per grid step (channel-major throughout).

    x_ref:     (G, NF, LIMG)        zero-padded, channel-major input (LIMG=(H+2)*(W+2))
    wh_ref:    (n_hidden, NF, 9NF)  channel-major im2col weights of the activated convs
    bh_ref:    (n_hidden, NF, 1)    biases of the activated convs
    wl_ref:    (Cout, 9NF)          channel-major im2col weights of the last conv
    bl_ref:    (Cout, 1)            bias of the last conv
    mask_ref:  (NF, G*LIMG)         1.0 at real pixels, 0.0 at pad pixels
    o_ref:     (G, Cout, LIMG)      output on the padded grid (wrapper crops the ring)
    apad_ref:  (NF, LBUF)           VMEM scratch: flat padded activation (+ margins)
    patch_ref: (9*NF, G*LIMG)       VMEM scratch: im2col patch
    """
    g_imgs, nf, limg = x_ref.shape
    n_hidden = wh_ref.shape[0]
    Wp = W + 2
    mtot = g_imgs * limg

    # Zero the activation scratch: the 1-pixel border (and alignment margins) staying
    # zero IS the convs' `padding=1`.  Then drop the pre-padded input into place.
    apad_ref[...] = jnp.zeros_like(apad_ref)
    for g in range(g_imgs):
        apad_ref[:, off + g * limg: off + (g + 1) * limg] = x_ref[g].astype(jnp.float32)

    mask = mask_ref[...]  # (NF, MTOT) f32

    def load_patch():
        # 9 shifted windows of the flat channel-major activation, stacked along the
        # SUBLANE axis at offsets k*NF (8-aligned), matching the (dy, dx, cin) row
        # order of the HWIO weight reshape.  Result: (9*NF, MTOT) im2col matrix.
        k = 0
        for dy in range(3):
            for dx in range(3):
                s = off + (dy - 1) * Wp + (dx - 1)
                patch_ref[k * nf:(k + 1) * nf, :] = apad_ref[:, s:s + mtot]
                k += 1
        return patch_ref[...]

    # Hidden convs: (NF, 9NF) @ (9NF, MTOT) -> lane-dense (NF, MTOT) on the MXU.
    for layer in range(n_hidden):
        p = load_patch()
        acc = jax.lax.dot_general(wh_ref[layer], p, (((1,), (0,)), ((), ())),
                                  preferred_element_type=jnp.float32)
        acc = acc + bh_ref[layer]
        acc = jnp.maximum(acc, negative_slope * acc)      # LeakyReLU(0.1)
        # Re-zero pad pixels and write back (128-lane-aligned dense store).
        apad_ref[:, off:off + mtot] = acc * mask

    # Last conv (no activation), already channel-major.
    p = load_patch()
    out = jax.lax.dot_general(wl_ref[...], p, (((1,), (0,)), ((), ())),
                              preferred_element_type=jnp.float32)
    out = out + bl_ref[...]
    for g in range(g_imgs):
        o_ref[g] = out[:, g * limg:(g + 1) * limg].astype(o_ref.dtype)


def pack_conv_block_params(params):
    """Convert per-layer HWIO (w, b) params into the fused, channel-major kernel format."""
    nf = params[0][0].shape[3]                 # n_filters = out-channels of first conv
    *hidden, (w_last, b_last) = params
    wh, bh = [], []
    for (w, b) in hidden:
        cin, cout = w.shape[2], w.shape[3]
        assert cout == nf, "hidden convs must output n_filters channels"
        assert cin <= nf, "in_chans must be <= n_filters for the zero-extension trick"
        if cin < nf:                           # first conv: zero-extend input channels
            w = jnp.pad(w, ((0, 0), (0, 0), (0, nf - cin), (0, 0)))
        wh.append(w.reshape(9 * nf, nf).T)     # (NF, 9*NF) channel-major
        bh.append(b.reshape(nf, 1))
    wh = jnp.stack(wh)                         # (n_hidden, NF, 9*NF)
    bh = jnp.stack(bh)                         # (n_hidden, NF, 1)
    cout = w_last.shape[3]
    assert w_last.shape[2] == nf
    wl = w_last.reshape(9 * nf, cout).T        # (Cout, 9*NF)
    bl = b_last.reshape(cout, 1)               # (Cout, 1)
    return wh, bh, wl, bl


def _pick_images_per_step(batch):
    """Grid strategy: single-TensorCore chips (v5e/v6e) fold the whole batch into one
    grid step (amortizes per-step overhead, widens the matmul); chips with 2
    TensorCores (v7x, v4/v5p megacore) keep a >=2-way 'parallel' batch axis."""
    try:
        kind = jax.devices()[0].device_kind.lower()
    except Exception:
        return 1
    single_core = any(t in kind for t in ("v5 lite", "v5e", "v6 lite", "v6e"))
    if single_core:
        return max(batch, 1)
    g = max(1, batch // 2)
    while batch % g:
        g -= 1
    return g


@partial(jax.jit, static_argnames=("images_per_step",))
def conv_block_forward(x_nchw, packed, images_per_step=1):
    """ConvBlock.forward — NCHW in, NCHW out (matches PyTorch)."""
    wh, bh, wl, bl = packed
    B, cin, H, W = x_nchw.shape
    n_hidden, nf, nine_nf = wh.shape
    assert nine_nf == 9 * nf
    cout = wl.shape[0]
    G = images_per_step
    assert B % G == 0, "images_per_step must divide the batch"

    Hp, Wp = H + 2, W + 2
    limg = Hp * Wp
    mtot = G * limg
    # Leading margin so every tap slice is in-bounds AND the per-layer writeback is
    # 128-lane-aligned; trailing margin for the furthest tap of the last image.
    off = ((Wp + 1 + 127) // 128) * 128
    lbuf = off + ((mtot + Wp + 1 + 127) // 128) * 128

    # Channel-major, pre-padded input: zero-extend channels Cin->NF, pad spatial by 1
    # (the zero ring the kernel relies on), flatten spatial.  No transpose needed.
    x_p = jnp.pad(x_nchw, ((0, 0), (0, nf - cin), (1, 1), (1, 1))).reshape(B, nf, limg)

    # Interior mask (1 = real pixel, 0 = pad pixel) in the same flat layout.
    yy = jnp.arange(Hp)[:, None]
    xx = jnp.arange(Wp)[None, :]
    interior = ((yy >= 1) & (yy <= H) & (xx >= 1) & (xx <= W)).astype(jnp.float32)
    mask = jnp.tile(interior.reshape(1, limg), (nf, G))        # (NF, G*LIMG)

    kernel = partial(_conv_block_kernel, H=H, W=W, off=off)

    out = pl.pallas_call(
        kernel,
        out_shape=jax.ShapeDtypeStruct((B, cout, limg), x_nchw.dtype),
        grid=(B // G,),
        in_specs=[
            pl.BlockSpec((G, nf, limg), lambda s: (s, 0, 0)),
            pl.BlockSpec((n_hidden, nf, 9 * nf), lambda s: (0, 0, 0)),
            pl.BlockSpec((n_hidden, nf, 1), lambda s: (0, 0, 0)),
            pl.BlockSpec((cout, 9 * nf), lambda s: (0, 0)),
            pl.BlockSpec((cout, 1), lambda s: (0, 0)),
            pl.BlockSpec((nf, mtot), lambda s: (0, 0)),
        ],
        out_specs=pl.BlockSpec((G, cout, limg), lambda s: (s, 0, 0)),
        scratch_shapes=[
            pltpu.VMEM((nf, lbuf), jnp.float32),        # flat padded activation
            pltpu.VMEM((9 * nf, mtot), jnp.float32),    # im2col patch
        ],
        compiler_params=pltpu.CompilerParams(dimension_semantics=("parallel",)),
    )(x_p, wh, bh, wl, bl, mask)

    # (B, Cout, (H+2)*(W+2)) -> crop the pad ring -> (B, Cout, H, W).
    return out.reshape(B, cout, Hp, Wp)[:, :, 1:H + 1, 1:W + 1]


def init_conv_block_params(key, n_convs=5, n_filters=16, in_chans=2, out_chans=2):
    """Deterministic synthetic parameters (PyTorch Conv2d-style uniform init), HWIO."""
    chans = [in_chans] + [n_filters] * (n_convs - 1) + [out_chans]
    params = []
    for i in range(n_convs):
        key, kw, kb = jax.random.split(key, 3)
        cin, cout = chans[i], chans[i + 1]
        fan_in = cin * 3 * 3
        bound = 1.0 / float(fan_in) ** 0.5
        w = jax.random.uniform(kw, (3, 3, cin, cout), jnp.float32, -bound, bound)
        b = jax.random.uniform(kb, (cout,), jnp.float32, -bound, bound)
        params.append((w, b))
    return params


def conv_block_reference(x_nchw, params):
    """Pure-JAX reference (lax conv) for correctness checking."""
    x = jnp.transpose(x_nchw, (0, 2, 3, 1))
    n = len(params)
    for i, (w, b) in enumerate(params):
        x = jax.lax.conv_general_dilated(
            x, w, window_strides=(1, 1), padding="SAME",
            dimension_numbers=("NHWC", "HWIO", "NHWC"),
        ) + b
        if i < n - 1:
            x = jnp.where(x >= 0, x, 0.1 * x)
    return jnp.transpose(x, (0, 3, 1, 2))


if __name__ == "__main__":
    key = jax.random.PRNGKey(0)
    key, kx = jax.random.split(key)

    # Small shapes consistent with the module: batch=2, in_chans=2, 16x16 spatial (NCHW).
    x = jax.random.normal(kx, (2, 2, 16, 16), jnp.float32)
    params = init_conv_block_params(key, n_convs=5, n_filters=16,
                                    in_chans=2, out_chans=2)
    packed = pack_conv_block_params(params)

    g = _pick_images_per_step(x.shape[0])
    y = jax.block_until_ready(conv_block_forward(x, packed, images_per_step=g))
    y_ref = jax.block_until_ready(conv_block_reference(x, params))

    assert y.shape == (2, 2, 16, 16), y.shape
    assert jnp.allclose(y, y_ref, atol=1e-4, rtol=1e-4), "mismatch vs reference"

    print("KERNEL_OK")
</pallas_src>

<mosaic_0001>
module attributes {stable_mosaic.version = 11 : i64} {
  func.func @_conv_block_kernel(%arg0: i32, %arg1: memref<1x16x324xf32, #tpu.memory_space<vmem>>, %arg2: memref<4x16x144xf32, #tpu.memory_space<vmem>>, %arg3: memref<4x16x1xf32, #tpu.memory_space<vmem>>, %arg4: memref<2x144xf32, #tpu.memory_space<vmem>>, %arg5: memref<2x1xf32, #tpu.memory_space<vmem>>, %arg6: memref<16x324xf32, #tpu.memory_space<vmem>>, %arg7: memref<1x2x324xf32, #tpu.memory_space<vmem>>, %arg8: memref<16x512xf32, #tpu.memory_space<vmem>>, %arg9: memref<144x324xf32, #tpu.memory_space<vmem>>) attributes {dimension_semantics = [#tpu.dimension_semantics<parallel>], iteration_bounds = array<i64: 2>, scalar_prefetch = 0 : i64, scratch_operands = 2 : i64, tpu.core_type = #tpu.core_type<tc>, window_params = [{transform_indices = @transform_0, window_bounds = array<i64: 1, 16, 324>}, {pipeline_mode = #tpu.pipeline_mode<synchronous>, transform_indices = @transform_1, window_bounds = array<i64: 4, 16, 144>}, {pipeline_mode = #tpu.pipeline_mode<synchronous>, transform_indices = @transform_2, window_bounds = array<i64: 4, 16, 1>}, {pipeline_mode = #tpu.pipeline_mode<synchronous>, transform_indices = @transform_3, window_bounds = array<i64: 2, 144>}, {pipeline_mode = #tpu.pipeline_mode<synchronous>, transform_indices = @transform_4, window_bounds = array<i64: 2, 1>}, {pipeline_mode = #tpu.pipeline_mode<synchronous>, transform_indices = @transform_5, window_bounds = array<i64: 16, 324>}, {transform_indices = @transform_6, window_bounds = array<i64: 1, 2, 324>}]} {
    %cst = arith.constant 0.000000e+00 : f32
    %0 = vector.broadcast %cst : f32 to vector<16x512xf32>
    %c0 = arith.constant 0 : index
    %c0_0 = arith.constant 0 : index
    %1 = vector.load %arg8[%c0, %c0_0] : memref<16x512xf32, #tpu.memory_space<vmem>>, vector<16x512xf32>
    tpu.vector_store %arg8[%c0, %c0_0], %0 {strides = array<i32>} : memref<16x512xf32, #tpu.memory_space<vmem>>, vector<16x512xf32>,
    %c0_1 = arith.constant 0 : index
    %c0_2 = arith.constant 0 : index
    %c0_3 = arith.constant 0 : index
    %2 = vector.load %arg1[%c0_1, %c0_2, %c0_3] : memref<1x16x324xf32, #tpu.memory_space<vmem>>, vector<1x16x324xf32>
    %3 = vector.shape_cast %2 : vector<1x16x324xf32> to vector<16x324xf32>
    %c0_4 = arith.constant 0 : index
    %c128 = arith.constant 128 : index
    %4 = vector.load %arg8[%c0_4, %c128] : memref<16x512xf32, #tpu.memory_space<vmem>>, vector<16x324xf32>
    tpu.vector_store %arg8[%c0_4, %c128], %3 {strides = array<i32>} : memref<16x512xf32, #tpu.memory_space<vmem>>, vector<16x324xf32>,
    %c0_5 = arith.constant 0 : index
    %c0_6 = arith.constant 0 : index
    %5 = vector.load %arg6[%c0_5, %c0_6] : memref<16x324xf32, #tpu.memory_space<vmem>>, vector<16x324xf32>
    %c0_7 = arith.constant 0 : index
    %c109 = arith.constant 109 : index
    %6 = vector.load %arg8[%c0_7, %c109] : memref<16x512xf32, #tpu.memory_space<vmem>>, vector<16x324xf32>
    %c0_8 = arith.constant 0 : index
    %c0_9 = arith.constant 0 : index
    %7 = vector.load %arg9[%c0_8, %c0_9] : memref<144x324xf32, #tpu.memory_space<vmem>>, vector<16x324xf32>
    tpu.vector_store %arg9[%c0_8, %c0_9], %6 {strides = array<i32>} : memref<144x324xf32, #tpu.memory_space<vmem>>, vector<16x324xf32>,
    %c0_10 = arith.constant 0 : index
    %c110 = arith.constant 110 : index
    %8 = vector.load %arg8[%c0_10, %c110] : memref<16x512xf32, #tpu.memory_space<vmem>>, vector<16x324xf32>
    %c16 = arith.constant 16 : index
    %c0_11 = arith.constant 0 : index
    %9 = vector.load %arg9[%c16, %c0_11] : memref<144x324xf32, #tpu.memory_space<vmem>>, vector<16x324xf32>
    tpu.vector_store %arg9[%c16, %c0_11], %8 {strides = array<i32>} : memref<144x324xf32, #tpu.memory_space<vmem>>, vector<16x324xf32>,
    %c0_12 = arith.constant 0 : index
    %c111 = arith.constant 111 : index
    %10 = vector.load %arg8[%c0_12, %c111] : memref<16x512xf32, #tpu.memory_space<vmem>>, vector<16x324xf32>
    %c32 = arith.constant 32 : index
    %c0_13 = arith.constant 0 : index
    %11 = vector.load %arg9[%c32, %c0_13] : memref<144x324xf32, #tpu.memory_space<vmem>>, vector<16x324xf32>
    tpu.vector_store %arg9[%c32, %c0_13], %10 {strides = array<i32>} : memref<144x324xf32, #tpu.memory_space<vmem>>, vector<16x324xf32>,
    %c0_14 = arith.constant 0 : index
    %c127 = arith.constant 127 : index
    %12 = vector.load %arg8[%c0_14, %c127] : memref<16x512xf32, #tpu.memory_space<vmem>>, vector<16x324xf32>
    %c48 = arith.constant 48 : index
    %c0_15 = arith.constant 0 : index
    %13 = vector.load %arg9[%c48, %c0_15] : memref<144x324xf32, #tpu.memory_space<vmem>>, vector<16x324xf32>
    tpu.vector_store %arg9[%c48, %c0_15], %12 {strides = array<i32>} : memref<144x324xf32, #tpu.memory_space<vmem>>, vector<16x324xf32>,
    %c0_16 = arith.constant 0 : index
    %c128_17 = arith.constant 128 : index
    %14 = vector.load %arg8[%c0_16, %c128_17] : memref<16x512xf32, #tpu.memory_space<vmem>>, vector<16x324xf32>
    %c64 = arith.constant 64 : index
    %c0_18 = arith.constant 0 : index
    %15 = vector.load %arg9[%c64, %c0_18] : memref<144x324xf32, #tpu.memory_space<vmem>>, vector<16x324xf32>
    tpu.vector_store %arg9[%c64, %c0_18], %14 {strides = array<i32>} : memref<144x324xf32, #tpu.memory_space<vmem>>, vector<16x324xf32>,
    %c0_19 = arith.constant 0 : index
    %c129 = arith.constant 129 : index
    %16 = vector.load %arg8[%c0_19, %c129] : memref<16x512xf32, #tpu.memory_space<vmem>>, vector<16x324xf32>
    %c80 = arith.constant 80 : index
    %c0_20 = arith.constant 0 : index
    %17 = vector.load %arg9[%c80, %c0_20] : memref<144x324xf32, #tpu.memory_space<vmem>>, vector<16x324xf32>
    tpu.vector_store %arg9[%c80, %c0_20], %16 {strides = array<i32>} : memref<144x324xf32, #tpu.memory_space<vmem>>, vector<16x324xf32>,
    %c0_21 = arith.constant 0 : index
    %c145 = arith.constant 145 : index
    %18 = vector.load %arg8[%c0_21, %c145] : memref<16x512xf32, #tpu.memory_space<vmem>>, vector<16x324xf32>
    %c96 = arith.constant 96 : index
    %c0_22 = arith.constant 0 : index
    %19 = vector.load %arg9[%c96, %c0_22] : memref<144x324xf32, #tpu.memory_space<vmem>>, vector<16x324xf32>
    tpu.vector_store %arg9[%c96, %c0_22], %18 {strides = array<i32>} : memref<144x324xf32, #tpu.memory_space<vmem>>, vector<16x324xf32>,
    %c0_23 = arith.constant 0 : index
    %c146 = arith.constant 146 : index
    %20 = vector.load %arg8[%c0_23, %c146] : memref<16x512xf32, #tpu.memory_space<vmem>>, vector<16x324xf32>
    %c112 = arith.constant 112 : index
    %c0_24 = arith.constant 0 : index
    %21 = vector.load %arg9[%c112, %c0_24] : memref<144x324xf32, #tpu.memory_space<vmem>>, vector<16x324xf32>
    tpu.vector_store %arg9[%c112, %c0_24], %20 {strides = array<i32>} : memref<144x324xf32, #tpu.memory_space<vmem>>, vector<16x324xf32>,
    %c0_25 = arith.constant 0 : index
    %c147 = arith.constant 147 : index
    %22 = vector.load %arg8[%c0_25, %c147] : memref<16x512xf32, #tpu.memory_space<vmem>>, vector<16x324xf32>
    %c128_26 = arith.constant 128 : index
    %c0_27 = arith.constant 0 : index
    %23 = vector.load %arg9[%c128_26, %c0_27] : memref<144x324xf32, #tpu.memory_space<vmem>>, vector<16x324xf32>
    tpu.vector_store %arg9[%c128_26, %c0_27], %22 {strides = array<i32>} : memref<144x324xf32, #tpu.memory_space<vmem>>, vector<16x324xf32>,
    %c0_28 = arith.constant 0 : index
    %c0_29 = arith.constant 0 : index
    %24 = vector.load %arg9[%c0_28, %c0_29] : memref<144x324xf32, #tpu.memory_space<vmem>>, vector<144x324xf32>
    %c0_30 = arith.constant 0 : index
    %c0_31 = arith.constant 0 : index
    %c0_32 = arith.constant 0 : index
    %25 = vector.load %arg2[%c0_30, %c0_31, %c0_32] : memref<4x16x144xf32, #tpu.memory_space<vmem>>, vector<1x16x144xf32>
    %26 = vector.shape_cast %25 : vector<1x16x144xf32> to vector<16x144xf32>
    %cst_33 = arith.constant dense<0.000000e+00> : vector<16x324xf32>
    %27 = tpu.matmul %26, %24, %cst_33 {dimension_numbers = #tpu.dot_dimension_numbers<[1], [0], [0], [1], [0, 0, 1, 1], [], []>} : vector<16x144xf32>, vector<144x324xf32>, vector<16x324xf32> -> vector<16x324xf32>
    %c0_34 = arith.constant 0 : index
    %c0_35 = arith.constant 0 : index
    %c0_36 = arith.constant 0 : index
    %28 = vector.load %arg3[%c0_34, %c0_35, %c0_36] : memref<4x16x1xf32, #tpu.memory_space<vmem>>, vector<1x16x1xf32>
    %29 = vector.shape_cast %28 : vector<1x16x1xf32> to vector<16x1xf32>
    %30 = vector.broadcast %29 : vector<16x1xf32> to vector<16x324xf32>
    %31 = arith.addf %27, %30 : vector<16x324xf32>
    %cst_37 = arith.constant 1.000000e-01 : f32
    %32 = vector.broadcast %cst_37 : f32 to vector<16x324xf32>
    %33 = arith.mulf %32, %31 : vector<16x324xf32>
    %34 = arith.maximumf %31, %33 : vector<16x324xf32>
    %35 = arith.mulf %34, %5 : vector<16x324xf32>
    %c0_38 = arith.constant 0 : index
    %c128_39 = arith.constant 128 : index
    %36 = vector.load %arg8[%c0_38, %c128_39] : memref<16x512xf32, #tpu.memory_space<vmem>>, vector<16x324xf32>
    tpu.vector_store %arg8[%c0_38, %c128_39], %35 {strides = array<i32>} : memref<16x512xf32, #tpu.memory_space<vmem>>, vector<16x324xf32>,
    %c0_40 = arith.constant 0 : index
    %c109_41 = arith.constant 109 : index
    %37 = vector.load %arg8[%c0_40, %c109_41] : memref<16x512xf32, #tpu.memory_space<vmem>>, vector<16x324xf32>
    %c0_42 = arith.constant 0 : index
    %c0_43 = arith.constant 0 : index
    %38 = vector.load %arg9[%c0_42, %c0_43] : memref<144x324xf32, #tpu.memory_space<vmem>>, vector<16x324xf32>
    tpu.vector_store %arg9[%c0_42, %c0_43], %37 {strides = array<i32>} : memref<144x324xf32, #tpu.memory_space<vmem>>, vector<16x324xf32>,
    %c0_44 = arith.constant 0 : index
    %c110_45 = arith.constant 110 : index
    %39 = vector.load %arg8[%c0_44, %c110_45] : memref<16x512xf32, #tpu.memory_space<vmem>>, vector<16x324xf32>
    %c16_46 = arith.constant 16 : index
    %c0_47 = arith.constant 0 : index
    %40 = vector.load %arg9[%c16_46, %c0_47] : memref<144x324xf32, #tpu.memory_space<vmem>>, vector<16x324xf32>
    tpu.vector_store %arg9[%c16_46, %c0_47], %39 {strides = array<i32>} : memref<144x324xf32, #tpu.memory_space<vmem>>, vector<16x324xf32>,
    %c0_48 = arith.constant 0 : index
    %c111_49 = arith.constant 111 : index
    %41 = vector.load %arg8[%c0_48, %c111_49] : memref<16x512xf32, #tpu.memory_space<vmem>>, vector<16x324xf32>
    %c32_50 = arith.constant 32 : index
    %c0_51 = arith.constant 0 : index
    %42 = vector.load %arg9[%c32_50, %c0_51] : memref<144x324xf32, #tpu.memory_space<vmem>>, vector<16x324xf32>
    tpu.vector_store %arg9[%c32_50, %c0_51], %41 {strides = array<i32>} : memref<144x324xf32, #tpu.memory_space<vmem>>, vector<16x324xf32>,
    %c0_52 = arith.constant 0 : index
    %c127_53 = arith.constant 127 : index
    %43 = vector.load %arg8[%c0_52, %c127_53] : memref<16x512xf32, #tpu.memory_space<vmem>>, vector<16x324xf32>
    %c48_54 = arith.constant 48 : index
    %c0_55 = arith.constant 0 : index
    %44 = vector.load %arg9[%c48_54, %c0_55] : memref<144x324xf32, #tpu.memory_space<vmem>>, vector<16x324xf32>
    tpu.vector_store %arg9[%c48_54, %c0_55], %43 {strides = array<i32>} : memref<144x324xf32, #tpu.memory_space<vmem>>, vector<16x324xf32>,
    %c0_56 = arith.constant 0 : index
    %c128_57 = arith.constant 128 : index
    %45 = vector.load %arg8[%c0_56, %c128_57] : memref<16x512xf32, #tpu.memory_space<vmem>>, vector<16x324xf32>
    %c64_58 = arith.constant 64 : index
    %c0_59 = arith.constant 0 : index
    %46 = vector.load %arg9[%c64_58, %c0_59] : memref<144x324xf32, #tpu.memory_space<vmem>>, vector<16x324xf32>
    tpu.vector_store %arg9[%c64_58, %c0_59], %45 {strides = array<i32>} : memref<144x324xf32, #tpu.memory_space<vmem>>, vector<16x324xf32>,
    %c0_60 = arith.constant 0 : index
    %c129_61 = arith.constant 129 : index
    %47 = vector.load %arg8[%c0_60, %c129_61] : memref<16x512xf32, #tpu.memory_space<vmem>>, vector<16x324xf32>
    %c80_62 = arith.constant 80 : index
    %c0_63 = arith.constant 0 : index
    %48 = vector.load %arg9[%c80_62, %c0_63] : memref<144x324xf32, #tpu.memory_space<vmem>>, vector<16x324xf32>
    tpu.vector_store %arg9[%c80_62, %c0_63], %47 {strides = array<i32>} : memref<144x324xf32, #tpu.memory_space<vmem>>, vector<16x324xf32>,
    %c0_64 = arith.constant 0 : index
    %c145_65 = arith.constant 145 : index
    %49 = vector.load %arg8[%c0_64, %c145_65] : memref<16x512xf32, #tpu.memory_space<vmem>>, vector<16x324xf32>
    %c96_66 = arith.constant 96 : index
    %c0_67 = arith.constant 0 : index
    %50 = vector.load %arg9[%c96_66, %c0_67] : memref<144x324xf32, #tpu.memory_space<vmem>>, vector<16x324xf32>
    tpu.vector_store %arg9[%c96_66, %c0_67], %49 {strides = array<i32>} : memref<144x324xf32, #tpu.memory_space<vmem>>, vector<16x324xf32>,
    %c0_68 = arith.constant 0 : index
    %c146_69 = arith.constant 146 : index
    %51 = vector.load %arg8[%c0_68, %c146_69] : memref<16x512xf32, #tpu.memory_space<vmem>>, vector<16x324xf32>
    %c112_70 = arith.constant 112 : index
    %c0_71 = arith.constant 0 : index
    %52 = vector.load %arg9[%c112_70, %c0_71] : memref<144x324xf32, #tpu.memory_space<vmem>>, vector<16x324xf32>
    tpu.vector_store %arg9[%c112_70, %c0_71], %51 {strides = array<i32>} : memref<144x324xf32, #tpu.memory_space<vmem>>, vector<16x324xf32>,
    %c0_72 = arith.constant 0 : index
    %c147_73 = arith.constant 147 : index
    %53 = vector.load %arg8[%c0_72, %c147_73] : memref<16x512xf32, #tpu.memory_space<vmem>>, vector<16x324xf32>
    %c128_74 = arith.constant 128 : index
    %c0_75 = arith.constant 0 : index
    %54 = vector.load %arg9[%c128_74, %c0_75] : memref<144x324xf32, #tpu.memory_space<vmem>>, vector<16x324xf32>
    tpu.vector_store %arg9[%c128_74, %c0_75], %53 {strides = array<i32>} : memref<144x324xf32, #tpu.memory_space<vmem>>, vector<16x324xf32>,
    %c0_76 = arith.constant 0 : index
    %c0_77 = arith.constant 0 : index
    %55 = vector.load %arg9[%c0_76, %c0_77] : memref<144x324xf32, #tpu.memory_space<vmem>>, vector<144x324xf32>
    %c1 = arith.constant 1 : index
    %c0_78 = arith.constant 0 : index
    %c0_79 = arith.constant 0 : index
    %56 = vector.load %arg2[%c1, %c0_78, %c0_79] : memref<4x16x144xf32, #tpu.memory_space<vmem>>, vector<1x16x144xf32>
    %57 = vector.shape_cast %56 : vector<1x16x144xf32> to vector<16x144xf32>
    %cst_80 = arith.constant dense<0.000000e+00> : vector<16x324xf32>
    %58 = tpu.matmul %57, %55, %cst_80 {dimension_numbers = #tpu.dot_dimension_numbers<[1], [0], [0], [1], [0, 0, 1, 1], [], []>} : vector<16x144xf32>, vector<144x324xf32>, vector<16x324xf32> -> vector<16x324xf32>
    %c1_81 = arith.constant 1 : index
    %c0_82 = arith.constant 0 : index
    %c0_83 = arith.constant 0 : index
    %59 = vector.load %arg3[%c1_81, %c0_82, %c0_83] : memref<4x16x1xf32, #tpu.memory_space<vmem>>, vector<1x16x1xf32>
    %60 = vector.shape_cast %59 : vector<1x16x1xf32> to vector<16x1xf32>
    %61 = vector.broadcast %60 : vector<16x1xf32> to vector<16x324xf32>
    %62 = arith.addf %58, %61 : vector<16x324xf32>
    %cst_84 = arith.constant 1.000000e-01 : f32
    %63 = vector.broadcast %cst_84 : f32 to vector<16x324xf32>
    %64 = arith.mulf %63, %62 : vector<16x324xf32>
    %65 = arith.maximumf %62, %64 : vector<16x324xf32>
    %66 = arith.mulf %65, %5 : vector<16x324xf32>
    %c0_85 = arith.constant 0 : index
    %c128_86 = arith.constant 128 : index
    %67 = vector.load %arg8[%c0_85, %c128_86] : memref<16x512xf32, #tpu.memory_space<vmem>>, vector<16x324xf32>
    tpu.vector_store %arg8[%c0_85, %c128_86], %66 {strides = array<i32>} : memref<16x512xf32, #tpu.memory_space<vmem>>, vector<16x324xf32>,
    %c0_87 = arith.constant 0 : index
    %c109_88 = arith.constant 109 : index
    %68 = vector.load %arg8[%c0_87, %c109_88] : memref<16x512xf32, #tpu.memory_space<vmem>>, vector<16x324xf32>
    %c0_89 = arith.constant 0 : index
    %c0_90 = arith.constant 0 : index
    %69 = vector.load %arg9[%c0_89, %c0_90] : memref<144x324xf32, #tpu.memory_space<vmem>>, vector<16x324xf32>
    tpu.vector_store %arg9[%c0_89, %c0_90], %68 {strides = array<i32>} : memref<144x324xf32, #tpu.memory_space<vmem>>, vector<16x324xf32>,
    %c0_91 = arith.constant 0 : index
    %c110_92 = arith.constant 110 : index
    %70 = vector.load %arg8[%c0_91, %c110_92] : memref<16x512xf32, #tpu.memory_space<vmem>>, vector<16x324xf32>
    %c16_93 = arith.constant 16 : index
    %c0_94 = arith.constant 0 : index
    %71 = vector.load %arg9[%c16_93, %c0_94] : memref<144x324xf32, #tpu.memory_space<vmem>>, vector<16x324xf32>
    tpu.vector_store %arg9[%c16_93, %c0_94], %70 {strides = array<i32>} : memref<144x324xf32, #tpu.memory_space<vmem>>, vector<16x324xf32>,
    %c0_95 = arith.constant 0 : index
    %c111_96 = arith.constant 111 : index
    %72 = vector.load %arg8[%c0_95, %c111_96] : memref<16x512xf32, #tpu.memory_space<vmem>>, vector<16x324xf32>
    %c32_97 = arith.constant 32 : index
    %c0_98 = arith.constant 0 : index
    %73 = vector.load %arg9[%c32_97, %c0_98] : memref<144x324xf32, #tpu.memory_space<vmem>>, vector<16x324xf32>
    tpu.vector_store %arg9[%c32_97, %c0_98], %72 {strides = array<i32>} : memref<144x324xf32, #tpu.memory_space<vmem>>, vector<16x324xf32>,
    %c0_99 = arith.constant 0 : index
    %c127_100 = arith.constant 127 : index
    %74 = vector.load %arg8[%c0_99, %c127_100] : memref<16x512xf32, #tpu.memory_space<vmem>>, vector<16x324xf32>
    %c48_101 = arith.constant 48 : index
    %c0_102 = arith.constant 0 : index
    %75 = vector.load %arg9[%c48_101, %c0_102] : memref<144x324xf32, #tpu.memory_space<vmem>>, vector<16x324xf32>
    tpu.vector_store %arg9[%c48_101, %c0_102], %74 {strides = array<i32>} : memref<144x324xf32, #tpu.memory_space<vmem>>, vector<16x324xf32>,
    %c0_103 = arith.constant 0 : index
    %c128_104 = arith.constant 128 : index
    %76 = vector.load %arg8[%c0_103, %c128_104] : memref<16x512xf32, #tpu.memory_space<vmem>>, vector<16x324xf32>
    %c64_105 = arith.constant 64 : index
    %c0_106 = arith.constant 0 : index
    %77 = vector.load %arg9[%c64_105, %c0_106] : memref<144x324xf32, #tpu.memory_space<vmem>>, vector<16x324xf32>
    tpu.vector_store %arg9[%c64_105, %c0_106], %76 {strides = array<i32>} : memref<144x324xf32, #tpu.memory_space<vmem>>, vector<16x324xf32>,
    %c0_107 = arith.constant 0 : index
    %c129_108 = arith.constant 129 : index
    %78 = vector.load %arg8[%c0_107, %c129_108] : memref<16x512xf32, #tpu.memory_space<vmem>>, vector<16x324xf32>
    %c80_109 = arith.constant 80 : index
    %c0_110 = arith.constant 0 : index
    %79 = vector.load %arg9[%c80_109, %c0_110] : memref<144x324xf32, #tpu.memory_space<vmem>>, vector<16x324xf32>
    tpu.vector_store %arg9[%c80_109, %c0_110], %78 {strides = array<i32>} : memref<144x324xf32, #tpu.memory_space<vmem>>, vector<16x324xf32>,
    %c0_111 = arith.constant 0 : index
    %c145_112 = arith.constant 145 : index
    %80 = vector.load %arg8[%c0_111, %c145_112] : memref<16x512xf32, #tpu.memory_space<vmem>>, vector<16x324xf32>
    %c96_113 = arith.constant 96 : index
    %c0_114 = arith.constant 0 : index
    %81 = vector.load %arg9[%c96_113, %c0_114] : memref<144x324xf32, #tpu.memory_space<vmem>>, vector<16x324xf32>
    tpu.vector_store %arg9[%c96_113, %c0_114], %80 {strides = array<i32>} : memref<144x324xf32, #tpu.memory_space<vmem>>, vector<16x324xf32>,
    %c0_115 = arith.constant 0 : index
    %c146_116 = arith.constant 146 : index
    %82 = vector.load %arg8[%c0_115, %c146_116] : memref<16x512xf32, #tpu.memory_space<vmem>>, vector<16x324xf32>
    %c112_117 = arith.constant 112 : index
    %c0_118 = arith.constant 0 : index
    %83 = vector.load %arg9[%c112_117, %c0_118] : memref<144x324xf32, #tpu.memory_space<vmem>>, vector<16x324xf32>
    tpu.vector_store %arg9[%c112_117, %c0_118], %82 {strides = array<i32>} : memref<144x324xf32, #tpu.memory_space<vmem>>, vector<16x324xf32>,
    %c0_119 = arith.constant 0 : index
    %c147_120 = arith.constant 147 : index
    %84 = vector.load %arg8[%c0_119, %c147_120] : memref<16x512xf32, #tpu.memory_space<vmem>>, vector<16x324xf32>
    %c128_121 = arith.constant 128 : index
    %c0_122 = arith.constant 0 : index
    %85 = vector.load %arg9[%c128_121, %c0_122] : memref<144x324xf32, #tpu.memory_space<vmem>>, vector<16x324xf32>
    tpu.vector_store %arg9[%c128_121, %c0_122], %84 {strides = array<i32>} : memref<144x324xf32, #tpu.memory_space<vmem>>, vector<16x324xf32>,
    %c0_123 = arith.constant 0 : index
    %c0_124 = arith.constant 0 : index
    %86 = vector.load %arg9[%c0_123, %c0_124] : memref<144x324xf32, #tpu.memory_space<vmem>>, vector<144x324xf32>
    %c2 = arith.constant 2 : index
    %c0_125 = arith.constant 0 : index
    %c0_126 = arith.constant 0 : index
    %87 = vector.load %arg2[%c2, %c0_125, %c0_126] : memref<4x16x144xf32, #tpu.memory_space<vmem>>, vector<1x16x144xf32>
    %88 = vector.shape_cast %87 : vector<1x16x144xf32> to vector<16x144xf32>
    %cst_127 = arith.constant dense<0.000000e+00> : vector<16x324xf32>
    %89 = tpu.matmul %88, %86, %cst_127 {dimension_numbers = #tpu.dot_dimension_numbers<[1], [0], [0], [1], [0, 0, 1, 1], [], []>} : vector<16x144xf32>, vector<144x324xf32>, vector<16x324xf32> -> vector<16x324xf32>
    %c2_128 = arith.constant 2 : index
    %c0_129 = arith.constant 0 : index
    %c0_130 = arith.constant 0 : index
    %90 = vector.load %arg3[%c2_128, %c0_129, %c0_130] : memref<4x16x1xf32, #tpu.memory_space<vmem>>, vector<1x16x1xf32>
    %91 = vector.shape_cast %90 : vector<1x16x1xf32> to vector<16x1xf32>
    %92 = vector.broadcast %91 : vector<16x1xf32> to vector<16x324xf32>
    %93 = arith.addf %89, %92 : vector<16x324xf32>
    %cst_131 = arith.constant 1.000000e-01 : f32
    %94 = vector.broadcast %cst_131 : f32 to vector<16x324xf32>
    %95 = arith.mulf %94, %93 : vector<16x324xf32>
    %96 = arith.maximumf %93, %95 : vector<16x324xf32>
    %97 = arith.mulf %96, %5 : vector<16x324xf32>
    %c0_132 = arith.constant 0 : index
    %c128_133 = arith.constant 128 : index
    %98 = vector.load %arg8[%c0_132, %c128_133] : memref<16x512xf32, #tpu.memory_space<vmem>>, vector<16x324xf32>
    tpu.vector_store %arg8[%c0_132, %c128_133], %97 {strides = array<i32>} : memref<16x512xf32, #tpu.memory_space<vmem>>, vector<16x324xf32>,
    %c0_134 = arith.constant 0 : index
    %c109_135 = arith.constant 109 : index
    %99 = vector.load %arg8[%c0_134, %c109_135] : memref<16x512xf32, #tpu.memory_space<vmem>>, vector<16x324xf32>
    %c0_136 = arith.constant 0 : index
    %c0_137 = arith.constant 0 : index
    %100 = vector.load %arg9[%c0_136, %c0_137] : memref<144x324xf32, #tpu.memory_space<vmem>>, vector<16x324xf32>
    tpu.vector_store %arg9[%c0_136, %c0_137], %99 {strides = array<i32>} : memref<144x324xf32, #tpu.memory_space<vmem>>, vector<16x324xf32>,
    %c0_138 = arith.constant 0 : index
    %c110_139 = arith.constant 110 : index
    %101 = vector.load %arg8[%c0_138, %c110_139] : memref<16x512xf32, #tpu.memory_space<vmem>>, vector<16x324xf32>
    %c16_140 = arith.constant 16 : index
    %c0_141 = arith.constant 0 : index
    %102 = vector.load %arg9[%c16_140, %c0_141] : memref<144x324xf32, #tpu.memory_space<vmem>>, vector<16x324xf32>
    tpu.vector_store %arg9[%c16_140, %c0_141], %101 {strides = array<i32>} : memref<144x324xf32, #tpu.memory_space<vmem>>, vector<16x324xf32>,
    %c0_142 = arith.constant 0 : index
    %c111_143 = arith.constant 111 : index
    %103 = vector.load %arg8[%c0_142, %c111_143] : memref<16x512xf32, #tpu.memory_space<vmem>>, vector<16x324xf32>
    %c32_144 = arith.constant 32 : index
    %c0_145 = arith.constant 0 : index
    %104 = vector.load %arg9[%c32_144, %c0_145] : memref<144x324xf32, #tpu.memory_space<vmem>>, vector<16x324xf32>
    tpu.vector_store %arg9[%c32_144, %c0_145], %103 {strides = array<i32>} : memref<144x324xf32, #tpu.memory_space<vmem>>, vector<16x324xf32>,
    %c0_146 = arith.constant 0 : index
    %c127_147 = arith.constant 127 : index
    %105 = vector.load %arg8[%c0_146, %c127_147] : memref<16x512xf32, #tpu.memory_space<vmem>>, vector<16x324xf32>
    %c48_148 = arith.constant 48 : index
    %c0_149 = arith.constant 0 : index
    %106 = vector.load %arg9[%c48_148, %c0_149] : memref<144x324xf32, #tpu.memory_space<vmem>>, vector<16x324xf32>
    tpu.vector_store %arg9[%c48_148, %c0_149], %105 {strides = array<i32>} : memref<144x324xf32, #tpu.memory_space<vmem>>, vector<16x324xf32>,
    %c0_150 = arith.constant 0 : index
    %c128_151 = arith.constant 128 : index
    %107 = vector.load %arg8[%c0_150, %c128_151] : memref<16x512xf32, #tpu.memory_space<vmem>>, vector<16x324xf32>
    %c64_152 = arith.constant 64 : index
    %c0_153 = arith.constant 0 : index
    %108 = vector.load %arg9[%c64_152, %c0_153] : memref<144x324xf32, #tpu.memory_space<vmem>>, vector<16x324xf32>
    tpu.vector_store %arg9[%c64_152, %c0_153], %107 {strides = array<i32>} : memref<144x324xf32, #tpu.memory_space<vmem>>, vector<16x324xf32>,
    %c0_154 = arith.constant 0 : index
    %c129_155 = arith.constant 129 : index
    %109 = vector.load %arg8[%c0_154, %c129_155] : memref<16x512xf32, #tpu.memory_space<vmem>>, vector<16x324xf32>
    %c80_156 = arith.constant 80 : index
    %c0_157 = arith.constant 0 : index
    %110 = vector.load %arg9[%c80_156, %c0_157] : memref<144x324xf32, #tpu.memory_space<vmem>>, vector<16x324xf32>
    tpu.vector_store %arg9[%c80_156, %c0_157], %109 {strides = array<i32>} : memref<144x324xf32, #tpu.memory_space<vmem>>, vector<16x324xf32>,
    %c0_158 = arith.constant 0 : index
    %c145_159 = arith.constant 145 : index
    %111 = vector.load %arg8[%c0_158, %c145_159] : memref<16x512xf32, #tpu.memory_space<vmem>>, vector<16x324xf32>
    %c96_160 = arith.constant 96 : index
    %c0_161 = arith.constant 0 : index
    %112 = vector.load %arg9[%c96_160, %c0_161] : memref<144x324xf32, #tpu.memory_space<vmem>>, vector<16x324xf32>
    tpu.vector_store %arg9[%c96_160, %c0_161], %111 {strides = array<i32>} : memref<144x324xf32, #tpu.memory_space<vmem>>, vector<16x324xf32>,
    %c0_162 = arith.constant 0 : index
    %c146_163 = arith.constant 146 : index
    %113 = vector.load %arg8[%c0_162, %c146_163] : memref<16x512xf32, #tpu.memory_space<vmem>>, vector<16x324xf32>
    %c112_164 = arith.constant 112 : index
    %c0_165 = arith.constant 0 : index
    %114 = vector.load %arg9[%c112_164, %c0_165] : memref<144x324xf32, #tpu.memory_space<vmem>>, vector<16x324xf32>
    tpu.vector_store %arg9[%c112_164, %c0_165], %113 {strides = array<i32>} : memref<144x324xf32, #tpu.memory_space<vmem>>, vector<16x324xf32>,
    %c0_166 = arith.constant 0 : index
    %c147_167 = arith.constant 147 : index
    %115 = vector.load %arg8[%c0_166, %c147_167] : memref<16x512xf32, #tpu.memory_space<vmem>>, vector<16x324xf32>
    %c128_168 = arith.constant 128 : index
    %c0_169 = arith.constant 0 : index
    %116 = vector.load %arg9[%c128_168, %c0_169] : memref<144x324xf32, #tpu.memory_space<vmem>>, vector<16x324xf32>
    tpu.vector_store %arg9[%c128_168, %c0_169], %115 {strides = array<i32>} : memref<144x324xf32, #tpu.memory_space<vmem>>, vector<16x324xf32>,
    %c0_170 = arith.constant 0 : index
    %c0_171 = arith.constant 0 : index
    %117 = vector.load %arg9[%c0_170, %c0_171] : memref<144x324xf32, #tpu.memory_space<vmem>>, vector<144x324xf32>
    %c3 = arith.constant 3 : index
    %c0_172 = arith.constant 0 : index
    %c0_173 = arith.constant 0 : index
    %118 = vector.load %arg2[%c3, %c0_172, %c0_173] : memref<4x16x144xf32, #tpu.memory_space<vmem>>, vector<1x16x144xf32>
    %119 = vector.shape_cast %118 : vector<1x16x144xf32> to vector<16x144xf32>
    %cst_174 = arith.constant dense<0.000000e+00> : vector<16x324xf32>
    %120 = tpu.matmul %119, %117, %cst_174 {dimension_numbers = #tpu.dot_dimension_numbers<[1], [0], [0], [1], [0, 0, 1, 1], [], []>} : vector<16x144xf32>, vector<144x324xf32>, vector<16x324xf32> -> vector<16x324xf32>
    %c3_175 = arith.constant 3 : index
    %c0_176 = arith.constant 0 : index
    %c0_177 = arith.constant 0 : index
    %121 = vector.load %arg3[%c3_175, %c0_176, %c0_177] : memref<4x16x1xf32, #tpu.memory_space<vmem>>, vector<1x16x1xf32>
    %122 = vector.shape_cast %121 : vector<1x16x1xf32> to vector<16x1xf32>
    %123 = vector.broadcast %122 : vector<16x1xf32> to vector<16x324xf32>
    %124 = arith.addf %120, %123 : vector<16x324xf32>
    %cst_178 = arith.constant 1.000000e-01 : f32
    %125 = vector.broadcast %cst_178 : f32 to vector<16x324xf32>
    %126 = arith.mulf %125, %124 : vector<16x324xf32>
    %127 = arith.maximumf %124, %126 : vector<16x324xf32>
    %128 = arith.mulf %127, %5 : vector<16x324xf32>
    %c0_179 = arith.constant 0 : index
    %c128_180 = arith.constant 128 : index
    %129 = vector.load %arg8[%c0_179, %c128_180] : memref<16x512xf32, #tpu.memory_space<vmem>>, vector<16x324xf32>
    tpu.vector_store %arg8[%c0_179, %c128_180], %128 {strides = array<i32>} : memref<16x512xf32, #tpu.memory_space<vmem>>, vector<16x324xf32>,
    %c0_181 = arith.constant 0 : index
    %c109_182 = arith.constant 109 : index
    %130 = vector.load %arg8[%c0_181, %c109_182] : memref<16x512xf32, #tpu.memory_space<vmem>>, vector<16x324xf32>
    %c0_183 = arith.constant 0 : index
    %c0_184 = arith.constant 0 : index
    %131 = vector.load %arg9[%c0_183, %c0_184] : memref<144x324xf32, #tpu.memory_space<vmem>>, vector<16x324xf32>
    tpu.vector_store %arg9[%c0_183, %c0_184], %130 {strides = array<i32>} : memref<144x324xf32, #tpu.memory_space<vmem>>, vector<16x324xf32>,
    %c0_185 = arith.constant 0 : index
    %c110_186 = arith.constant 110 : index
    %132 = vector.load %arg8[%c0_185, %c110_186] : memref<16x512xf32, #tpu.memory_space<vmem>>, vector<16x324xf32>
    %c16_187 = arith.constant 16 : index
    %c0_188 = arith.constant 0 : index
    %133 = vector.load %arg9[%c16_187, %c0_188] : memref<144x324xf32, #tpu.memory_space<vmem>>, vector<16x324xf32>
    tpu.vector_store %arg9[%c16_187, %c0_188], %132 {strides = array<i32>} : memref<144x324xf32, #tpu.memory_space<vmem>>, vector<16x324xf32>,
    %c0_189 = arith.constant 0 : index
    %c111_190 = arith.constant 111 : index
    %134 = vector.load %arg8[%c0_189, %c111_190] : memref<16x512xf32, #tpu.memory_space<vmem>>, vector<16x324xf32>
    %c32_191 = arith.constant 32 : index
    %c0_192 = arith.constant 0 : index
    %135 = vector.load %arg9[%c32_191, %c0_192] : memref<144x324xf32, #tpu.memory_space<vmem>>, vector<16x324xf32>
    tpu.vector_store %arg9[%c32_191, %c0_192], %134 {strides = array<i32>} : memref<144x324xf32, #tpu.memory_space<vmem>>, vector<16x324xf32>,
    %c0_193 = arith.constant 0 : index
    %c127_194 = arith.constant 127 : index
    %136 = vector.load %arg8[%c0_193, %c127_194] : memref<16x512xf32, #tpu.memory_space<vmem>>, vector<16x324xf32>
    %c48_195 = arith.constant 48 : index
    %c0_196 = arith.constant 0 : index
    %137 = vector.load %arg9[%c48_195, %c0_196] : memref<144x324xf32, #tpu.memory_space<vmem>>, vector<16x324xf32>
    tpu.vector_store %arg9[%c48_195, %c0_196], %136 {strides = array<i32>} : memref<144x324xf32, #tpu.memory_space<vmem>>, vector<16x324xf32>,
    %c0_197 = arith.constant 0 : index
    %c128_198 = arith.constant 128 : index
    %138 = vector.load %arg8[%c0_197, %c128_198] : memref<16x512xf32, #tpu.memory_space<vmem>>, vector<16x324xf32>
    %c64_199 = arith.constant 64 : index
    %c0_200 = arith.constant 0 : index
    %139 = vector.load %arg9[%c64_199, %c0_200] : memref<144x324xf32, #tpu.memory_space<vmem>>, vector<16x324xf32>
    tpu.vector_store %arg9[%c64_199, %c0_200], %138 {strides = array<i32>} : memref<144x324xf32, #tpu.memory_space<vmem>>, vector<16x324xf32>,
    %c0_201 = arith.constant 0 : index
    %c129_202 = arith.constant 129 : index
    %140 = vector.load %arg8[%c0_201, %c129_202] : memref<16x512xf32, #tpu.memory_space<vmem>>, vector<16x324xf32>
    %c80_203 = arith.constant 80 : index
    %c0_204 = arith.constant 0 : index
    %141 = vector.load %arg9[%c80_203, %c0_204] : memref<144x324xf32, #tpu.memory_space<vmem>>, vector<16x324xf32>
    tpu.vector_store %arg9[%c80_203, %c0_204], %140 {strides = array<i32>} : memref<144x324xf32, #tpu.memory_space<vmem>>, vector<16x324xf32>,
    %c0_205 = arith.constant 0 : index
    %c145_206 = arith.constant 145 : index
    %142 = vector.load %arg8[%c0_205, %c145_206] : memref<16x512xf32, #tpu.memory_space<vmem>>, vector<16x324xf32>
    %c96_207 = arith.constant 96 : index
    %c0_208 = arith.constant 0 : index
    %143 = vector.load %arg9[%c96_207, %c0_208] : memref<144x324xf32, #tpu.memory_space<vmem>>, vector<16x324xf32>
    tpu.vector_store %arg9[%c96_207, %c0_208], %142 {strides = array<i32>} : memref<144x324xf32, #tpu.memory_space<vmem>>, vector<16x324xf32>,
    %c0_209 = arith.constant 0 : index
    %c146_210 = arith.constant 146 : index
    %144 = vector.load %arg8[%c0_209, %c146_210] : memref<16x512xf32, #tpu.memory_space<vmem>>, vector<16x324xf32>
    %c112_211 = arith.constant 112 : index
    %c0_212 = arith.constant 0 : index
    %145 = vector.load %arg9[%c112_211, %c0_212] : memref<144x324xf32, #tpu.memory_space<vmem>>, vector<16x324xf32>
    tpu.vector_store %arg9[%c112_211, %c0_212], %144 {strides = array<i32>} : memref<144x324xf32, #tpu.memory_space<vmem>>, vector<16x324xf32>,
    %c0_213 = arith.constant 0 : index
    %c147_214 = arith.constant 147 : index
    %146 = vector.load %arg8[%c0_213, %c147_214] : memref<16x512xf32, #tpu.memory_space<vmem>>, vector<16x324xf32>
    %c128_215 = arith.constant 128 : index
    %c0_216 = arith.constant 0 : index
    %147 = vector.load %arg9[%c128_215, %c0_216] : memref<144x324xf32, #tpu.memory_space<vmem>>, vector<16x324xf32>
    tpu.vector_store %arg9[%c128_215, %c0_216], %146 {strides = array<i32>} : memref<144x324xf32, #tpu.memory_space<vmem>>, vector<16x324xf32>,
    %c0_217 = arith.constant 0 : index
    %c0_218 = arith.constant 0 : index
    %148 = vector.load %arg9[%c0_217, %c0_218] : memref<144x324xf32, #tpu.memory_space<vmem>>, vector<144x324xf32>
    %c0_219 = arith.constant 0 : index
    %c0_220 = arith.constant 0 : index
    %149 = vector.load %arg4[%c0_219, %c0_220] : memref<2x144xf32, #tpu.memory_space<vmem>>, vector<2x144xf32>
    %cst_221 = arith.constant dense<0.000000e+00> : vector<2x324xf32>
    %150 = tpu.matmul %149, %148, %cst_221 {dimension_numbers = #tpu.dot_dimension_numbers<[1], [0], [0], [1], [0, 0, 1, 1], [], []>} : vector<2x144xf32>, vector<144x324xf32>, vector<2x324xf32> -> vector<2x324xf32>
    %c0_222 = arith.constant 0 : index
    %c0_223 = arith.constant 0 : index
    %151 = vector.load %arg5[%c0_222, %c0_223] : memref<2x1xf32, #tpu.memory_space<vmem>>, vector<2x1xf32>
    %152 = vector.broadcast %151 : vector<2x1xf32> to vector<2x324xf32>
    %153 = arith.addf %150, %152 : vector<2x324xf32>
    %c0_224 = arith.constant 0 : index
    %c0_225 = arith.constant 0 : index
    %c0_226 = arith.constant 0 : index
    %154 = vector.load %arg7[%c0_224, %c0_225, %c0_226] : memref<1x2x324xf32, #tpu.memory_space<vmem>>, vector<1x2x324xf32>
    %155 = vector.shape_cast %154 : vector<1x2x324xf32> to vector<2x324xf32>
    %156 = vector.shape_cast %153 : vector<2x324xf32> to vector<1x2x324xf32>
    tpu.vector_store %arg7[%c0_224, %c0_225, %c0_226], %156 {strides = array<i32>} : memref<1x2x324xf32, #tpu.memory_space<vmem>>, vector<1x2x324xf32>,
    return
  }
  func.func @transform_0(%arg0: i32) -> (i32, i32, i32) {
    %c0_i32 = arith.constant 0 : i32
    %c0_i32_0 = arith.constant 0 : i32
    %c0_i32_1 = arith.constant 0 : i32
    return %arg0, %c0_i32, %c0_i32_0 : i32, i32, i32
  }
  func.func @transform_1(%arg0: i32) -> (i32, i32, i32) {
    %c0_i32 = arith.constant 0 : i32
    %c0_i32_0 = arith.constant 0 : i32
    %c0_i32_1 = arith.constant 0 : i32
    %c0_i32_2 = arith.constant 0 : i32
    return %c0_i32, %c0_i32_0, %c0_i32_1 : i32, i32, i32
  }
  func.func @transform_2(%arg0: i32) -> (i32, i32, i32) {
    %c0_i32 = arith.constant 0 : i32
    %c0_i32_0 = arith.constant 0 : i32
    %c0_i32_1 = arith.constant 0 : i32
    %c0_i32_2 = arith.constant 0 : i32
    return %c0_i32, %c0_i32_0, %c0_i32_1 : i32, i32, i32
  }
  func.func @transform_3(%arg0: i32) -> (i32, i32) {
    %c0_i32 = arith.constant 0 : i32
    %c0_i32_0 = arith.constant 0 : i32
    %c0_i32_1 = arith.constant 0 : i32
    return %c0_i32, %c0_i32_0 : i32, i32
  }
  func.func @transform_4(%arg0: i32) -> (i32, i32) {
    %c0_i32 = arith.constant 0 : i32
    %c0_i32_0 = arith.constant 0 : i32
    %c0_i32_1 = arith.constant 0 : i32
    return %c0_i32, %c0_i32_0 : i32, i32
  }
  func.func @transform_5(%arg0: i32) -> (i32, i32) {
    %c0_i32 = arith.constant 0 : i32
    %c0_i32_0 = arith.constant 0 : i32
    %c0_i32_1 = arith.constant 0 : i32
    return %c0_i32, %c0_i32_0 : i32, i32
  }
  func.func @transform_6(%arg0: i32) -> (i32, i32, i32) {
    %c0_i32 = arith.constant 0 : i32
    %c0_i32_0 = arith.constant 0 : i32
    %c0_i32_1 = arith.constant 0 : i32
    return %arg0, %c0_i32, %c0_i32_0 : i32, i32, i32
  }
}

</mosaic_0001>

<bundles_post_ra>
// kernel: conv_block_forward.1
= control target key start
LH: loop header
LB: loop body
LE: loop exit
PB: predicated region body
PF: predicated region fallthrough
CT: control target
= control target key end

     0   :  { %s4005_s21 = smov 0   ;;  %s5364_s0 = inlined_call_operand.vmem [shape: f32[2,16,324], index: 0, kind: input, shape index: {}]   ;;  %s5365_s1 = inlined_call_operand.vmem [shape: f32[4,16,144], index: 1, kind: input, shape index: {}]   ;;  %s5366_s2 = inlined_call_operand.vmem [shape: f32[4,16,1], index: 2, kind: input, shape index: {}]   ;;  %s5367_s3 = inlined_call_operand.vmem [shape: f32[2,144], index: 3, kind: input, shape index: {}]   ;;  %s5368_s4 = inlined_call_operand.vmem [shape: f32[2,1], index: 4, kind: input, shape index: {}]   ;;  %s5369_s5 = inlined_call_operand.vmem [shape: f32[16,324], index: 5, kind: input, shape index: {}]   ;;  %s5370_s6 = inlined_call_operand.vmem [shape: f32[2,2,324], index: 6, kind: output, shape index: {}]  }
   0x1 LB: > { %s3457_s22 = sadd.s32 4294967295, %s3956_s21   ;;  %p3461_p0 = scmp.ge.s32.totalorder %s3956_s21, 1  ;;  %s3956_s21 = sphi %s4005_s21, %s16_s21  }
   0x2   : > { %p212_p1 = scmp.lt.s32.totalorder %s3956_s21, 3 }
   0x4   : > { %p213_p2 = pnand %p3461_p0, %p212_p1 }
   0x5   : > { %v3958_v0 = vmov (!%p213_p2), 0.0   ;;  %p242_p3 = scmp.lt.s32.totalorder (!%p213_p2), %s3457_s22, 1  ;;  %s3959_s23 = smov (!%p213_p2), 18   ;;  %vm268_vm0 = vcmask (!%p213_p2), 556032   ;;  %v3962_v9 = vmov (!%p213_p2), 0.0|0.0   ;;  %v714_v10 = vld [vmem:[%s5365_s1 + $0x8] sm:$0xff] (!%p213_p2) }
   0x6   : > { %216 = sbr.rel (%p213_p2) target bundleno = 2237 (0x8bd), region = 44  ;;  %252 = vst [vmem:[#allocation2] sm:$0xff] (!%p213_p2), %v3958_v0  ;;  %255 = vst [vmem:[#allocation2 + $0x18] sm:$0xff] (!%p213_p2), %v3958_v0  ;;  %3846 = vrot.lane.b32.xlu1 (!%p213_p2), %v3958_v0, %s3959_s23  ;;  %s3960_s24 = smov (!%p213_p2), 19   ;;  %3539 = vmatprep.subr.bf16.mxu1 (!%p213_p2), %v3962_v9  ;;  %vm729_vm1 = vcmask (!%p213_p2), 130048   ;;  %v3968_v11 = vmov (!%p213_p2), 0  }
   0x7   : > { %259 = vst [vmem:[#allocation2 + $0x38] sm:$0xff] (!%p213_p2), %v3958_v0  ;;  %3841 = vrot.lane.b32.xlu0 (!%p213_p2), %v3958_v0, %s3960_s24  ;;  %s3961_s29 = smov (!%p213_p2), 17   ;;  %s3963_s30 = smov (!%p213_p2), 1   ;;  %3466 = vmatprep.mubr.msk.f32.mxu1 (!%p213_p2), %vm729_vm1, %v714_v10  ;;  %v717_v12 = vld [vmem:[%s5366_s2] sm:$0xff] (!%p213_p2)  ;;  %v718_v13 = vld [vmem:[%s5366_s2 + $0x8] sm:$0xff] (!%p213_p2)  ;;  %vm311_vm2 = vcmask (!%p213_p2), 154624  }
   0x8   : > { %s3964_s7 = smov (!%p213_p2), 127   ;;  %s3965_s8 = smov (!%p213_p2), 111   ;;  %3464 = vmatprep.mubr.msk.f32.mxu0 (!%p213_p2), %vm729_vm1, %v714_v10  ;;  %3860 = vset.pattern.permute.xlu0 (!%p213_p2), %v3968_v11  ;;  %vm362_vm3 = vcmask (!%p213_p2), 146432   ;;  %vm413_vm4 = vcmask (!%p213_p2), 138240   ;;  %vm464_vm5 = vcmask (!%p213_p2), 7168   ;;  %vm519_vm6 = vcmask (!%p213_p2), 1039360  }
   0x9   : > { %s3966_s9 = smov (!%p213_p2), 110   ;;  %s3967_s12 = smov (!%p213_p2), 109   ;;  %3861 = vset.pattern.permute.xlu1 (!%p213_p2), %v3968_v11  ;;  %vm560_vm7 = vcmask (!%p213_p2), 908288   ;;  %vm601_vm8 = vcmask (!%p213_p2), 900096   ;;  %vm642_vm9 = vcmask (!%p213_p2), 891904   ;;  %vm3396_vm10 = vcmask (!%p213_p2), 1041408  }
   0xa   : > { %vm3397_vm11 = vcmask (!%p213_p2), 1043458   ;;  %vm3399_vm13 = vcmask (!%p213_p2), 553988  }
   0xb   : > { %vm3398_vm12 = vmor (!%p213_p2), %vm3397_vm11, %vm3396_vm10 }
   0xc   : > { %vm3400_vm14 = vmor (!%p213_p2), %vm3399_vm13, %vm3398_vm12 }
   0xd   : > { %s5372_s22 = smov (!%p242_p3, %s3457_s22), 1 }
   0xe   : > { %s3818_s25 = smul.u32 48, %s5372_s22 }
  0x10   : > { %s246_s28 = scalar_lea.vmem %s5364_s0, %s3818_s25 }
  0x11   : > { %v4026_v1 = vld [vmem:[%s246_s28 + $0x18] sm:$0xff]  ;;  %v4028_v2 = vld [vmem:[%s246_s28] sm:$0xff]  ;;  %v262_v3 = vld [vmem:[%s246_s28 + $0x10] sm:$0xff] }
  0x12   : > { %305 = vrot.lane.b32.xlu1 %v4026_v1, %s3960_s24  ;;  %297 = vrot.lane.b32.xlu0 %v4028_v2, %s3960_s24  ;;  %v4034_v4 = vld [vmem:[%s246_s28 + $0x20] sm:$0xff]  ;;  %v4036_v5 = vld [vmem:[%s246_s28 + $0x8] sm:$0xff]  ;;  %269 = vst.msk [vmem:[#allocation2 + $0x18] sm:$0xff] %vm268_vm0, %v262_v3 }
  0x13   : > { %v265_v6 = vld [vmem:[%s246_s28 + $0x28] sm:$0xff] }
  0x14   : > { %272 = vst.msk [vmem:[#allocation2 + $0x38] sm:$0xff] %vm268_vm0, %v265_v6 }
  0x16   : > { %307 = vrot.lane.b32.xlu1 %v4034_v4, %s3960_s24  ;;  %299 = vrot.lane.b32.xlu0 %v4036_v5, %s3960_s24 }
  0x19   : > { %v282_v7 = vld [vmem:[#allocation2 + $0x18] sm:$0xff] }
  0x1a   : > { %348 = vrot.lane.b32.xlu1 %v4028_v2, %s3959_s23  ;;  %350 = vrot.lane.b32.xlu0 %v4036_v5, %s3959_s23  ;;  %491 = vst.msk [vmem:[#allocation3 + $0xd0] sm:$0xff] %vm268_vm0, %v282_v7 }
  0x1b   : > { %v286_v8 = vld [vmem:[#allocation2 + $0x38] sm:$0xff] }
  0x1c   : > { %494 = vst.msk [vmem:[#allocation3 + $0xe8] sm:$0xff] %vm268_vm0, %v286_v8 }
  0x1e   : > { %356 = vrot.lane.b32.xlu1 %v4026_v1, %s3959_s23  ;;  %358 = vrot.lane.b32.xlu0 %v4034_v4, %s3959_s23 }
  0x22   : > { %401 = vrot.lane.b32.xlu1 %v4036_v5, %s3961_s29  ;;  %399 = vrot.lane.b32.xlu0 %v4028_v2, %s3961_s29 }
  0x26   : > { %409 = vrot.lane.b32.xlu1 %v4034_v4, %s3961_s29  ;;  %407 = vrot.lane.b32.xlu0 %v4026_v1, %s3961_s29 }
  0x2a   : > { %301 = vrot.lane.b32.xlu1 %v282_v7, %s3960_s24  ;;  %3851 = vrot.lane.b32.xlu0 %v3958_v0, %s3961_s29 }
  0x2e   : > { %450 = vrot.lane.b32.xlu1 %v4028_v2, %s3963_s30  ;;  %309 = vrot.lane.b32.xlu0 %v286_v8, %s3960_s24 }
  0x32   : > { %458 = vrot.lane.b32.xlu1 %v4026_v1, %s3963_s30  ;;  %452 = vrot.lane.b32.xlu0 %v4036_v5, %s3963_s30 }
  0x36   : > { %3856 = vrot.lane.b32.xlu1 %v3958_v0, %s3963_s30  ;;  %460 = vrot.lane.b32.xlu0 %v4034_v4, %s3963_s30 }
  0x3a   : > { %360 = vrot.lane.b32.xlu1 %v286_v8, %s3959_s23  ;;  %352 = vrot.lane.b32.xlu0 %v282_v7, %s3959_s23 }
  0x3e   : > { %411 = vrot.lane.b32.xlu1 %v286_v8, %s3961_s29  ;;  %403 = vrot.lane.b32.xlu0 %v282_v7, %s3961_s29 }
  0x42   : > { %511 = vrot.lane.b32.xlu1 %v282_v7, %s3964_s7  ;;  %509 = vrot.lane.b32.xlu0 %v4036_v5, %s3964_s7 }
  0x46   : > { %517 = vrot.lane.b32.xlu1 %v286_v8, %s3964_s7  ;;  %515 = vrot.lane.b32.xlu0 %v4034_v4, %s3964_s7 }
  0x4a   : > { %513 = vrot.lane.b32.xlu1 %v4026_v1, %s3964_s7  ;;  %507 = vrot.lane.b32.xlu0 %v4028_v2, %s3964_s7 }
  0x4e   : > { %462 = vrot.lane.b32.xlu1 %v286_v8, %s3963_s30  ;;  %454 = vrot.lane.b32.xlu0 %v282_v7, %s3963_s30 }
  0x52   : > { %552 = vrot.lane.b32.xlu1 %v282_v7, %s3965_s8  ;;  %550 = vrot.lane.b32.xlu0 %v4036_v5, %s3965_s8 }
  0x56   : > { %558 = vrot.lane.b32.xlu1 %v286_v8, %s3965_s8  ;;  %556 = vrot.lane.b32.xlu0 %v4034_v4, %s3965_s8 }
  0x5a   : > { %554 = vrot.lane.b32.xlu1 %v4026_v1, %s3965_s8  ;;  %548 = vrot.lane.b32.xlu0 %v4028_v2, %s3965_s8 }
  0x5e   : > { %593 = vrot.lane.b32.xlu1 %v282_v7, %s3966_s9  ;;  %591 = vrot.lane.b32.xlu0 %v4036_v5, %s3966_s9 }
  0x62   : > { %599 = vrot.lane.b32.xlu1 %v286_v8, %s3966_s9  ;;  %597 = vrot.lane.b32.xlu0 %v4034_v4, %s3966_s9 }
  0x66   : > { %595 = vrot.lane.b32.xlu1 %v4026_v1, %s3966_s9  ;;  %589 = vrot.lane.b32.xlu0 %v4028_v2, %s3966_s9 }
  0x6a   : > { %634 = vrot.lane.b32.xlu1 %v282_v7, %s3967_s12  ;;  %632 = vrot.lane.b32.xlu0 %v4036_v5, %s3967_s12 }
  0x6e   : > { %640 = vrot.lane.b32.xlu1 %v286_v8, %s3967_s12  ;;  %638 = vrot.lane.b32.xlu0 %v4034_v4, %s3967_s12 }
  0x72   : > { %636 = vrot.lane.b32.xlu1 %v4026_v1, %s3967_s12  ;;  %630 = vrot.lane.b32.xlu0 %v4028_v2, %s3967_s12 }
  0x76   : > { %721 = vperm.xlu0 %3860, %v717_v12   ;;  %726 = vperm.xlu1 %3861, %v718_v13   ;;  %v3519_v13 = vpack.c.bf16 %v4034_v4, %v4036_v5 }
  0x78   : > { %v3847_v14 = vpop.permute.xlu1 %3846 }
  0x79   : > { %v3842_v15 = vpop.permute.xlu0 %3841  ;;  %v3849_v30 = vunpack.i.h.bf16 %v3847_v14  ;;  %v3848_v31 = vunpack.i.l.bf16 %v3847_v14 }
  0x7a   : > { %3863 = vrot.lane.b32.xlu1 %v3958_v0, %s3960_s24  ;;  %3868 = vrot.lane.b32.xlu0 %v3958_v0, %s3959_s23  ;;  %v3844_v16 = vunpack.i.h.bf16 %v3842_v15  ;;  %v3843_v17 = vunpack.i.l.bf16 %v3842_v15 }
  0x7e   : > { %3873 = vrot.lane.b32.xlu1 %v3958_v0, %s3961_s29  ;;  %3878 = vrot.lane.b32.xlu0 %v3958_v0, %s3963_s30 }
  0x84   : > { %v306_v18 = vpop.permute.xlu1 %305  ;;  %v298_v19 = vpop.permute.xlu0 %297 }
  0x85   : > { %v315_v20 = vsel %vm311_vm2, %v3844_v16, %v306_v18  ;;  %v312_v21 = vsel %vm311_vm2, %v3843_v17, %v298_v19 }
  0x86   : > { %v3505_v27 = vpack.c.bf16 %v315_v20, %v312_v21 }
  0x88   : > { %v308_v22 = vpop.permute.xlu1 %307  ;;  %v300_v23 = vpop.permute.xlu0 %299 }
  0x89   : > { %v316_v24 = vsel %vm311_vm2, %v306_v18, %v308_v22  ;;  %v313_v25 = vsel %vm311_vm2, %v298_v19, %v300_v23  ;;  %v3521_v19 = vpack.c.bf16 %v4026_v1, %v4028_v2 }
  0x8a   : > { %v3503_v26 = vpack.c.bf16 %v316_v24, %v313_v25 }
  0x8c   : > { %v349_v28 = vpop.permute.xlu1 %348  ;;  %v351_v29 = vpop.permute.xlu0 %350  ;;  %3504 = vmatprep.subr.bf16.mxu0 %v3503_v26 }
  0x8d   : > { %3506 = vmatpush1.bf16.msra.mxu0 %v3505_v27  ;;  %v363_v34 = vsel %vm362_vm3, %v3848_v31, %v349_v28  ;;  %v364_v35 = vsel %vm362_vm3, %v349_v28, %v351_v29 }
  0x90   : > { %v357_v32 = vpop.permute.xlu1 %356  ;;  %v359_v33 = vpop.permute.xlu0 %358 }
  0x91   : > { %v366_v36 = vsel %vm362_vm3, %v3849_v30, %v357_v32  ;;  %v367_v37 = vsel %vm362_vm3, %v357_v32, %v359_v33 }
  0x92   : > { %v3507_v38 = vpack.c.bf16 %v367_v37, %v364_v35  ;;  %v3509_v39 = vpack.c.bf16 %v366_v36, %v363_v34 }
  0x94   : > { %v402_v40 = vpop.permute.xlu1 %401  ;;  %v400_v41 = vpop.permute.xlu0 %399  ;;  %3508 = vmatprep.subr.bf16.mxu0 %v3507_v38 }
  0x95   : > { %3510 = vmatpush1.bf16.msra.mxu0 %v3509_v39  ;;  %v415_v44 = vsel %vm413_vm4, %v400_v41, %v402_v40 }
  0x98   : > { %v410_v42 = vpop.permute.xlu1 %409  ;;  %v408_v43 = vpop.permute.xlu0 %407 }
  0x99   : > { %v418_v45 = vsel %vm413_vm4, %v408_v43, %v410_v42 }
  0x9a   : > { %v3511_v46 = vpack.c.bf16 %v418_v45, %v415_v44 }
  0x9c   : > { %v302_v47 = vpop.permute.xlu1 %301  ;;  %v3852_v48 = vpop.permute.xlu0 %3851  ;;  %3512 = vmatprep.subr.bf16.mxu0 %v3511_v46  ;;  %v685_v46 = vld [vmem:[#allocation3 + $0xd0] sm:$0xff] }
  0x9d   : > { %v314_v49 = vsel %vm311_vm2, %v300_v23, %v302_v47  ;;  %v3854_v50 = vunpack.i.h.bf16 %v3852_v48  ;;  %v3853_v51 = vunpack.i.l.bf16 %v3852_v48 }
  0x9e   : > { %326 = vst.msk [vmem:[#allocation3 + $0x10] sm:$0xff] %vm268_vm0, %v314_v49 }
  0x9f   : > { %v417_v52 = vsel %vm413_vm4, %v3854_v50, %v408_v43  ;;  %v414_v53 = vsel %vm413_vm4, %v3853_v51, %v400_v41  ;;  %v688_v51 = vld [vmem:[#allocation3 + $0xe8] sm:$0xff] }
  0xa0   : > { %v451_v54 = vpop.permute.xlu1 %450  ;;  %v310_v55 = vpop.permute.xlu0 %309  ;;  %v3513_v56 = vpack.c.bf16 %v417_v52, %v414_v53 }
  0xa1   : > { %v317_v57 = vsel %vm311_vm2, %v308_v22, %v310_v55 }
  0xa2   : > { %329 = vst.msk [vmem:[#allocation3 + $0x28] sm:$0xff] %vm268_vm0, %v317_v57  ;;  %3514 = vmatpush1.bf16.msra.mxu0 %v3513_v56  ;;  %v3552_v56 = vpack.c.bf16 %v688_v51, %v685_v46 }
  0xa4   : > { %v459_v58 = vpop.permute.xlu1 %458  ;;  %v4158_v59 = vpop.permute.xlu0 %452 }
  0xa5   : > { %v466_v62 = vsel %vm464_vm5, %v451_v54, %v4158_v59  ;;  %v661_v6 = vld [vmem:[#allocation3 + $0x10] sm:$0xff] }
  0xa8   : > { %v3857_v60 = vpop.permute.xlu1 %3856  ;;  %v461_v61 = vpop.permute.xlu0 %460 }
  0xa9   : > { %v3859_v63 = vunpack.i.h.bf16 %v3857_v60  ;;  %v3858_v0 = vunpack.i.l.bf16 %v3857_v60  ;;  %v469_v3 = vsel %vm464_vm5, %v459_v58, %v461_v61  ;;  %v664_v7 = vld [vmem:[#allocation3 + $0x28] sm:$0xff] }
  0xaa   : > { %v3540_v8 = vpack.c.bf16 %v664_v7, %v661_v6  ;;  %v3515_v10 = vpack.c.bf16 %v469_v3, %v466_v62 }
  0xab   : > { %v468_v11 = vsel %vm464_vm5, %v3859_v63, %v459_v58  ;;  %v465_v12 = vsel %vm464_vm5, %v3858_v0, %v451_v54 }
  0xac   : > { %v361_v14 = vpop.permute.xlu1 %360  ;;  %3541 = vmatpush1.bf16.msra.mxu1 %v3540_v8  ;;  %v353_v15 = vpop.permute.xlu0 %352  ;;  %3516 = vmatprep.subr.bf16.mxu0 %v3515_v10  ;;  %v3517_v16 = vpack.c.bf16 %v468_v11, %v465_v12 }
  0xad   : > { %v368_v17 = vsel %vm362_vm3, %v359_v33, %v361_v14  ;;  %v365_v18 = vsel %vm362_vm3, %v351_v29, %v353_v15  ;;  %3542 = vmatprep.subr.bf16.mxu1 %v3962_v9 }
  0xae   : > { %380 = vst.msk [vmem:[#allocation3 + $0x58] sm:$0xff] %vm268_vm0, %v368_v17  ;;  %377 = vst.msk [vmem:[#allocation3 + $0x40] sm:$0xff] %vm268_vm0, %v365_v18  ;;  %3518 = vmatpush1.bf16.msra.mxu0 %v3517_v16 }
  0xaf   : > { %3520 = vmatprep.subr.bf16.mxu0 %v3519_v13 }
  0xb0   : > { %v412_v4 = vpop.permute.xlu1 %411  ;;  %v404_v5 = vpop.permute.xlu0 %403 }
  0xb1   : > { %v419_v20 = vsel %vm413_vm4, %v410_v42, %v412_v4  ;;  %v416_v21 = vsel %vm413_vm4, %v402_v40, %v404_v5 }
  0xb2   : > { %431 = vst.msk [vmem:[#allocation3 + $0x88] sm:$0xff] %vm268_vm0, %v419_v20  ;;  %428 = vst.msk [vmem:[#allocation3 + $0x70] sm:$0xff] %vm268_vm0, %v416_v21  ;;  %3522 = vmatpush1.bf16.msra.mxu0 %v3521_v19 }
  0xb4   : > { %v512_v22 = vpop.permute.xlu1 %511  ;;  %v510_v23 = vpop.permute.xlu0 %509 }
  0xb5   : > { %532 = vst.msk [vmem:[#allocation3 + $0x100] sm:$0xff] %vm268_vm0, %v512_v22  ;;  %v667_v24 = vld [vmem:[#allocation3 + $0x40] sm:$0xff]  ;;  %v670_v25 = vld [vmem:[#allocation3 + $0x58] sm:$0xff]  ;;  %v521_v27 = vsel %vm519_vm6, %v510_v23, %v512_v22 }
  0xb6   : > { %v3543_v1 = vpack.c.bf16 %v670_v25, %v667_v24 }
  0xb8   : > { %v518_v2 = vpop.permute.xlu1 %517  ;;  %3544 = vmatpush1.bf16.msra.mxu1 %v3543_v1  ;;  %v516_v26 = vpop.permute.xlu0 %515 }
  0xb9   : > { %535 = vst.msk [vmem:[#allocation3 + $0x118] sm:$0xff] %vm268_vm0, %v518_v2  ;;  %v523_v28 = vsel %vm519_vm6, %v516_v26, %v518_v2  ;;  %3545 = vmatprep.subr.bf16.mxu1 %v3962_v9  ;;  %v673_v29 = vld [vmem:[#allocation3 + $0x70] sm:$0xff]  ;;  %v676_v30 = vld [vmem:[#allocation3 + $0x88] sm:$0xff] }
  0xba   : > { %v3546_v31 = vpack.c.bf16 %v676_v30, %v673_v29  ;;  %v3523_v32 = vpack.c.bf16 %v523_v28, %v521_v27 }
  0xbc   : > { %v514_v33 = vpop.permute.xlu1 %513  ;;  %3547 = vmatpush1.bf16.msra.mxu1 %v3546_v31  ;;  %v508_v34 = vpop.permute.xlu0 %507  ;;  %3524 = vmatprep.subr.bf16.mxu0 %v3523_v32  ;;  %v691_v63 = vld [vmem:[#allocation3 + $0x100] sm:$0xff] }
  0xbd   : > { %v522_v35 = vsel %vm519_vm6, %v514_v33, %v516_v26  ;;  %v520_v36 = vsel %vm519_vm6, %v508_v34, %v510_v23  ;;  %3548 = vmatprep.subr.bf16.mxu1 %v3962_v9  ;;  %v713_v32 = vld [vmem:[%s5365_s1] sm:$0xff]  ;;  %v716_v34 = vld [vmem:[%s5365_s1 + $0x18] sm:$0xff] }
  0xbe   : > { %v3525_v37 = vpack.c.bf16 %v522_v35, %v520_v36  ;;  %v715_v35 = vld [vmem:[%s5365_s1 + $0x10] sm:$0xff] }
  0xc0   : > { %v463_v38 = vpop.permute.xlu1 %462  ;;  %v455_v39 = vpop.permute.xlu0 %454  ;;  %3526 = vmatpush1.bf16.msra.mxu0 %v3525_v37  ;;  %v694_v60 = vld [vmem:[#allocation3 + $0x118] sm:$0xff] }
  0xc1   : > { %v470_v40 = vsel %vm464_vm5, %v461_v61, %v463_v38  ;;  %v467_v41 = vsel %vm464_vm5, %v4158_v59, %v455_v39  ;;  %v3555_v0 = vpack.c.bf16 %v694_v60, %v691_v63 }
  0xc2   : > { %482 = vst.msk [vmem:[#allocation3 + $0xb8] sm:$0xff] %vm268_vm0, %v470_v40  ;;  %479 = vst.msk [vmem:[#allocation3 + $0xa0] sm:$0xff] %vm268_vm0, %v467_v41 }
  0xc4   : > { %v553_v42 = vpop.permute.xlu1 %552  ;;  %v551_v43 = vpop.permute.xlu0 %550 }
  0xc5   : > { %573 = vst.msk [vmem:[#allocation3 + $0x130] sm:$0xff] %vm268_vm0, %v553_v42  ;;  %v562_v47 = vsel %vm560_vm7, %v551_v43, %v553_v42 }
  0xc8   : > { %v559_v44 = vpop.permute.xlu1 %558  ;;  %v557_v45 = vpop.permute.xlu0 %556 }
  0xc9   : > { %576 = vst.msk [vmem:[#allocation3 + $0x148] sm:$0xff] %vm268_vm0, %v559_v44  ;;  %v564_v48 = vsel %vm560_vm7, %v557_v45, %v559_v44  ;;  %v679_v49 = vld [vmem:[#allocation3 + $0xa0] sm:$0xff]  ;;  %v682_v50 = vld [vmem:[#allocation3 + $0xb8] sm:$0xff] }
  0xca   : > { %v3549_v52 = vpack.c.bf16 %v682_v50, %v679_v49  ;;  %v3527_v53 = vpack.c.bf16 %v564_v48, %v562_v47 }
  0xcc   : > { %v555_v54 = vpop.permute.xlu1 %554  ;;  %3550 = vmatpush1.bf16.msra.mxu1 %v3549_v52  ;;  %v549_v55 = vpop.permute.xlu0 %548  ;;  %3528 = vmatprep.subr.bf16.mxu0 %v3527_v53  ;;  %v697_v11 = vld [vmem:[#allocation3 + $0x130] sm:$0xff]  ;;  %v4235_v53 = vld [vmem:[%s5369_s5 + $0x28] sm:$0xff] }
  0xcd   : > { %v563_v57 = vsel %vm560_vm7, %v555_v54, %v557_v45  ;;  %v561_v58 = vsel %vm560_vm7, %v549_v55, %v551_v43  ;;  %3551 = vmatprep.subr.bf16.mxu1 %v3962_v9  ;;  %v4229_v45 = vld [vmem:[%s5369_s5 + $0x10] sm:$0xff] }
  0xce   : > { %v3529_v59 = vpack.c.bf16 %v563_v57, %v561_v58 }
  0xd0   : > { %v594_v61 = vpop.permute.xlu1 %593  ;;  %3553 = vmatpush1.bf16.msra.mxu1 %v3552_v56  ;;  %v592_v62 = vpop.permute.xlu0 %591  ;;  %3530 = vmatpush1.bf16.msra.mxu0 %v3529_v59  ;;  %v700_v3 = vld [vmem:[#allocation3 + $0x148] sm:$0xff] }
  0xd1   : > { %614 = vst.msk [vmem:[#allocation3 + $0x160] sm:$0xff] %vm268_vm0, %v594_v61  ;;  %3554 = vmatprep.subr.bf16.mxu1 %v3962_v9  ;;  %v603_v8 = vsel %vm601_vm8, %v592_v62, %v594_v61  ;;  %v3558_v12 = vpack.c.bf16 %v700_v3, %v697_v11 }
  0xd4   : > { %v600_v6 = vpop.permute.xlu1 %599  ;;  %3556 = vmatpush1.bf16.msra.mxu1 %v3555_v0  ;;  %v598_v7 = vpop.permute.xlu0 %597 }
  0xd5   : > { %617 = vst.msk [vmem:[#allocation3 + $0x178] sm:$0xff] %vm268_vm0, %v600_v6  ;;  %v605_v10 = vsel %vm601_vm8, %v598_v7, %v600_v6  ;;  %3557 = vmatprep.subr.bf16.mxu1 %v3962_v9  ;;  %v4275_v6 = vld [vmem:[%s5369_s5 + $0x8] sm:$0xff] }
  0xd6   : > { %v3531_v13 = vpack.c.bf16 %v605_v10, %v603_v8 }
  0xd8   : > { %v596_v14 = vpop.permute.xlu1 %595  ;;  %3559 = vmatpush1.bf16.msra.mxu1 %v3558_v12  ;;  %v590_v15 = vpop.permute.xlu0 %589  ;;  %3532 = vmatprep.subr.bf16.mxu0 %v3531_v13  ;;  %v703_v5 = vld [vmem:[#allocation3 + $0x160] sm:$0xff]  ;;  %v4307_v12 = vld [vmem:[%s5369_s5 + $0x18] sm:$0xff] }
  0xd9   : > { %v604_v16 = vsel %vm601_vm8, %v596_v14, %v598_v7  ;;  %v602_v17 = vsel %vm601_vm8, %v590_v15, %v592_v62  ;;  %3560 = vmatprep.subr.bf16.mxu1 %v3962_v9  ;;  %v4259_v62 = vld [vmem:[%s5369_s5] sm:$0xff] }
  0xda   : > { %v3533_v18 = vpack.c.bf16 %v604_v16, %v602_v17  ;;  %v4327_v17 = vld [vmem:[%s5369_s5 + $0x20] sm:$0xff] }
  0xdc   : > { %v635_v19 = vpop.permute.xlu1 %634  ;;  %v633_v4 = vpop.permute.xlu0 %632  ;;  %v706_v20 = vld [vmem:[#allocation3 + $0x178] sm:$0xff]  ;;  %3534 = vmatpush1.bf16.msra.mxu0 %v3533_v18 }
  0xdd   : > { %655 = vst.msk [vmem:[#allocation3 + $0x190] sm:$0xff] %vm268_vm0, %v635_v19  ;;  %v3561_v21 = vpack.c.bf16 %v706_v20, %v703_v5  ;;  %v644_v24 = vsel %vm642_vm9, %v633_v4, %v635_v19  ;;  %v3469_v19 = vld [vmem:[%s5365_s1 + $0x28] sm:$0xff]  ;;  %v3472_v5 = vld [vmem:[%s5366_s2 + $0x10] sm:$0xff] }
  0xdf   : > { %3562 = vmatpush1.bf16.msra.mxu1 %v3561_v21 }
  0xe0   : > { %v641_v22 = vpop.permute.xlu1 %640  ;;  %v639_v23 = vpop.permute.xlu0 %638  ;;  %3563 = vmatprep.subr.bf16.mxu1 %v3962_v9 }
  0xe1   : > { %658 = vst.msk [vmem:[#allocation3 + $0x1a8] sm:$0xff] %vm268_vm0, %v641_v22  ;;  %v646_v25 = vsel %vm642_vm9, %v639_v23, %v641_v22 }
  0xe2   : > { %v3535_v1 = vpack.c.bf16 %v646_v25, %v644_v24 }
  0xe4   : > { %v637_v2 = vpop.permute.xlu1 %636  ;;  %v631_v26 = vpop.permute.xlu0 %630  ;;  %3536 = vmatprep.subr.bf16.mxu0 %v3535_v1  ;;  %v709_v30 = vld [vmem:[#allocation3 + $0x190] sm:$0xff] }
  0xe5   : > { %v645_v27 = vsel %vm642_vm9, %v637_v2, %v639_v23  ;;  %v643_v28 = vsel %vm642_vm9, %v631_v26, %v633_v4  ;;  %v3473_v4 = vld [vmem:[%s5366_s2 + $0x18] sm:$0xff] }
  0xe6   : > { %v3537_v29 = vpack.c.bf16 %v645_v27, %v643_v28 }
  0xe8   : > { %v712_v31 = vld [vmem:[#allocation3 + $0x1a8] sm:$0xff]  ;;  %3538 = vmatpush1.bf16.msra.mxu0 %v3537_v29 }
  0xe9   : > { %v3564_v33 = vpack.c.bf16 %v712_v31, %v709_v30 }
  0xeb   : > { %3565 = vmatpush1.bf16.msra.mxu1 %v3564_v33  ;;  %801 = vmatmul.mubr.f32.vlgmr.msra.gmra.mrb[0].mxu0 %v713_v32 }
  0xec   : > { %3465 = vmatprep.mubr.msk.f32.mxu0 %vm729_vm1, %v716_v34  ;;  %3602 = vmatprep.subr.bf16.mxu1 %v3962_v9 }
  0xee   : > { %878 = vmatmul.mubr.f32.vlgmr.msra.gmra.mrb[0].mxu1 %v713_v32 }
  0xef   : > { %3467 = vmatprep.mubr.msk.f32.mxu1 %vm729_vm1, %v716_v34  ;;  %807 = vmatmul.mubr.f32.gmra.mrb[2].mxu0 %v715_v35 }
  0xf0   : > { %3474 = vmatprep.mubr.msk.f32.mxu0 %vm729_vm1, %v3469_v19 }
  0xf2   : > { %883 = vmatmul.mubr.f32.gmra.mrb[2].mxu1 %v715_v35 }
  0xf3   : > { %3476 = vmatprep.mubr.msk.f32.mxu1 %vm729_vm1, %v3469_v19 }
  0xf5   : > { %v722_v39 = vpop.permute.xlu0 %721  ;;  %v727_v46 = vpop.permute.xlu1 %726 }
  0xf9   : > { %v3864_v20 = vpop.permute.xlu1 %3863  ;;  %v4387_v21 = vpop.permute.xlu0 %3868 }
  0xfd   : > { %v4389_v22 = vpop.permute.xlu1 %3873  ;;  %v4391_v23 = vpop.permute.xlu0 %3878 }
 0x1be   : > { %v802_v36 = vpop.f32.mrb[0].mxu0 }
 0x1bf   : > { %v804_v37 = vpop.f32.mrb[1].mxu0  ;;  %v803_v56 = vadd.f32 %v802_v36, %v722_v39 }
 0x1c0   : > { %v805_v61 = vadd.f32 %v804_v37, %v722_v39 }
 0x1c1   : > { %v879_v38 = vpop.f32.mrb[0].mxu1  ;;  %v888_v58 = vmul.f32 0.1, %v803_v56 }
 0x1c2   : > { %v880_v40 = vadd.f32 %v879_v38, %v722_v39  ;;  %v881_v41 = vpop.f32.mrb[1].mxu1  ;;  %v808_v42 = vpop.f32.mrb[2].mxu0  ;;  %v889_v0 = vmul.f32 0.1, %v805_v61 }
 0x1c3   : > { %v810_v43 = vpop.f32.mrb[3].mxu0  ;;  %v894_v60 = vmax.f32 %v803_v56, %v888_v58  ;;  %v809_v8 = vadd.f32 %v808_v42, %v727_v46  ;;  %v3866_v56 = vunpack.i.h.bf16 %v3864_v20 }
 0x1c4   : > { %v890_v44 = vmul.f32 0.1, %v880_v40  ;;  %v895_v3 = vmax.f32 %v805_v61, %v889_v0  ;;  %v811_v14 = vadd.f32 %v810_v43, %v727_v46 }
 0x1c5   : > { %v884_v47 = vpop.f32.mrb[2].mxu1  ;;  %v4266_v63 = vmul.f32 %v894_v60, %v4259_v62  ;;  %v891_v10 = vmul.f32 0.1, %v809_v8 }
 0x1c6   : > { %v896_v48 = vmax.f32 %v880_v40, %v890_v44  ;;  %v885_v49 = vadd.f32 %v884_v47, %v727_v46  ;;  %v886_v50 = vpop.f32.mrb[3].mxu1  ;;  %v4282_v7 = vmul.f32 %v895_v3, %v4275_v6  ;;  %v892_v15 = vmul.f32 0.1, %v811_v14 }
 0x1c7   : > { %v897_v11 = vmax.f32 %v809_v8, %v891_v10 }
 0x1c8   : > { %v902_v51 = vmul.f32 %v896_v48, %v4229_v45  ;;  %v893_v52 = vmul.f32 0.1, %v885_v49  ;;  %v898_v16 = vmax.f32 %v811_v14, %v892_v15 }
 0x1c9   : > { %v4314_v13 = vmul.f32 %v897_v11, %v4307_v12  ;;  %v3871_v11 = vunpack.i.h.bf16 %v4387_v21 }
 0x1ca   : > { %908 = vst.msk [vmem:[#allocation2 + $0x18] sm:$0xff] %vm268_vm0, %v902_v51  ;;  %v899_v54 = vmax.f32 %v885_v49, %v893_v52  ;;  %v4334_v18 = vmul.f32 %v898_v16, %v4327_v17 }
 0x1cc   : > { %v905_v55 = vmul.f32 %v899_v54, %v4235_v53 }
 0x1ce   : > { %911 = vst.msk [vmem:[#allocation2 + $0x38] sm:$0xff] %vm268_vm0, %v905_v55 }
 0x1d1   : > { %v4240_v57 = vld [vmem:[#allocation2 + $0x18] sm:$0xff] }
 0x1d2   : > { %984 = vrot.lane.b32.xlu1 %v4240_v57, %s3959_s23  ;;  %934 = vrot.lane.b32.xlu0 %v4240_v57, %s3960_s24  ;;  %1120 = vst.msk [vmem:[#allocation3 + $0xd0] sm:$0xff] %vm268_vm0, %v4240_v57 }
 0x1d5   : > { %v4248_v59 = vld [vmem:[#allocation2 + $0x38] sm:$0xff] }
 0x1d6   : > { %1034 = vrot.lane.b32.xlu1 %v4240_v57, %s3961_s29  ;;  %1140 = vrot.lane.b32.xlu0 %v4240_v57, %s3964_s7  ;;  %1123 = vst.msk [vmem:[#allocation3 + $0xe8] sm:$0xff] %vm268_vm0, %v4248_v59 }
 0x1da   : > { %1084 = vrot.lane.b32.xlu1 %v4240_v57, %s3963_s30  ;;  %1180 = vrot.lane.b32.xlu0 %v4240_v57, %s3965_s8 }
 0x1de   : > { %980 = vrot.lane.b32.xlu0 %v4266_v63, %s3959_s23  ;;  %930 = vrot.lane.b32.xlu1 %v4266_v63, %s3960_s24 }
 0x1e2   : > { %1080 = vrot.lane.b32.xlu0 %v4266_v63, %s3963_s30  ;;  %1030 = vrot.lane.b32.xlu1 %v4266_v63, %s3961_s29 }
 0x1e6   : > { %932 = vrot.lane.b32.xlu0 %v4282_v7, %s3960_s24  ;;  %1136 = vrot.lane.b32.xlu1 %v4266_v63, %s3964_s7 }
 0x1ea   : > { %1032 = vrot.lane.b32.xlu0 %v4282_v7, %s3961_s29  ;;  %982 = vrot.lane.b32.xlu1 %v4282_v7, %s3959_s23 }
 0x1ee   : > { %992 = vrot.lane.b32.xlu0 %v4248_v59, %s3959_s23  ;;  %1082 = vrot.lane.b32.xlu1 %v4282_v7, %s3963_s30 }
 0x1f2   : > { %1042 = vrot.lane.b32.xlu0 %v4248_v59, %s3961_s29  ;;  %1138 = vrot.lane.b32.xlu1 %v4282_v7, %s3964_s7 }
 0x1f6   : > { %1146 = vrot.lane.b32.xlu0 %v4248_v59, %s3964_s7  ;;  %1178 = vrot.lane.b32.xlu1 %v4282_v7, %s3965_s8 }
 0x1fa   : > { %1092 = vrot.lane.b32.xlu0 %v4248_v59, %s3963_s30  ;;  %942 = vrot.lane.b32.xlu1 %v4248_v59, %s3960_s24 }
 0x1fe   : > { %988 = vrot.lane.b32.xlu0 %v4314_v13, %s3959_s23  ;;  %938 = vrot.lane.b32.xlu1 %v4314_v13, %s3960_s24 }
 0x202   : > { %1088 = vrot.lane.b32.xlu0 %v4314_v13, %s3963_s30  ;;  %1038 = vrot.lane.b32.xlu1 %v4314_v13, %s3961_s29 }
 0x206   : > { %1142 = vrot.lane.b32.xlu0 %v4314_v13, %s3964_s7  ;;  %1176 = vrot.lane.b32.xlu1 %v4266_v63, %s3965_s8 }
 0x20a   : > { %940 = vrot.lane.b32.xlu0 %v4334_v18, %s3960_s24  ;;  %990 = vrot.lane.b32.xlu1 %v4334_v18, %s3959_s23 }
 0x20e   : > { %1186 = vrot.lane.b32.xlu0 %v4248_v59, %s3965_s8  ;;  %1218 = vrot.lane.b32.xlu1 %v4282_v7, %s3966_s9 }
 0x212   : > { %1040 = vrot.lane.b32.xlu0 %v4334_v18, %s3961_s29  ;;  %1216 = vrot.lane.b32.xlu1 %v4266_v63, %s3966_s9 }
 0x216   : > { %1182 = vrot.lane.b32.xlu0 %v4314_v13, %s3965_s8  ;;  %1090 = vrot.lane.b32.xlu1 %v4334_v18, %s3963_s30 }
 0x21a   : > { %1220 = vrot.lane.b32.xlu0 %v4240_v57, %s3966_s9  ;;  %1258 = vrot.lane.b32.xlu1 %v4282_v7, %s3967_s12 }
 0x21e   : > { %1226 = vrot.lane.b32.xlu0 %v4248_v59, %s3966_s9  ;;  %1144 = vrot.lane.b32.xlu1 %v4334_v18, %s3964_s7 }
 0x222   : > { %1222 = vrot.lane.b32.xlu0 %v4314_v13, %s3966_s9  ;;  %1184 = vrot.lane.b32.xlu1 %v4334_v18, %s3965_s8 }
 0x226   : > { %1260 = vrot.lane.b32.xlu0 %v4240_v57, %s3967_s12  ;;  %1224 = vrot.lane.b32.xlu1 %v4334_v18, %s3966_s9  ;;  %v3865_v57 = vunpack.i.l.bf16 %v3864_v20 }
 0x22a   : > { %1266 = vrot.lane.b32.xlu0 %v4248_v59, %s3967_s12  ;;  %1264 = vrot.lane.b32.xlu1 %v4334_v18, %s3967_s12 }
 0x22e   : > { %1262 = vrot.lane.b32.xlu0 %v4314_v13, %s3967_s12  ;;  %1256 = vrot.lane.b32.xlu1 %v4266_v63, %s3967_s12 }
 0x232   : > { %1353 = vperm.xlu0 %3860, %v3473_v4   ;;  %1348 = vperm.xlu1 %3861, %v3472_v5   ;;  %v3870_v4 = vunpack.i.l.bf16 %v4387_v21  ;;  %v3875_v21 = vunpack.i.l.bf16 %v4389_v22 }
 0x244   : > { %v985_v24 = vpop.permute.xlu1 %984  ;;  %v935_v25 = vpop.permute.xlu0 %934 }
 0x248   : > { %v1035_v1 = vpop.permute.xlu1 %1034  ;;  %v4393_v2 = vpop.permute.xlu0 %1140 }
 0x249   : > { %1160 = vst.msk [vmem:[#allocation3 + $0x100] sm:$0xff] %vm268_vm0, %v4393_v2 }
 0x24c   : > { %v1085_v26 = vpop.permute.xlu1 %1084  ;;  %v4397_v27 = vpop.permute.xlu0 %1180 }
 0x24d   : > { %1200 = vst.msk [vmem:[#allocation3 + $0x130] sm:$0xff] %vm268_vm0, %v4397_v27 }
 0x250   : > { %v981_v28 = vpop.permute.xlu0 %980  ;;  %v931_v29 = vpop.permute.xlu1 %930 }
 0x251   : > { %v944_v14 = vsel %vm311_vm2, %v3865_v57, %v931_v29 }
 0x254   : > { %v4401_v30 = vpop.permute.xlu0 %1080  ;;  %v4403_v31 = vpop.permute.xlu1 %1030 }
 0x258   : > { %v933_v32 = vpop.permute.xlu0 %932  ;;  %v4405_v33 = vpop.permute.xlu1 %1136 }
 0x259   : > { %v946_v34 = vsel %vm311_vm2, %v933_v32, %v935_v25  ;;  %v945_v58 = vsel %vm311_vm2, %v931_v29, %v933_v32 }
 0x25a   : > { %958 = vst.msk [vmem:[#allocation3 + $0x10] sm:$0xff] %vm268_vm0, %v946_v34 }
 0x25c   : > { %v1033_v35 = vpop.permute.xlu0 %1032  ;;  %v983_v36 = vpop.permute.xlu1 %982 }
 0x25d   : > { %v1046_v37 = vsel %vm413_vm4, %v1033_v35, %v1035_v1  ;;  %v996_v38 = vsel %vm362_vm3, %v983_v36, %v985_v24  ;;  %v995_v16 = vsel %vm362_vm3, %v981_v28, %v983_v36  ;;  %v3876_v1 = vunpack.i.h.bf16 %v4389_v22 }
 0x25e   : > { %1058 = vst.msk [vmem:[#allocation3 + $0x70] sm:$0xff] %vm268_vm0, %v1046_v37  ;;  %1008 = vst.msk [vmem:[#allocation3 + $0x40] sm:$0xff] %vm268_vm0, %v996_v38  ;;  %v1045_v37 = vsel %vm413_vm4, %v4403_v31, %v1033_v35  ;;  %v1044_v22 = vsel %vm413_vm4, %v3875_v21, %v4403_v31  ;;  %v3880_v35 = vunpack.i.l.bf16 %v4391_v23  ;;  %v1310_v21 = vld [vmem:[#allocation3 + $0xd0] sm:$0xff] }
 0x260   : > { %v993_v39 = vpop.permute.xlu0 %992  ;;  %v4413_v40 = vpop.permute.xlu1 %1082 }
 0x261   : > { %v1096_v41 = vsel %vm464_vm5, %v4413_v40, %v1085_v26  ;;  %v994_v26 = vsel %vm362_vm3, %v3870_v4, %v981_v28  ;;  %v3881_v28 = vunpack.i.h.bf16 %v4391_v23  ;;  %v1094_v23 = vsel %vm464_vm5, %v3880_v35, %v4401_v30  ;;  %v1322_v35 = vld [vmem:[#allocation3 + $0x130] sm:$0xff] }
 0x262   : > { %1108 = vst.msk [vmem:[#allocation3 + $0xa0] sm:$0xff] %vm268_vm0, %v1096_v41  ;;  %v1286_v41 = vld [vmem:[#allocation3 + $0x10] sm:$0xff] }
 0x264   : > { %v1043_v42 = vpop.permute.xlu0 %1042  ;;  %v4418_v43 = vpop.permute.xlu1 %1138 }
 0x268   : > { %v4420_v44 = vpop.permute.xlu0 %1146  ;;  %v4422_v46 = vpop.permute.xlu1 %1178 }
 0x269   : > { %1163 = vst.msk [vmem:[#allocation3 + $0x118] sm:$0xff] %vm268_vm0, %v4420_v44 }
 0x26c   : > { %v4426_v47 = vpop.permute.xlu0 %1092  ;;  %v943_v48 = vpop.permute.xlu1 %942 }
 0x270   : > { %v989_v49 = vpop.permute.xlu0 %988  ;;  %v939_v50 = vpop.permute.xlu1 %938 }
 0x271   : > { %v947_v59 = vsel %vm311_vm2, %v3866_v56, %v939_v50  ;;  %v997_v5 = vsel %vm362_vm3, %v3871_v11, %v989_v49 }
 0x272   : > { %v3568_v19 = vpack.c.bf16 %v947_v59, %v944_v14  ;;  %v3572_v29 = vpack.c.bf16 %v997_v5, %v994_v26  ;;  %v1095_v59 = vsel %vm464_vm5, %v4401_v30, %v4413_v40  ;;  %v3584_v14 = vpack.c.bf16 %v4314_v13, %v4266_v63  ;;  %v1304_v63 = vld [vmem:[#allocation3 + $0xa0] sm:$0xff] }
 0x274   : > { %v1089_v51 = vpop.permute.xlu0 %1088  ;;  %v1039_v52 = vpop.permute.xlu1 %1038 }
 0x275   : > { %v1047_v32 = vsel %vm413_vm4, %v3876_v1, %v1039_v52  ;;  %v1313_v1 = vld [vmem:[#allocation3 + $0xe8] sm:$0xff] }
 0x276   : > { %v3576_v57 = vpack.c.bf16 %v1047_v32, %v1044_v22  ;;  %v3615_v32 = vpack.c.bf16 %v1313_v1, %v1310_v21 }
 0x278   : > { %v4428_v54 = vpop.permute.xlu0 %1142  ;;  %v4430_v55 = vpop.permute.xlu1 %1176 }
 0x27c   : > { %v941_v60 = vpop.permute.xlu0 %940  ;;  %v991_v61 = vpop.permute.xlu1 %990 }
 0x27d   : > { %v948_v0 = vsel %vm311_vm2, %v939_v50, %v941_v60  ;;  %v949_v3 = vsel %vm311_vm2, %v941_v60, %v943_v48  ;;  %v998_v8 = vsel %vm362_vm3, %v989_v49, %v991_v61  ;;  %v999_v10 = vsel %vm362_vm3, %v991_v61, %v993_v39  ;;  %v1292_v61 = vld [vmem:[#allocation3 + $0x40] sm:$0xff] }
 0x27e   : > { %961 = vst.msk [vmem:[#allocation3 + $0x28] sm:$0xff] %vm268_vm0, %v949_v3  ;;  %1011 = vst.msk [vmem:[#allocation3 + $0x58] sm:$0xff] %vm268_vm0, %v999_v10  ;;  %v3566_v15 = vpack.c.bf16 %v948_v0, %v945_v58  ;;  %v3570_v25 = vpack.c.bf16 %v998_v8, %v995_v16 }
 0x280   : > { %v4445_v20 = vpop.permute.xlu0 %1186  ;;  %v4447_v24 = vpop.permute.xlu1 %1218  ;;  %3567 = vmatprep.subr.bf16.mxu0 %v3566_v15  ;;  %v1148_v15 = vsel %vm519_vm6, %v4405_v33, %v4418_v43 }
 0x281   : > { %1203 = vst.msk [vmem:[#allocation3 + $0x148] sm:$0xff] %vm268_vm0, %v4445_v20  ;;  %3569 = vmatpush1.bf16.msra.mxu0 %v3568_v19 }
 0x282   : > { %3571 = vmatprep.subr.bf16.mxu0 %v3570_v25 }
 0x284   : > { %v1041_v34 = vpop.permute.xlu0 %1040  ;;  %v4455_v36 = vpop.permute.xlu1 %1216 }
 0x285   : > { %v1048_v38 = vsel %vm413_vm4, %v1039_v52, %v1041_v34  ;;  %v1049_v39 = vsel %vm413_vm4, %v1041_v34, %v1043_v42  ;;  %v1289_v48 = vld [vmem:[#allocation3 + $0x28] sm:$0xff]  ;;  %3573 = vmatpush1.bf16.msra.mxu0 %v3572_v29  ;;  %v1295_v56 = vld [vmem:[#allocation3 + $0x58] sm:$0xff]  ;;  %v1097_v52 = vsel %vm464_vm5, %v3881_v28, %v1089_v51 }
 0x286   : > { %1061 = vst.msk [vmem:[#allocation3 + $0x88] sm:$0xff] %vm268_vm0, %v1049_v39  ;;  %v3603_v49 = vpack.c.bf16 %v1289_v48, %v1286_v41  ;;  %v3574_v50 = vpack.c.bf16 %v1048_v38, %v1045_v37  ;;  %v3606_v0 = vpack.c.bf16 %v1295_v56, %v1292_v61  ;;  %v3580_v8 = vpack.c.bf16 %v1097_v52, %v1094_v23  ;;  %v1319_v37 = vld [vmem:[#allocation3 + $0x118] sm:$0xff]  ;;  %v1316_v48 = vld [vmem:[#allocation3 + $0x100] sm:$0xff] }
 0x287   : > { %v1228_v38 = vsel %vm601_vm8, %v4455_v36, %v4447_v24  ;;  %v3618_v28 = vpack.c.bf16 %v1319_v37, %v1316_v48 }
 0x288   : > { %v1183_v58 = vpop.permute.xlu0 %1182  ;;  %3604 = vmatpush1.bf16.msra.mxu1 %v3603_v49  ;;  %v1091_v42 = vpop.permute.xlu1 %1090  ;;  %3575 = vmatprep.subr.bf16.mxu0 %v3574_v50  ;;  %v1325_v49 = vld [vmem:[#allocation3 + $0x148] sm:$0xff] }
 0x289   : > { %v1098_v31 = vsel %vm464_vm5, %v1089_v51, %v1091_v42  ;;  %v1099_v60 = vsel %vm464_vm5, %v1091_v42, %v4426_v47  ;;  %3605 = vmatprep.subr.bf16.mxu1 %v3962_v9  ;;  %3577 = vmatpush1.bf16.msra.mxu0 %v3576_v57  ;;  %v3582_v47 = vpack.c.bf16 %v4334_v18, %v4282_v7  ;;  %v1298_v51 = vld [vmem:[#allocation3 + $0x70] sm:$0xff] }
 0x28a   : > { %1111 = vst.msk [vmem:[#allocation3 + $0xb8] sm:$0xff] %vm268_vm0, %v1099_v60  ;;  %v3578_v3 = vpack.c.bf16 %v1098_v31, %v1095_v59  ;;  %v1149_v7 = vsel %vm519_vm6, %v4418_v43, %v4393_v2  ;;  %v1189_v2 = vsel %vm560_vm7, %v4422_v46, %v4397_v27  ;;  %v3621_v52 = vpack.c.bf16 %v1325_v49, %v1322_v35 }
 0x28c   : > { %v1221_v10 = vpop.permute.xlu0 %1220  ;;  %3607 = vmatpush1.bf16.msra.mxu1 %v3606_v0  ;;  %v4477_v40 = vpop.permute.xlu1 %1258  ;;  %3579 = vmatprep.subr.bf16.mxu0 %v3578_v3 }
 0x28d   : > { %1240 = vst.msk [vmem:[#allocation3 + $0x160] sm:$0xff] %vm268_vm0, %v1221_v10  ;;  %3608 = vmatprep.subr.bf16.mxu1 %v3962_v9  ;;  %v1301_v11 = vld [vmem:[#allocation3 + $0x88] sm:$0xff]  ;;  %3581 = vmatpush1.bf16.msra.mxu0 %v3580_v8 }
 0x28e   : > { %v3609_v30 = vpack.c.bf16 %v1301_v11, %v1298_v51  ;;  %3583 = vmatprep.subr.bf16.mxu0 %v3582_v47  ;;  %v3468_v47 = vld [vmem:[%s5365_s1 + $0x20] sm:$0xff]  ;;  %v3470_v11 = vld [vmem:[%s5365_s1 + $0x30] sm:$0xff] }
 0x290   : > { %v1227_v16 = vpop.permute.xlu0 %1226  ;;  %3610 = vmatpush1.bf16.msra.mxu1 %v3609_v30  ;;  %v1145_v19 = vpop.permute.xlu1 %1144  ;;  %v3942_v30 = vld [vmem:[#allocation2] sm:$0xff] }
 0x291   : > { %1243 = vst.msk [vmem:[#allocation3 + $0x178] sm:$0xff] %vm268_vm0, %v1227_v16  ;;  %v1150_v18 = vsel %vm519_vm6, %v4428_v54, %v1145_v19  ;;  %v1151_v4 = vsel %vm519_vm6, %v1145_v19, %v4420_v44  ;;  %3611 = vmatprep.subr.bf16.mxu1 %v3962_v9  ;;  %v1307_v13 = vld [vmem:[#allocation3 + $0xb8] sm:$0xff]  ;;  %3585 = vmatpush1.bf16.msra.mxu0 %v3584_v14 }
 0x292   : > { %v3612_v33 = vpack.c.bf16 %v1307_v13, %v1304_v63  ;;  %v3586_v5 = vpack.c.bf16 %v1151_v4, %v1149_v7  ;;  %v3588_v25 = vpack.c.bf16 %v1150_v18, %v1148_v15  ;;  %v1188_v44 = vsel %vm560_vm7, %v4430_v55, %v4422_v46 }
 0x293   : > { %v1229_v55 = vsel %vm601_vm8, %v4447_v24, %v1221_v10  ;;  %v4538_v14 = vpack.i.bf16 %v3942_v30, %v3942_v30 }
 0x294   : > { %v1223_v43 = vpop.permute.xlu0 %1222  ;;  %3613 = vmatpush1.bf16.msra.mxu1 %v3612_v33  ;;  %v1185_v26 = vpop.permute.xlu1 %1184  ;;  %3587 = vmatprep.subr.bf16.mxu0 %v3586_v5  ;;  %v1328_v23 = vld [vmem:[#allocation3 + $0x160] sm:$0xff] }
 0x295   : > { %v1190_v54 = vsel %vm560_vm7, %v1183_v58, %v1185_v26  ;;  %v1191_v29 = vsel %vm560_vm7, %v1185_v26, %v4445_v20  ;;  %3614 = vmatprep.subr.bf16.mxu1 %v3962_v9  ;;  %3589 = vmatpush1.bf16.msra.mxu0 %v3588_v25 }
 0x296   : > { %v3590_v34 = vpack.c.bf16 %v1191_v29, %v1189_v2  ;;  %v3592_v27 = vpack.c.bf16 %v1190_v54, %v1188_v44  ;;  %3888 = vrot.lane.b32.xlu0 %v4538_v14, %s3959_s23  ;;  %3883 = vrot.lane.b32.xlu1 %v4538_v14, %s3960_s24 }
 0x298   : > { %v1261_v39 = vpop.permute.xlu0 %1260  ;;  %3616 = vmatpush1.bf16.msra.mxu1 %v3615_v32  ;;  %v1225_v46 = vpop.permute.xlu1 %1224  ;;  %3591 = vmatprep.subr.bf16.mxu0 %v3590_v34  ;;  %v1331_v42 = vld [vmem:[#allocation3 + $0x178] sm:$0xff] }
 0x299   : > { %1280 = vst.msk [vmem:[#allocation3 + $0x190] sm:$0xff] %vm268_vm0, %v1261_v39  ;;  %v1230_v20 = vsel %vm601_vm8, %v1223_v43, %v1225_v46  ;;  %v1231_v41 = vsel %vm601_vm8, %v1225_v46, %v1227_v16  ;;  %3617 = vmatprep.subr.bf16.mxu1 %v3962_v9  ;;  %3593 = vmatpush1.bf16.msra.mxu0 %v3592_v27 }
 0x29a   : > { %v3594_v22 = vpack.c.bf16 %v1231_v41, %v1229_v55  ;;  %v3596_v36 = vpack.c.bf16 %v1230_v20, %v1228_v38  ;;  %v1269_v24 = vsel %vm642_vm9, %v4477_v40, %v1261_v39  ;;  %v3624_v0 = vpack.c.bf16 %v1331_v42, %v1328_v23  ;;  %3898 = vrot.lane.b32.xlu0 %v4538_v14, %s3963_s30 }
 0x29b   : > { %3893 = vrot.lane.b32.xlu1 %v4538_v14, %s3961_s29 }
 0x29c   : > { %v1267_v50 = vpop.permute.xlu0 %1266  ;;  %3619 = vmatpush1.bf16.msra.mxu1 %v3618_v28  ;;  %v1265_v56 = vpop.permute.xlu1 %1264  ;;  %3595 = vmatprep.subr.bf16.mxu0 %v3594_v22  ;;  %v3483_v22 = vld [vmem:[%s5366_s2 + $0x28] sm:$0xff] }
 0x29d   : > { %1283 = vst.msk [vmem:[#allocation3 + $0x1a8] sm:$0xff] %vm268_vm0, %v1267_v50  ;;  %v1271_v57 = vsel %vm642_vm9, %v1265_v56, %v1267_v50  ;;  %3620 = vmatprep.subr.bf16.mxu1 %v3962_v9  ;;  %3597 = vmatpush1.bf16.msra.mxu0 %v3596_v36  ;;  %v3482_v36 = vld [vmem:[%s5366_s2 + $0x20] sm:$0xff] }
 0x29e   : > { %v3598_v58 = vpack.c.bf16 %v1271_v57, %v1269_v24 }
 0x2a0   : > { %v1263_v59 = vpop.permute.xlu0 %1262  ;;  %3622 = vmatpush1.bf16.msra.mxu1 %v3621_v52  ;;  %v1257_v31 = vpop.permute.xlu1 %1256  ;;  %3599 = vmatprep.subr.bf16.mxu0 %v3598_v58  ;;  %v1334_v8 = vld [vmem:[#allocation3 + $0x190] sm:$0xff] }
 0x2a1   : > { %v1270_v60 = vsel %vm642_vm9, %v1263_v59, %v1265_v56  ;;  %v1268_v61 = vsel %vm642_vm9, %v1257_v31, %v4477_v40  ;;  %3623 = vmatprep.subr.bf16.mxu1 %v3962_v9  ;;  %v3471_v40 = vld [vmem:[%s5365_s1 + $0x38] sm:$0xff] }
 0x2a2   : > { %v3600_v3 = vpack.c.bf16 %v1270_v60, %v1268_v61 }
 0x2a4   : > { %3625 = vmatpush1.bf16.msra.mxu1 %v3624_v0  ;;  %v1337_v10 = vld [vmem:[#allocation3 + $0x1a8] sm:$0xff]  ;;  %3601 = vmatpush1.bf16.msra.mxu0 %v3600_v3 }
 0x2a5   : > { %3626 = vmatprep.subr.bf16.mxu1 %v3962_v9  ;;  %v3627_v51 = vpack.c.bf16 %v1337_v10, %v1334_v8 }
 0x2a7   : > { %1427 = vmatmul.mubr.f32.vlgmr.msra.gmra.mrb[4].mxu0 %v3468_v47 }
 0x2a8   : > { %3628 = vmatpush1.bf16.msra.mxu1 %v3627_v51  ;;  %3475 = vmatprep.mubr.msk.f32.mxu0 %vm729_vm1, %v3471_v40 }
 0x2a9   : > { %3665 = vmatprep.subr.bf16.mxu1 %v3962_v9 }
 0x2ab   : > { %1504 = vmatmul.mubr.f32.vlgmr.msra.gmra.mrb[4].mxu1 %v3468_v47  ;;  %1433 = vmatmul.mubr.f32.gmra.mrb[6].mxu0 %v3470_v11 }
 0x2ac   : > { %3477 = vmatprep.mubr.msk.f32.mxu1 %vm729_vm1, %v3471_v40 }
 0x2af   : > { %1509 = vmatmul.mubr.f32.gmra.mrb[6].mxu1 %v3470_v11 }
 0x2b1   : > { %v1349_v19 = vpop.permute.xlu1 %1348  ;;  %v1354_v5 = vpop.permute.xlu0 %1353 }
 0x308   : > { %v4661_v49 = vpop.permute.xlu0 %3888  ;;  %v3884_v50 = vpop.permute.xlu1 %3883 }
 0x30c   : > { %v4667_v56 = vpop.permute.xlu0 %3898 }
 0x30d   : > { %v4669_v24 = vpop.permute.xlu1 %3893 }
 0x37a   : > { %v1428_v15 = vpop.f32.mrb[4].mxu0 }
 0x37b   : > { %v1430_v16 = vpop.f32.mrb[5].mxu0  ;;  %v1429_v21 = vadd.f32 %v1428_v15, %v1349_v19 }
 0x37d   : > { %v1514_v34 = vmul.f32 0.1, %v1429_v21 }
 0x37e   : > { %v1505_v7 = vpop.f32.mrb[4].mxu1  ;;  %v1434_v18 = vpop.f32.mrb[6].mxu0 }
 0x37f   : > { %v1506_v4 = vadd.f32 %v1505_v7, %v1349_v19  ;;  %v1507_v63 = vpop.f32.mrb[5].mxu1  ;;  %v1436_v13 = vpop.f32.mrb[7].mxu0 }
 0x380   : > { %v1437_v41 = vadd.f32 %v1436_v13, %v1354_v5 }
 0x381   : > { %v1516_v33 = vmul.f32 0.1, %v1506_v4 }
 0x382   : > { %v1510_v25 = vpop.f32.mrb[6].mxu1  ;;  %v1518_v48 = vmul.f32 0.1, %v1437_v41 }
 0x383   : > { %v1522_v1 = vmax.f32 %v1506_v4, %v1516_v33  ;;  %v1511_v2 = vadd.f32 %v1510_v25, %v1354_v5  ;;  %v1512_v43 = vpop.f32.mrb[7].mxu1 }
 0x384   : > { %v1524_v28 = vmax.f32 %v1437_v41, %v1518_v48  ;;  %v3885_v43 = vunpack.i.l.bf16 %v3884_v50 }
 0x385   : > { %v1528_v26 = vmul.f32 %v1522_v1, %v4229_v45  ;;  %v1519_v44 = vmul.f32 0.1, %v1511_v2  ;;  %v1520_v45 = vmax.f32 %v1429_v21, %v1514_v34 }
 0x387   : > { %1534 = vst.msk [vmem:[#allocation2 + $0x18] sm:$0xff] %vm268_vm0, %v1528_v26  ;;  %v1525_v54 = vmax.f32 %v1511_v2, %v1519_v44  ;;  %v4561_v37 = vmul.f32 %v1520_v45, %v4259_v62  ;;  %v1435_v62 = vadd.f32 %v1434_v18, %v1354_v5  ;;  %v3886_v2 = vunpack.i.h.bf16 %v3884_v50 }
 0x388   : > { %v3891_v45 = vunpack.i.h.bf16 %v4661_v49 }
 0x389   : > { %v1531_v29 = vmul.f32 %v1525_v54, %v4235_v53  ;;  %v1431_v53 = vadd.f32 %v1430_v16, %v1349_v19 }
 0x38b   : > { %1537 = vst.msk [vmem:[#allocation2 + $0x38] sm:$0xff] %vm268_vm0, %v1531_v29  ;;  %v1515_v38 = vmul.f32 0.1, %v1431_v53 }
 0x38d   : > { %v1521_v39 = vmax.f32 %v1431_v53, %v1515_v38 }
 0x38e   : > { %v1591_v32 = vld [vmem:[#allocation2 + $0x18] sm:$0xff] }
 0x38f   : > { %1610 = vrot.lane.b32.xlu0 %v1591_v32, %s3959_s23  ;;  %1560 = vrot.lane.b32.xlu1 %v1591_v32, %s3960_s24  ;;  %1746 = vst.msk [vmem:[#allocation3 + $0xd0] sm:$0xff] %vm268_vm0, %v1591_v32  ;;  %v4572_v46 = vmul.f32 %v1521_v39, %v4275_v6  ;;  %v1517_v6 = vmul.f32 0.1, %v1435_v62 }
 0x391   : > { %v1523_v55 = vmax.f32 %v1435_v62, %v1517_v6  ;;  %v3890_v6 = vunpack.i.l.bf16 %v4661_v49  ;;  %v3895_v49 = vunpack.i.l.bf16 %v4669_v24 }
 0x392   : > { %v1545_v27 = vld [vmem:[#allocation2 + $0x38] sm:$0xff] }
 0x393   : > { %1766 = vrot.lane.b32.xlu0 %v1591_v32, %s3964_s7  ;;  %1660 = vrot.lane.b32.xlu1 %v1591_v32, %s3961_s29  ;;  %1749 = vst.msk [vmem:[#allocation3 + $0xe8] sm:$0xff] %vm268_vm0, %v1545_v27  ;;  %v4594_v20 = vmul.f32 %v1523_v55, %v4307_v12  ;;  %v4609_v12 = vmul.f32 %v1524_v28, %v4327_v17  ;;  %v3479_v17 = vld [vmem:[%s5365_s1 + $0x48] sm:$0xff] }
 0x394   : > { %3486 = vmatprep.mubr.msk.f32.mxu1 %vm729_vm1, %v3479_v17  ;;  %3484 = vmatprep.mubr.msk.f32.mxu0 %vm729_vm1, %v3479_v17  ;;  %v3896_v17 = vunpack.i.h.bf16 %v4669_v24 }
 0x397   : > { %1806 = vrot.lane.b32.xlu0 %v1591_v32, %s3965_s8  ;;  %1710 = vrot.lane.b32.xlu1 %v1591_v32, %s3963_s30 }
 0x39b   : > { %1606 = vrot.lane.b32.xlu0 %v4561_v37, %s3959_s23  ;;  %1556 = vrot.lane.b32.xlu1 %v4561_v37, %s3960_s24 }
 0x39f   : > { %1706 = vrot.lane.b32.xlu0 %v4561_v37, %s3963_s30  ;;  %1656 = vrot.lane.b32.xlu1 %v4561_v37, %s3961_s29 }
 0x3a3   : > { %1558 = vrot.lane.b32.xlu0 %v4572_v46, %s3960_s24  ;;  %1762 = vrot.lane.b32.xlu1 %v4561_v37, %s3964_s7 }
 0x3a7   : > { %1658 = vrot.lane.b32.xlu0 %v4572_v46, %s3961_s29  ;;  %1608 = vrot.lane.b32.xlu1 %v4572_v46, %s3959_s23 }
 0x3ab   : > { %1568 = vrot.lane.b32.xlu0 %v1545_v27, %s3960_s24  ;;  %1708 = vrot.lane.b32.xlu1 %v4572_v46, %s3963_s30 }
 0x3af   : > { %1668 = vrot.lane.b32.xlu0 %v1545_v27, %s3961_s29  ;;  %1764 = vrot.lane.b32.xlu1 %v4572_v46, %s3964_s7 }
 0x3b3   : > { %1718 = vrot.lane.b32.xlu0 %v1545_v27, %s3963_s30  ;;  %1804 = vrot.lane.b32.xlu1 %v4572_v46, %s3965_s8 }
 0x3b7   : > { %1772 = vrot.lane.b32.xlu0 %v1545_v27, %s3964_s7  ;;  %1618 = vrot.lane.b32.xlu1 %v1545_v27, %s3959_s23 }
 0x3bb   : > { %1614 = vrot.lane.b32.xlu0 %v4594_v20, %s3959_s23  ;;  %1564 = vrot.lane.b32.xlu1 %v4594_v20, %s3960_s24 }
 0x3bf   : > { %1714 = vrot.lane.b32.xlu0 %v4594_v20, %s3963_s30  ;;  %1664 = vrot.lane.b32.xlu1 %v4594_v20, %s3961_s29 }
 0x3c3   : > { %1768 = vrot.lane.b32.xlu0 %v4594_v20, %s3964_s7  ;;  %1802 = vrot.lane.b32.xlu1 %v4561_v37, %s3965_s8 }
 0x3c7   : > { %1566 = vrot.lane.b32.xlu0 %v4609_v12, %s3960_s24  ;;  %1616 = vrot.lane.b32.xlu1 %v4609_v12, %s3959_s23 }
 0x3cb   : > { %1812 = vrot.lane.b32.xlu0 %v1545_v27, %s3965_s8  ;;  %1844 = vrot.lane.b32.xlu1 %v4572_v46, %s3966_s9 }
 0x3cf   : > { %1666 = vrot.lane.b32.xlu0 %v4609_v12, %s3961_s29  ;;  %1842 = vrot.lane.b32.xlu1 %v4561_v37, %s3966_s9 }
 0x3d3   : > { %1808 = vrot.lane.b32.xlu0 %v4594_v20, %s3965_s8  ;;  %1716 = vrot.lane.b32.xlu1 %v4609_v12, %s3963_s30 }
 0x3d7   : > { %1846 = vrot.lane.b32.xlu0 %v1591_v32, %s3966_s9  ;;  %1884 = vrot.lane.b32.xlu1 %v4572_v46, %s3967_s12 }
 0x3db   : > { %1852 = vrot.lane.b32.xlu0 %v1545_v27, %s3966_s9  ;;  %1770 = vrot.lane.b32.xlu1 %v4609_v12, %s3964_s7 }
 0x3df   : > { %1848 = vrot.lane.b32.xlu0 %v4594_v20, %s3966_s9  ;;  %1810 = vrot.lane.b32.xlu1 %v4609_v12, %s3965_s8 }
 0x3e3   : > { %1886 = vrot.lane.b32.xlu0 %v1591_v32, %s3967_s12  ;;  %1850 = vrot.lane.b32.xlu1 %v4609_v12, %s3966_s9 }
 0x3e7   : > { %1892 = vrot.lane.b32.xlu0 %v1545_v27, %s3967_s12  ;;  %1890 = vrot.lane.b32.xlu1 %v4609_v12, %s3967_s12 }
 0x3eb   : > { %1888 = vrot.lane.b32.xlu0 %v4594_v20, %s3967_s12  ;;  %1882 = vrot.lane.b32.xlu1 %v4561_v37, %s3967_s12 }
 0x3ef   : > { %1979 = vperm.xlu0 %3860, %v3483_v22   ;;  %1974 = vperm.xlu1 %3861, %v3482_v36  }
 0x3f3   : > { %3908 = vrot.lane.b32.xlu0 %v4538_v14, %s3959_s23  ;;  %3903 = vrot.lane.b32.xlu1 %v4538_v14, %s3960_s24 }
 0x3f7   : > { %3918 = vrot.lane.b32.xlu0 %v4538_v14, %s3963_s30  ;;  %3913 = vrot.lane.b32.xlu1 %v4538_v14, %s3961_s29 }
 0x401   : > { %v1611_v57 = vpop.permute.xlu0 %1610  ;;  %v1561_v35 = vpop.permute.xlu1 %1560 }
 0x405   : > { %v4671_v52 = vpop.permute.xlu0 %1766  ;;  %v1661_v58 = vpop.permute.xlu1 %1660 }
 0x406   : > { %1786 = vst.msk [vmem:[#allocation3 + $0x100] sm:$0xff] %vm268_vm0, %v4671_v52 }
 0x409   : > { %v4675_v42 = vpop.permute.xlu0 %1806  ;;  %v1711_v59 = vpop.permute.xlu1 %1710 }
 0x40a   : > { %1826 = vst.msk [vmem:[#allocation3 + $0x130] sm:$0xff] %vm268_vm0, %v4675_v42 }
 0x40d   : > { %v1607_v31 = vpop.permute.xlu0 %1606  ;;  %v1557_v60 = vpop.permute.xlu1 %1556 }
 0x40e   : > { %v1570_v53 = vsel %vm311_vm2, %v3885_v43, %v1557_v60  ;;  %v1620_v22 = vsel %vm362_vm3, %v3890_v6, %v1607_v31  ;;  %v1936_v6 = vld [vmem:[#allocation3 + $0xd0] sm:$0xff] }
 0x411   : > { %v4679_v61 = vpop.permute.xlu0 %1706  ;;  %v4681_v23 = vpop.permute.xlu1 %1656 }
 0x412   : > { %v1670_v24 = vsel %vm413_vm4, %v3895_v49, %v4681_v23 }
 0x415   : > { %v1559_v0 = vpop.permute.xlu0 %1558  ;;  %v4683_v3 = vpop.permute.xlu1 %1762 }
 0x416   : > { %v1572_v8 = vsel %vm311_vm2, %v1559_v0, %v1561_v35  ;;  %v1571_v26 = vsel %vm311_vm2, %v1557_v60, %v1559_v0 }
 0x417   : > { %1584 = vst.msk [vmem:[#allocation3 + $0x10] sm:$0xff] %vm268_vm0, %v1572_v8 }
 0x419   : > { %v1659_v10 = vpop.permute.xlu0 %1658  ;;  %v1609_v47 = vpop.permute.xlu1 %1608 }
 0x41a   : > { %v1672_v51 = vsel %vm413_vm4, %v1659_v10, %v1661_v58  ;;  %v1622_v40 = vsel %vm362_vm3, %v1609_v47, %v1611_v57  ;;  %v1621_v39 = vsel %vm362_vm3, %v1607_v31, %v1609_v47  ;;  %v1671_v58 = vsel %vm413_vm4, %v4681_v23, %v1659_v10 }
 0x41b   : > { %1684 = vst.msk [vmem:[#allocation3 + $0x70] sm:$0xff] %vm268_vm0, %v1672_v51  ;;  %1634 = vst.msk [vmem:[#allocation3 + $0x40] sm:$0xff] %vm268_vm0, %v1622_v40  ;;  %v3901_v31 = vunpack.i.h.bf16 %v4667_v56  ;;  %v3900_v10 = vunpack.i.l.bf16 %v4667_v56 }
 0x41d   : > { %v1569_v11 = vpop.permute.xlu0 %1568  ;;  %v4691_v30 = vpop.permute.xlu1 %1708  ;;  %v1720_v56 = vsel %vm464_vm5, %v3900_v10, %v4679_v61 }
 0x41e   : > { %v1722_v14 = vsel %vm464_vm5, %v4691_v30, %v1711_v59  ;;  %v1912_v0 = vld [vmem:[#allocation3 + $0x10] sm:$0xff] }
 0x41f   : > { %1734 = vst.msk [vmem:[#allocation3 + $0xa0] sm:$0xff] %vm268_vm0, %v1722_v14 }
 0x421   : > { %v1669_v15 = vpop.permute.xlu0 %1668  ;;  %v4696_v16 = vpop.permute.xlu1 %1764 }
 0x425   : > { %v4698_v19 = vpop.permute.xlu0 %1718  ;;  %v4700_v7 = vpop.permute.xlu1 %1804 }
 0x429   : > { %v4702_v18 = vpop.permute.xlu0 %1772  ;;  %v1619_v4 = vpop.permute.xlu1 %1618 }
 0x42a   : > { %1789 = vst.msk [vmem:[#allocation3 + $0x118] sm:$0xff] %vm268_vm0, %v4702_v18 }
 0x42d   : > { %v1615_v63 = vpop.permute.xlu0 %1614  ;;  %v1565_v13 = vpop.permute.xlu1 %1564 }
 0x42e   : > { %v1573_v44 = vsel %vm311_vm2, %v3886_v2, %v1565_v13  ;;  %v1623_v55 = vsel %vm362_vm3, %v3891_v45, %v1615_v63 }
 0x42f   : > { %v3631_v62 = vpack.c.bf16 %v1573_v44, %v1570_v53  ;;  %v3635_v36 = vpack.c.bf16 %v1623_v55, %v1620_v22 }
 0x431   : > { %v1715_v33 = vpop.permute.xlu0 %1714  ;;  %v1665_v5 = vpop.permute.xlu1 %1664 }
 0x432   : > { %v1673_v50 = vsel %vm413_vm4, %v3896_v17, %v1665_v5  ;;  %v1723_v14 = vsel %vm464_vm5, %v3901_v31, %v1715_v33  ;;  %v1945_v17 = vld [vmem:[#allocation3 + $0x118] sm:$0xff]  ;;  %v1948_v31 = vld [vmem:[#allocation3 + $0x130] sm:$0xff] }
 0x435   : > { %v4706_v25 = vpop.permute.xlu0 %1768  ;;  %v4708_v1 = vpop.permute.xlu1 %1802 }
 0x439   : > { %v1567_v54 = vpop.permute.xlu0 %1566  ;;  %v1617_v29 = vpop.permute.xlu1 %1616 }
 0x43a   : > { %v1574_v21 = vsel %vm311_vm2, %v1565_v13, %v1567_v54  ;;  %v1575_v32 = vsel %vm311_vm2, %v1567_v54, %v1569_v11  ;;  %v1624_v34 = vsel %vm362_vm3, %v1615_v63, %v1617_v29  ;;  %v1625_v27 = vsel %vm362_vm3, %v1617_v29, %v1619_v4 }
 0x43b   : > { %1587 = vst.msk [vmem:[#allocation3 + $0x28] sm:$0xff] %vm268_vm0, %v1575_v32  ;;  %1637 = vst.msk [vmem:[#allocation3 + $0x58] sm:$0xff] %vm268_vm0, %v1625_v27  ;;  %v3629_v38 = vpack.c.bf16 %v1574_v21, %v1571_v26  ;;  %v3633_v28 = vpack.c.bf16 %v1624_v34, %v1621_v39  ;;  %v3639_v11 = vpack.c.bf16 %v1673_v50, %v1670_v24  ;;  %v1942_v50 = vld [vmem:[#allocation3 + $0x100] sm:$0xff] }
 0x43c   : > { %v1721_v63 = vsel %vm464_vm5, %v4679_v61, %v4691_v30  ;;  %v3643_v26 = vpack.c.bf16 %v1723_v14, %v1720_v56  ;;  %v3647_v29 = vpack.c.bf16 %v4594_v20, %v4561_v37  ;;  %v1774_v21 = vsel %vm519_vm6, %v4683_v3, %v4696_v16  ;;  %v1930_v37 = vld [vmem:[#allocation3 + $0xa0] sm:$0xff] }
 0x43d   : > { %v4723_v41 = vpop.permute.xlu0 %1812  ;;  %v4725_v48 = vpop.permute.xlu1 %1844  ;;  %3630 = vmatprep.subr.bf16.mxu0 %v3629_v38  ;;  %v1939_v38 = vld [vmem:[#allocation3 + $0xe8] sm:$0xff] }
 0x43e   : > { %1829 = vst.msk [vmem:[#allocation3 + $0x148] sm:$0xff] %vm268_vm0, %v4723_v41  ;;  %3632 = vmatpush1.bf16.msra.mxu0 %v3631_v62  ;;  %v3678_v55 = vpack.c.bf16 %v1939_v38, %v1936_v6  ;;  %v4853_v6 = vld [vmem:[%s5369_s5] sm:$0xff] }
 0x43f   : > { %3634 = vmatprep.subr.bf16.mxu0 %v3633_v28 }
 0x441   : > { %v1667_v57 = vpop.permute.xlu0 %1666  ;;  %v4733_v35 = vpop.permute.xlu1 %1842 }
 0x442   : > { %v1674_v59 = vsel %vm413_vm4, %v1665_v5, %v1667_v57  ;;  %v1675_v60 = vsel %vm413_vm4, %v1667_v57, %v1669_v15  ;;  %v1915_v8 = vld [vmem:[#allocation3 + $0x28] sm:$0xff]  ;;  %3636 = vmatpush1.bf16.msra.mxu0 %v3635_v36  ;;  %v1921_v40 = vld [vmem:[#allocation3 + $0x58] sm:$0xff]  ;;  %v1918_v5 = vld [vmem:[#allocation3 + $0x40] sm:$0xff]  ;;  %v1854_v22 = vsel %vm601_vm8, %v4733_v35, %v4725_v48  ;;  %v3681_v57 = vpack.c.bf16 %v1945_v17, %v1942_v50 }
 0x443   : > { %1687 = vst.msk [vmem:[#allocation3 + $0x88] sm:$0xff] %vm268_vm0, %v1675_v60  ;;  %v3666_v47 = vpack.c.bf16 %v1915_v8, %v1912_v0  ;;  %v3637_v51 = vpack.c.bf16 %v1674_v59, %v1671_v58  ;;  %v3669_v2 = vpack.c.bf16 %v1921_v40, %v1918_v5  ;;  %v3478_v5 = vld [vmem:[%s5365_s1 + $0x40] sm:$0xff]  ;;  %v4869_v17 = vld [vmem:[%s5369_s5 + $0x8] sm:$0xff] }
 0x445   : > { %v1809_v4 = vpop.permute.xlu0 %1808  ;;  %3667 = vmatpush1.bf16.msra.mxu1 %v3666_v47  ;;  %v1717_v15 = vpop.permute.xlu1 %1716  ;;  %3638 = vmatprep.subr.bf16.mxu0 %v3637_v51  ;;  %v1951_v59 = vld [vmem:[#allocation3 + $0x148] sm:$0xff] }
 0x446   : > { %v1724_v23 = vsel %vm464_vm5, %v1715_v33, %v1717_v15  ;;  %v1725_v13 = vsel %vm464_vm5, %v1717_v15, %v4698_v19  ;;  %3668 = vmatprep.subr.bf16.mxu1 %v3962_v9  ;;  %3640 = vmatpush1.bf16.msra.mxu0 %v3639_v11  ;;  %v3645_v19 = vpack.c.bf16 %v4609_v12, %v4572_v46  ;;  %v1924_v33 = vld [vmem:[#allocation3 + $0x70] sm:$0xff] }
 0x447   : > { %1737 = vst.msk [vmem:[#allocation3 + $0xb8] sm:$0xff] %vm268_vm0, %v1725_v13  ;;  %v3641_v43 = vpack.c.bf16 %v1724_v23, %v1721_v63  ;;  %v1775_v46 = vsel %vm519_vm6, %v4696_v16, %v4671_v52  ;;  %v1815_v52 = vsel %vm560_vm7, %v4700_v7, %v4675_v42  ;;  %v3684_v24 = vpack.c.bf16 %v1951_v59, %v1948_v31 }
 0x449   : > { %v1847_v44 = vpop.permute.xlu0 %1846  ;;  %3670 = vmatpush1.bf16.msra.mxu1 %v3669_v2  ;;  %v4755_v30 = vpop.permute.xlu1 %1884  ;;  %3642 = vmatprep.subr.bf16.mxu0 %v3641_v43  ;;  %v3481_v2 = vld [vmem:[%s5365_s1 + $0x58] sm:$0xff]  ;;  %v3480_v43 = vld [vmem:[%s5365_s1 + $0x50] sm:$0xff] }
 0x44a   : > { %1866 = vst.msk [vmem:[#allocation3 + $0x160] sm:$0xff] %vm268_vm0, %v1847_v44  ;;  %3671 = vmatprep.subr.bf16.mxu1 %v3962_v9  ;;  %v1927_v54 = vld [vmem:[#allocation3 + $0x88] sm:$0xff]  ;;  %3644 = vmatpush1.bf16.msra.mxu0 %v3643_v26 }
 0x44b   : > { %v3672_v61 = vpack.c.bf16 %v1927_v54, %v1924_v33  ;;  %3646 = vmatprep.subr.bf16.mxu0 %v3645_v19 }
 0x44d   : > { %v1853_v32 = vpop.permute.xlu0 %1852  ;;  %3673 = vmatpush1.bf16.msra.mxu1 %v3672_v61  ;;  %v1771_v34 = vpop.permute.xlu1 %1770 }
 0x44e   : > { %1869 = vst.msk [vmem:[#allocation3 + $0x178] sm:$0xff] %vm268_vm0, %v1853_v32  ;;  %v1776_v12 = vsel %vm519_vm6, %v4706_v25, %v1771_v34  ;;  %v1777_v27 = vsel %vm519_vm6, %v1771_v34, %v4702_v18  ;;  %3674 = vmatprep.subr.bf16.mxu1 %v3962_v9  ;;  %v1933_v20 = vld [vmem:[#allocation3 + $0xb8] sm:$0xff]  ;;  %3648 = vmatpush1.bf16.msra.mxu0 %v3647_v29 }
 0x44f   : > { %v3675_v3 = vpack.c.bf16 %v1933_v20, %v1930_v37  ;;  %v3649_v45 = vpack.c.bf16 %v1777_v27, %v1775_v46  ;;  %v3651_v53 = vpack.c.bf16 %v1776_v12, %v1774_v21  ;;  %v1814_v18 = vsel %vm560_vm7, %v4708_v1, %v4700_v7  ;;  %v4819_v37 = vld [vmem:[%s5369_s5 + $0x10] sm:$0xff] }
 0x450   : > { %v1855_v1 = vsel %vm601_vm8, %v4725_v48, %v1847_v44 }
 0x451   : > { %v1849_v16 = vpop.permute.xlu0 %1848  ;;  %3676 = vmatpush1.bf16.msra.mxu1 %v3675_v3  ;;  %v1811_v39 = vpop.permute.xlu1 %1810  ;;  %3650 = vmatprep.subr.bf16.mxu0 %v3649_v45 }
 0x452   : > { %v1816_v25 = vsel %vm560_vm7, %v1809_v4, %v1811_v39  ;;  %v1817_v62 = vsel %vm560_vm7, %v1811_v39, %v4723_v41  ;;  %3677 = vmatprep.subr.bf16.mxu1 %v3962_v9  ;;  %3652 = vmatpush1.bf16.msra.mxu0 %v3651_v53  ;;  %v1954_v4 = vld [vmem:[#allocation3 + $0x160] sm:$0xff]  ;;  %v4826_v53 = vld [vmem:[%s5369_s5 + $0x28] sm:$0xff] }
 0x453   : > { %v3653_v28 = vpack.c.bf16 %v1817_v62, %v1815_v52  ;;  %v3655_v42 = vpack.c.bf16 %v1816_v25, %v1814_v18 }
 0x455   : > { %v1887_v36 = vpop.permute.xlu0 %1886  ;;  %3679 = vmatpush1.bf16.msra.mxu1 %v3678_v55  ;;  %v1851_v7 = vpop.permute.xlu1 %1850  ;;  %3654 = vmatprep.subr.bf16.mxu0 %v3653_v28  ;;  %v1957_v51 = vld [vmem:[#allocation3 + $0x178] sm:$0xff] }
 0x456   : > { %1906 = vst.msk [vmem:[#allocation3 + $0x190] sm:$0xff] %vm268_vm0, %v1887_v36  ;;  %v1856_v41 = vsel %vm601_vm8, %v1849_v16, %v1851_v7  ;;  %v1857_v49 = vsel %vm601_vm8, %v1851_v7, %v1853_v32  ;;  %3680 = vmatprep.subr.bf16.mxu1 %v3962_v9  ;;  %3656 = vmatpush1.bf16.msra.mxu0 %v3655_v42 }
 0x457   : > { %v3657_v58 = vpack.c.bf16 %v1857_v49, %v1855_v1  ;;  %v3659_v35 = vpack.c.bf16 %v1856_v41, %v1854_v22  ;;  %v1895_v48 = vsel %vm642_vm9, %v4755_v30, %v1887_v36  ;;  %v3687_v15 = vpack.c.bf16 %v1957_v51, %v1954_v4  ;;  %v4901_v41 = vld [vmem:[%s5369_s5 + $0x18] sm:$0xff] }
 0x459   : > { %v1893_v60 = vpop.permute.xlu0 %1892  ;;  %3682 = vmatpush1.bf16.msra.mxu1 %v3681_v57  ;;  %v1891_v0 = vpop.permute.xlu1 %1890  ;;  %3658 = vmatprep.subr.bf16.mxu0 %v3657_v58 }
 0x45a   : > { %1909 = vst.msk [vmem:[#allocation3 + $0x1a8] sm:$0xff] %vm268_vm0, %v1893_v60  ;;  %v1897_v8 = vsel %vm642_vm9, %v1891_v0, %v1893_v60  ;;  %3683 = vmatprep.subr.bf16.mxu1 %v3962_v9  ;;  %3660 = vmatpush1.bf16.msra.mxu0 %v3659_v35  ;;  %v4921_v35 = vld [vmem:[%s5369_s5 + $0x20] sm:$0xff]  ;;  %v3489_v60 = vld [vmem:[%s5365_s1 + $0x68] sm:$0xff] }
 0x45b   : > { %v3661_v47 = vpack.c.bf16 %v1897_v8, %v1895_v48  ;;  %v3492_v48 = vld [vmem:[%s5366_s2 + $0x30] sm:$0xff] }
 0x45d   : > { %v1889_v40 = vpop.permute.xlu0 %1888  ;;  %3685 = vmatpush1.bf16.msra.mxu1 %v3684_v24  ;;  %v1883_v11 = vpop.permute.xlu1 %1882  ;;  %3662 = vmatprep.subr.bf16.mxu0 %v3661_v47  ;;  %v1960_v23 = vld [vmem:[#allocation3 + $0x190] sm:$0xff] }
 0x45e   : > { %v1896_v10 = vsel %vm642_vm9, %v1889_v40, %v1891_v0  ;;  %v1894_v14 = vsel %vm642_vm9, %v1883_v11, %v4755_v30  ;;  %3686 = vmatprep.subr.bf16.mxu1 %v3962_v9  ;;  %v3493_v0 = vld [vmem:[%s5366_s2 + $0x38] sm:$0xff] }
 0x45f   : > { %v3663_v63 = vpack.c.bf16 %v1896_v10, %v1894_v14 }
 0x461   : > { %3688 = vmatpush1.bf16.msra.mxu1 %v3687_v15  ;;  %v1963_v13 = vld [vmem:[#allocation3 + $0x1a8] sm:$0xff]  ;;  %3664 = vmatpush1.bf16.msra.mxu0 %v3663_v63 }
 0x462   : > { %3689 = vmatprep.subr.bf16.mxu1 %v3962_v9  ;;  %v3690_v56 = vpack.c.bf16 %v1963_v13, %v1960_v23 }
 0x464   : > { %2053 = vmatmul.mubr.f32.vlgmr.msra.gmra.mrb[8].mxu0 %v3478_v5 }
 0x465   : > { %3691 = vmatpush1.bf16.msra.mxu1 %v3690_v56  ;;  %3485 = vmatprep.mubr.msk.f32.mxu0 %vm729_vm1, %v3481_v2 }
 0x466   : > { %3728 = vmatprep.subr.bf16.mxu1 %v3962_v9 }
 0x468   : > { %2130 = vmatmul.mubr.f32.vlgmr.msra.gmra.mrb[8].mxu1 %v3478_v5  ;;  %2059 = vmatmul.mubr.f32.gmra.mrb[10].mxu0 %v3480_v43 }
 0x469   : > { %3487 = vmatprep.mubr.msk.f32.mxu1 %vm729_vm1, %v3481_v2  ;;  %3494 = vmatprep.mubr.msk.f32.mxu0 %vm729_vm1, %v3489_v60 }
 0x46c   : > { %2135 = vmatmul.mubr.f32.gmra.mrb[10].mxu1 %v3480_v43 }
 0x46d   : > { %3496 = vmatprep.mubr.msk.f32.mxu1 %vm729_vm1, %v3489_v60 }
 0x46e   : > { %v1975_v30 = vpop.permute.xlu1 %1974  ;;  %v1980_v32 = vpop.permute.xlu0 %1979 }
 0x472   : > { %v4977_v8 = vpop.permute.xlu0 %3908  ;;  %v3904_v31 = vpop.permute.xlu1 %3903 }
 0x476   : > { %v4979_v24 = vpop.permute.xlu0 %3918  ;;  %v4981_v47 = vpop.permute.xlu1 %3913 }
 0x537   : > { %v2054_v26 = vpop.f32.mrb[8].mxu0 }
 0x538   : > { %v2056_v44 = vpop.f32.mrb[9].mxu0  ;;  %v2055_v52 = vadd.f32 %v2054_v26, %v1975_v30 }
 0x539   : > { %v2057_v62 = vadd.f32 %v2056_v44, %v1975_v30 }
 0x53a   : > { %v2140_v39 = vmul.f32 0.1, %v2055_v52 }
 0x53b   : > { %v2131_v19 = vpop.f32.mrb[8].mxu1  ;;  %v2060_v33 = vpop.f32.mrb[10].mxu0  ;;  %v2141_v28 = vmul.f32 0.1, %v2057_v62 }
 0x53c   : > { %v2132_v54 = vadd.f32 %v2131_v19, %v1975_v30  ;;  %v2133_v61 = vpop.f32.mrb[9].mxu1  ;;  %v2062_v29 = vpop.f32.mrb[11].mxu0  ;;  %v2146_v25 = vmax.f32 %v2055_v52, %v2140_v39  ;;  %v2061_v36 = vadd.f32 %v2060_v33, %v1980_v32  ;;  %v3906_v52 = vunpack.i.h.bf16 %v3904_v31 }
 0x53d   : > { %v2147_v42 = vmax.f32 %v2057_v62, %v2141_v28  ;;  %v2063_v50 = vadd.f32 %v2062_v29, %v1980_v32 }
 0x53e   : > { %v2142_v21 = vmul.f32 0.1, %v2132_v54  ;;  %v4856_v55 = vmul.f32 %v4853_v6, %v2146_v25  ;;  %v2143_v7 = vmul.f32 0.1, %v2061_v36 }
 0x53f   : > { %v2136_v34 = vpop.f32.mrb[10].mxu1  ;;  %v4872_v22 = vmul.f32 %v4869_v17, %v2147_v42  ;;  %v2144_v57 = vmul.f32 0.1, %v2063_v50 }
 0x540   : > { %v2148_v46 = vmax.f32 %v2132_v54, %v2142_v21  ;;  %v2137_v12 = vadd.f32 %v2136_v34, %v1980_v32  ;;  %v2138_v27 = vpop.f32.mrb[11].mxu1  ;;  %v2149_v1 = vmax.f32 %v2061_v36, %v2143_v7 }
 0x541   : > { %v2150_v58 = vmax.f32 %v2063_v50, %v2144_v57 }
 0x542   : > { %v2154_v20 = vmul.f32 %v4819_v37, %v2148_v46  ;;  %v2145_v3 = vmul.f32 0.1, %v2137_v12  ;;  %v4904_v49 = vmul.f32 %v4901_v41, %v2149_v1  ;;  %v3911_v1 = vunpack.i.h.bf16 %v4977_v8 }
 0x543   : > { %v4924_v59 = vmul.f32 %v4921_v35, %v2150_v58 }
 0x544   : > { %2160 = vst.msk [vmem:[#allocation2 + $0x18] sm:$0xff] %vm268_vm0, %v2154_v20  ;;  %v2151_v45 = vmax.f32 %v2137_v12, %v2145_v3 }
 0x546   : > { %v2157_v38 = vmul.f32 %v4826_v53, %v2151_v45 }
 0x548   : > { %2163 = vst.msk [vmem:[#allocation2 + $0x38] sm:$0xff] %vm268_vm0, %v2157_v38 }
 0x54b   : > { %v4830_v16 = vld [vmem:[#allocation2 + $0x18] sm:$0xff] }
 0x54c   : > { %2236 = vrot.lane.b32.xlu0 %v4830_v16, %s3959_s23  ;;  %2186 = vrot.lane.b32.xlu1 %v4830_v16, %s3960_s24  ;;  %2372 = vst.msk [vmem:[#allocation3 + $0xd0] sm:$0xff] %vm268_vm0, %v4830_v16 }
 0x54f   : > { %v4838_v18 = vld [vmem:[#allocation2 + $0x38] sm:$0xff] }
 0x550   : > { %2392 = vrot.lane.b32.xlu0 %v4830_v16, %s3964_s7  ;;  %2286 = vrot.lane.b32.xlu1 %v4830_v16, %s3961_s29  ;;  %2375 = vst.msk [vmem:[#allocation3 + $0xe8] sm:$0xff] %vm268_vm0, %v4838_v18 }
 0x554   : > { %2432 = vrot.lane.b32.xlu0 %v4830_v16, %s3965_s8  ;;  %2336 = vrot.lane.b32.xlu1 %v4830_v16, %s3963_s30 }
 0x558   : > { %2232 = vrot.lane.b32.xlu0 %v4856_v55, %s3959_s23  ;;  %2182 = vrot.lane.b32.xlu1 %v4856_v55, %s3960_s24 }
 0x55c   : > { %2332 = vrot.lane.b32.xlu0 %v4856_v55, %s3963_s30  ;;  %2282 = vrot.lane.b32.xlu1 %v4856_v55, %s3961_s29 }
 0x560   : > { %2184 = vrot.lane.b32.xlu0 %v4872_v22, %s3960_s24  ;;  %2388 = vrot.lane.b32.xlu1 %v4856_v55, %s3964_s7 }
 0x564   : > { %2284 = vrot.lane.b32.xlu0 %v4872_v22, %s3961_s29  ;;  %2234 = vrot.lane.b32.xlu1 %v4872_v22, %s3959_s23 }
 0x568   : > { %2194 = vrot.lane.b32.xlu0 %v4838_v18, %s3960_s24  ;;  %2334 = vrot.lane.b32.xlu1 %v4872_v22, %s3963_s30 }
 0x56c   : > { %2294 = vrot.lane.b32.xlu0 %v4838_v18, %s3961_s29  ;;  %2390 = vrot.lane.b32.xlu1 %v4872_v22, %s3964_s7 }
 0x570   : > { %2344 = vrot.lane.b32.xlu0 %v4838_v18, %s3963_s30  ;;  %2430 = vrot.lane.b32.xlu1 %v4872_v22, %s3965_s8 }
 0x574   : > { %2398 = vrot.lane.b32.xlu0 %v4838_v18, %s3964_s7  ;;  %2244 = vrot.lane.b32.xlu1 %v4838_v18, %s3959_s23 }
 0x578   : > { %2240 = vrot.lane.b32.xlu0 %v4904_v49, %s3959_s23  ;;  %2190 = vrot.lane.b32.xlu1 %v4904_v49, %s3960_s24 }
 0x57c   : > { %2340 = vrot.lane.b32.xlu0 %v4904_v49, %s3963_s30  ;;  %2290 = vrot.lane.b32.xlu1 %v4904_v49, %s3961_s29 }
 0x580   : > { %2394 = vrot.lane.b32.xlu0 %v4904_v49, %s3964_s7  ;;  %2428 = vrot.lane.b32.xlu1 %v4856_v55, %s3965_s8 }
 0x584   : > { %2192 = vrot.lane.b32.xlu0 %v4924_v59, %s3960_s24  ;;  %2242 = vrot.lane.b32.xlu1 %v4924_v59, %s3959_s23 }
 0x588   : > { %2438 = vrot.lane.b32.xlu0 %v4838_v18, %s3965_s8  ;;  %2470 = vrot.lane.b32.xlu1 %v4872_v22, %s3966_s9 }
 0x58c   : > { %2292 = vrot.lane.b32.xlu0 %v4924_v59, %s3961_s29  ;;  %2468 = vrot.lane.b32.xlu1 %v4856_v55, %s3966_s9 }
 0x590   : > { %2434 = vrot.lane.b32.xlu0 %v4904_v49, %s3965_s8  ;;  %2342 = vrot.lane.b32.xlu1 %v4924_v59, %s3963_s30 }
 0x594   : > { %2472 = vrot.lane.b32.xlu0 %v4830_v16, %s3966_s9  ;;  %2510 = vrot.lane.b32.xlu1 %v4872_v22, %s3967_s12 }
 0x598   : > { %2478 = vrot.lane.b32.xlu0 %v4838_v18, %s3966_s9  ;;  %2396 = vrot.lane.b32.xlu1 %v4924_v59, %s3964_s7 }
 0x59c   : > { %2474 = vrot.lane.b32.xlu0 %v4904_v49, %s3966_s9  ;;  %2436 = vrot.lane.b32.xlu1 %v4924_v59, %s3965_s8 }
 0x5a0   : > { %2512 = vrot.lane.b32.xlu0 %v4830_v16, %s3967_s12  ;;  %2476 = vrot.lane.b32.xlu1 %v4924_v59, %s3966_s9  ;;  %v3905_v16 = vunpack.i.l.bf16 %v3904_v31 }
 0x5a4   : > { %2518 = vrot.lane.b32.xlu0 %v4838_v18, %s3967_s12  ;;  %2516 = vrot.lane.b32.xlu1 %v4924_v59, %s3967_s12 }
 0x5a8   : > { %2514 = vrot.lane.b32.xlu0 %v4904_v49, %s3967_s12  ;;  %2508 = vrot.lane.b32.xlu1 %v4856_v55, %s3967_s12 }
 0x5ac   : > { %2605 = vperm.xlu0 %3860, %v3493_v0   ;;  %2600 = vperm.xlu1 %3861, %v3492_v48   ;;  %v3910_v0 = vunpack.i.l.bf16 %v4977_v8  ;;  %v3915_v8 = vunpack.i.l.bf16 %v4981_v47 }
 0x5be   : > { %v2237_v51 = vpop.permute.xlu0 %2236  ;;  %v2187_v40 = vpop.permute.xlu1 %2186 }
 0x5c2   : > { %v4983_v11 = vpop.permute.xlu0 %2392  ;;  %v2287_v10 = vpop.permute.xlu1 %2286 }
 0x5c3   : > { %2412 = vst.msk [vmem:[#allocation3 + $0x100] sm:$0xff] %vm268_vm0, %v4983_v11 }
 0x5c6   : > { %v4987_v14 = vpop.permute.xlu0 %2432  ;;  %v2337_v4 = vpop.permute.xlu1 %2336 }
 0x5c7   : > { %2452 = vst.msk [vmem:[#allocation3 + $0x130] sm:$0xff] %vm268_vm0, %v4987_v14 }
 0x5ca   : > { %v2233_v15 = vpop.permute.xlu0 %2232  ;;  %v2183_v63 = vpop.permute.xlu1 %2182 }
 0x5cb   : > { %v2196_v50 = vsel %vm311_vm2, %v3905_v16, %v2183_v63 }
 0x5ce   : > { %v4991_v23 = vpop.permute.xlu0 %2332  ;;  %v4993_v13 = vpop.permute.xlu1 %2282 }
 0x5d2   : > { %v2185_v5 = vpop.permute.xlu0 %2184  ;;  %v4995_v56 = vpop.permute.xlu1 %2388 }
 0x5d3   : > { %v2198_v2 = vsel %vm311_vm2, %v2185_v5, %v2187_v40  ;;  %v2197_v39 = vsel %vm311_vm2, %v2183_v63, %v2185_v5 }
 0x5d4   : > { %2210 = vst.msk [vmem:[#allocation3 + $0x10] sm:$0xff] %vm268_vm0, %v2198_v2 }
 0x5d6   : > { %v2285_v43 = vpop.permute.xlu0 %2284  ;;  %v2235_v26 = vpop.permute.xlu1 %2234 }
 0x5d7   : > { %v2298_v44 = vsel %vm413_vm4, %v2285_v43, %v2287_v10  ;;  %v2248_v30 = vsel %vm362_vm3, %v2235_v26, %v2237_v51  ;;  %v2247_v58 = vsel %vm362_vm3, %v2233_v15, %v2235_v26  ;;  %v3916_v10 = vunpack.i.h.bf16 %v4981_v47 }
 0x5d8   : > { %2310 = vst.msk [vmem:[#allocation3 + $0x70] sm:$0xff] %vm268_vm0, %v2298_v44  ;;  %2260 = vst.msk [vmem:[#allocation3 + $0x40] sm:$0xff] %vm268_vm0, %v2248_v30  ;;  %v2297_v44 = vsel %vm413_vm4, %v4993_v13, %v2285_v43  ;;  %v2296_v47 = vsel %vm413_vm4, %v3915_v8, %v4993_v13  ;;  %v3920_v43 = vunpack.i.l.bf16 %v4979_v24  ;;  %v2562_v8 = vld [vmem:[#allocation3 + $0xd0] sm:$0xff] }
 0x5da   : > { %v2195_v19 = vpop.permute.xlu0 %2194  ;;  %v5003_v33 = vpop.permute.xlu1 %2334 }
 0x5db   : > { %v2348_v54 = vsel %vm464_vm5, %v5003_v33, %v2337_v4  ;;  %v2246_v4 = vsel %vm362_vm3, %v3910_v0, %v2233_v15  ;;  %v3921_v15 = vunpack.i.h.bf16 %v4979_v24  ;;  %v2346_v24 = vsel %vm464_vm5, %v3920_v43, %v4991_v23  ;;  %v2574_v43 = vld [vmem:[#allocation3 + $0x130] sm:$0xff] }
 0x5dc   : > { %2360 = vst.msk [vmem:[#allocation3 + $0xa0] sm:$0xff] %vm268_vm0, %v2348_v54  ;;  %v2538_v54 = vld [vmem:[#allocation3 + $0x10] sm:$0xff] }
 0x5de   : > { %v2295_v61 = vpop.permute.xlu0 %2294  ;;  %v5008_v29 = vpop.permute.xlu1 %2390 }
 0x5e2   : > { %v5010_v21 = vpop.permute.xlu0 %2344  ;;  %v5012_v32 = vpop.permute.xlu1 %2430 }
 0x5e6   : > { %v5014_v34 = vpop.permute.xlu0 %2398  ;;  %v2245_v46 = vpop.permute.xlu1 %2244 }
 0x5e7   : > { %2415 = vst.msk [vmem:[#allocation3 + $0x118] sm:$0xff] %vm268_vm0, %v5014_v34 }
 0x5ea   : > { %v2241_v12 = vpop.permute.xlu0 %2240  ;;  %v2191_v27 = vpop.permute.xlu1 %2190 }
 0x5eb   : > { %v2199_v18 = vsel %vm311_vm2, %v3906_v52, %v2191_v27  ;;  %v2249_v48 = vsel %vm362_vm3, %v3911_v1, %v2241_v12 }
 0x5ec   : > { %v3694_v60 = vpack.c.bf16 %v2199_v18, %v2196_v50  ;;  %v3698_v63 = vpack.c.bf16 %v2249_v48, %v2246_v4  ;;  %v2347_v18 = vsel %vm464_vm5, %v4991_v23, %v5003_v33  ;;  %v3710_v50 = vpack.c.bf16 %v4904_v49, %v4856_v55  ;;  %v2556_v55 = vld [vmem:[#allocation3 + $0xa0] sm:$0xff] }
 0x5ee   : > { %v2341_v20 = vpop.permute.xlu0 %2340  ;;  %v2291_v3 = vpop.permute.xlu1 %2290 }
 0x5ef   : > { %v2299_v5 = vsel %vm413_vm4, %v3916_v10, %v2291_v3  ;;  %v2565_v10 = vld [vmem:[#allocation3 + $0xe8] sm:$0xff] }
 0x5f0   : > { %v3702_v16 = vpack.c.bf16 %v2299_v5, %v2296_v47  ;;  %v3741_v5 = vpack.c.bf16 %v2565_v10, %v2562_v8 }
 0x5f2   : > { %v5018_v45 = vpop.permute.xlu0 %2394  ;;  %v5020_v38 = vpop.permute.xlu1 %2428 }
 0x5f6   : > { %v2193_v25 = vpop.permute.xlu0 %2192  ;;  %v2243_v62 = vpop.permute.xlu1 %2242 }
 0x5f7   : > { %v2200_v28 = vsel %vm311_vm2, %v2191_v27, %v2193_v25  ;;  %v2201_v42 = vsel %vm311_vm2, %v2193_v25, %v2195_v19  ;;  %v2250_v36 = vsel %vm362_vm3, %v2241_v12, %v2243_v62  ;;  %v2251_v7 = vsel %vm362_vm3, %v2243_v62, %v2245_v46  ;;  %v2544_v62 = vld [vmem:[#allocation3 + $0x40] sm:$0xff] }
 0x5f8   : > { %2213 = vst.msk [vmem:[#allocation3 + $0x28] sm:$0xff] %vm268_vm0, %v2201_v42  ;;  %2263 = vst.msk [vmem:[#allocation3 + $0x58] sm:$0xff] %vm268_vm0, %v2251_v7  ;;  %v3692_v57 = vpack.c.bf16 %v2200_v28, %v2197_v39  ;;  %v3696_v40 = vpack.c.bf16 %v2250_v36, %v2247_v58 }
 0x5fa   : > { %v5035_v31 = vpop.permute.xlu0 %2438  ;;  %v5037_v51 = vpop.permute.xlu1 %2470  ;;  %3693 = vmatprep.subr.bf16.mxu0 %v3692_v57  ;;  %v2400_v57 = vsel %vm519_vm6, %v4995_v56, %v5008_v29 }
 0x5fb   : > { %2455 = vst.msk [vmem:[#allocation3 + $0x148] sm:$0xff] %vm268_vm0, %v5035_v31  ;;  %3695 = vmatpush1.bf16.msra.mxu0 %v3694_v60 }
 0x5fc   : > { %3697 = vmatprep.subr.bf16.mxu0 %v3696_v40 }
 0x5fe   : > { %v2293_v2 = vpop.permute.xlu0 %2292  ;;  %v5045_v26 = vpop.permute.xlu1 %2468 }
 0x5ff   : > { %v2300_v30 = vsel %vm413_vm4, %v2291_v3, %v2293_v2  ;;  %v2301_v19 = vsel %vm413_vm4, %v2293_v2, %v2295_v61  ;;  %v2541_v46 = vld [vmem:[#allocation3 + $0x28] sm:$0xff]  ;;  %3699 = vmatpush1.bf16.msra.mxu0 %v3698_v63  ;;  %v2547_v52 = vld [vmem:[#allocation3 + $0x58] sm:$0xff]  ;;  %v2349_v3 = vsel %vm464_vm5, %v3921_v15, %v2341_v20 }
 0x600   : > { %2313 = vst.msk [vmem:[#allocation3 + $0x88] sm:$0xff] %vm268_vm0, %v2301_v19  ;;  %v3729_v12 = vpack.c.bf16 %v2541_v46, %v2538_v54  ;;  %v3700_v27 = vpack.c.bf16 %v2300_v30, %v2297_v44  ;;  %v3732_v28 = vpack.c.bf16 %v2547_v52, %v2544_v62  ;;  %v3706_v36 = vpack.c.bf16 %v2349_v3, %v2346_v24  ;;  %v2571_v44 = vld [vmem:[#allocation3 + $0x118] sm:$0xff]  ;;  %v2568_v46 = vld [vmem:[#allocation3 + $0x100] sm:$0xff] }
 0x601   : > { %v2480_v30 = vsel %vm601_vm8, %v5045_v26, %v5037_v51  ;;  %v3744_v15 = vpack.c.bf16 %v2571_v44, %v2568_v46 }
 0x602   : > { %3730 = vmatpush1.bf16.msra.mxu1 %v3729_v12  ;;  %v2435_v61 = vpop.permute.xlu0 %2434  ;;  %v2343_v39 = vpop.permute.xlu1 %2342  ;;  %3701 = vmatprep.subr.bf16.mxu0 %v3700_v27  ;;  %v2577_v12 = vld [vmem:[#allocation3 + $0x148] sm:$0xff] }
 0x603   : > { %v2350_v13 = vsel %vm464_vm5, %v2341_v20, %v2343_v39  ;;  %v2351_v25 = vsel %vm464_vm5, %v2343_v39, %v5010_v21  ;;  %3731 = vmatprep.subr.bf16.mxu1 %v3962_v9  ;;  %3703 = vmatpush1.bf16.msra.mxu0 %v3702_v16  ;;  %v3708_v21 = vpack.c.bf16 %v4924_v59, %v4872_v22  ;;  %v2550_v20 = vld [vmem:[#allocation3 + $0x70] sm:$0xff] }
 0x604   : > { %2363 = vst.msk [vmem:[#allocation3 + $0xb8] sm:$0xff] %vm268_vm0, %v2351_v25  ;;  %v3704_v42 = vpack.c.bf16 %v2350_v13, %v2347_v18  ;;  %v2401_v22 = vsel %vm519_vm6, %v5008_v29, %v4983_v11  ;;  %v2441_v11 = vsel %vm560_vm7, %v5012_v32, %v4987_v14  ;;  %v3747_v3 = vpack.c.bf16 %v2577_v12, %v2574_v43 }
 0x606   : > { %v2473_v7 = vpop.permute.xlu0 %2472  ;;  %3733 = vmatpush1.bf16.msra.mxu1 %v3732_v28  ;;  %v5067_v33 = vpop.permute.xlu1 %2510  ;;  %3705 = vmatprep.subr.bf16.mxu0 %v3704_v42 }
 0x607   : > { %2492 = vst.msk [vmem:[#allocation3 + $0x160] sm:$0xff] %vm268_vm0, %v2473_v7  ;;  %3734 = vmatprep.subr.bf16.mxu1 %v3962_v9  ;;  %v2553_v1 = vld [vmem:[#allocation3 + $0x88] sm:$0xff]  ;;  %3707 = vmatpush1.bf16.msra.mxu0 %v3706_v36 }
 0x608   : > { %v3735_v23 = vpack.c.bf16 %v2553_v1, %v2550_v20  ;;  %3709 = vmatprep.subr.bf16.mxu0 %v3708_v21  ;;  %v3488_v21 = vld [vmem:[%s5365_s1 + $0x60] sm:$0xff]  ;;  %v3490_v1 = vld [vmem:[%s5365_s1 + $0x70] sm:$0xff] }
 0x60a   : > { %v2479_v58 = vpop.permute.xlu0 %2478  ;;  %3736 = vmatpush1.bf16.msra.mxu1 %v3735_v23  ;;  %v2397_v60 = vpop.permute.xlu1 %2396  ;;  %v3949_v23 = vld [vmem:[#allocation2] sm:$0xff] }
 0x60b   : > { %2495 = vst.msk [vmem:[#allocation3 + $0x178] sm:$0xff] %vm268_vm0, %v2479_v58  ;;  %v2402_v59 = vsel %vm519_vm6, %v5018_v45, %v2397_v60  ;;  %v2403_v0 = vsel %vm519_vm6, %v2397_v60, %v5014_v34  ;;  %3737 = vmatprep.subr.bf16.mxu1 %v3962_v9  ;;  %v2559_v49 = vld [vmem:[#allocation3 + $0xb8] sm:$0xff]  ;;  %3711 = vmatpush1.bf16.msra.mxu0 %v3710_v50 }
 0x60c   : > { %v3738_v56 = vpack.c.bf16 %v2559_v49, %v2556_v55  ;;  %v3712_v48 = vpack.c.bf16 %v2403_v0, %v2401_v22  ;;  %v3714_v40 = vpack.c.bf16 %v2402_v59, %v2400_v57  ;;  %v2440_v34 = vsel %vm560_vm7, %v5020_v38, %v5012_v32 }
 0x60d   : > { %v2481_v38 = vsel %vm601_vm8, %v5037_v51, %v2473_v7  ;;  %v3927_v50 = vpack.i.bf16 %v3949_v23, %v3949_v23 }
 0x60e   : > { %v2475_v29 = vpop.permute.xlu0 %2474  ;;  %3739 = vmatpush1.bf16.msra.mxu1 %v3738_v56  ;;  %v2437_v4 = vpop.permute.xlu1 %2436  ;;  %3713 = vmatprep.subr.bf16.mxu0 %v3712_v48  ;;  %v2580_v24 = vld [vmem:[#allocation3 + $0x160] sm:$0xff] }
 0x60f   : > { %v2442_v45 = vsel %vm560_vm7, %v2435_v61, %v2437_v4  ;;  %v2443_v63 = vsel %vm560_vm7, %v2437_v4, %v5035_v31  ;;  %3740 = vmatprep.subr.bf16.mxu1 %v3962_v9  ;;  %3715 = vmatpush1.bf16.msra.mxu0 %v3714_v40 }
 0x610   : > { %v3716_v2 = vpack.c.bf16 %v2443_v63, %v2441_v11  ;;  %v3718_v14 = vpack.c.bf16 %v2442_v45, %v2440_v34  ;;  %3928 = vrot.lane.b32.xlu0 %v3927_v50, %s3959_s23  ;;  %3923 = vrot.lane.b32.xlu1 %v3927_v50, %s3960_s24 }
 0x612   : > { %v2513_v19 = vpop.permute.xlu0 %2512  ;;  %3742 = vmatpush1.bf16.msra.mxu1 %v3741_v5  ;;  %v2477_v32 = vpop.permute.xlu1 %2476  ;;  %3717 = vmatprep.subr.bf16.mxu0 %v3716_v2  ;;  %v2583_v39 = vld [vmem:[#allocation3 + $0x178] sm:$0xff] }
 0x613   : > { %2532 = vst.msk [vmem:[#allocation3 + $0x190] sm:$0xff] %vm268_vm0, %v2513_v19  ;;  %v2482_v31 = vsel %vm601_vm8, %v2475_v29, %v2477_v32  ;;  %v2483_v54 = vsel %vm601_vm8, %v2477_v32, %v2479_v58  ;;  %3743 = vmatprep.subr.bf16.mxu1 %v3962_v9  ;;  %3719 = vmatpush1.bf16.msra.mxu0 %v3718_v14 }
 0x614   : > { %v3720_v47 = vpack.c.bf16 %v2483_v54, %v2481_v38  ;;  %v3722_v26 = vpack.c.bf16 %v2482_v31, %v2480_v30  ;;  %v2521_v51 = vsel %vm642_vm9, %v5067_v33, %v2513_v19  ;;  %v3750_v28 = vpack.c.bf16 %v2583_v39, %v2580_v24  ;;  %3938 = vrot.lane.b32.xlu0 %v3927_v50, %s3963_s30 }
 0x615   : > { %3933 = vrot.lane.b32.xlu1 %v3927_v50, %s3961_s29 }
 0x616   : > { %v2519_v27 = vpop.permute.xlu0 %2518  ;;  %3745 = vmatpush1.bf16.msra.mxu1 %v3744_v15  ;;  %v2517_v52 = vpop.permute.xlu1 %2516  ;;  %3721 = vmatprep.subr.bf16.mxu0 %v3720_v47 }
 0x617   : > { %2535 = vst.msk [vmem:[#allocation3 + $0x1a8] sm:$0xff] %vm268_vm0, %v2519_v27  ;;  %v2523_v16 = vsel %vm642_vm9, %v2517_v52, %v2519_v27  ;;  %3746 = vmatprep.subr.bf16.mxu1 %v3962_v9  ;;  %3723 = vmatpush1.bf16.msra.mxu0 %v3722_v26 }
 0x618   : > { %v3724_v61 = vpack.c.bf16 %v2523_v16, %v2521_v51 }
 0x61a   : > { %v2515_v18 = vpop.permute.xlu0 %2514  ;;  %3748 = vmatpush1.bf16.msra.mxu1 %v3747_v3  ;;  %v2509_v13 = vpop.permute.xlu1 %2508  ;;  %3725 = vmatprep.subr.bf16.mxu0 %v3724_v61  ;;  %v2586_v36 = vld [vmem:[#allocation3 + $0x190] sm:$0xff] }
 0x61b   : > { %v2522_v25 = vsel %vm642_vm9, %v2515_v18, %v2517_v52  ;;  %v2520_v62 = vsel %vm642_vm9, %v2509_v13, %v5067_v33  ;;  %3749 = vmatprep.subr.bf16.mxu1 %v3962_v9  ;;  %v3491_v33 = vld [vmem:[%s5365_s1 + $0x78] sm:$0xff] }
 0x61c   : > { %v3726_v42 = vpack.c.bf16 %v2522_v25, %v2520_v62 }
 0x61e   : > { %3751 = vmatpush1.bf16.msra.mxu1 %v3750_v28  ;;  %v2589_v7 = vld [vmem:[#allocation3 + $0x1a8] sm:$0xff]  ;;  %3727 = vmatpush1.bf16.msra.mxu0 %v3726_v42 }
 0x61f   : > { %3752 = vmatprep.subr.bf16.mxu1 %v3962_v9  ;;  %v3753_v20 = vpack.c.bf16 %v2589_v7, %v2586_v36 }
 0x621   : > { %2679 = vmatmul.mubr.f32.vlgmr.msra.gmra.mrb[12].mxu0 %v3488_v21 }
 0x622   : > { %3754 = vmatpush1.bf16.msra.mxu1 %v3753_v20  ;;  %3495 = vmatprep.mubr.msk.f32.mxu0 %vm729_vm1, %v3491_v33 }
 0x623   : > { %3791 = vmatprep.subr.bf16.mxu1 %v3962_v9 }
 0x625   : > { %2756 = vmatmul.mubr.f32.vlgmr.msra.gmra.mrb[12].mxu1 %v3488_v21  ;;  %2685 = vmatmul.mubr.f32.gmra.mrb[14].mxu0 %v3490_v1 }
 0x626   : > { %3497 = vmatprep.mubr.msk.f32.mxu1 %vm729_vm1, %v3491_v33 }
 0x629   : > { %2761 = vmatmul.mubr.f32.gmra.mrb[14].mxu1 %v3490_v1 }
 0x62b   : > { %v2601_v57 = vpop.permute.xlu1 %2600  ;;  %v2606_v0 = vpop.permute.xlu0 %2605 }
 0x682   : > { %v3929_v12 = vpop.permute.xlu0 %3928  ;;  %v3924_v27 = vpop.permute.xlu1 %3923 }
 0x683   : > { %v3925_v39 = vunpack.i.l.bf16 %v3924_v27  ;;  %v3930_v36 = vunpack.i.l.bf16 %v3929_v12 }
 0x686   : > { %v3939_v52 = vpop.permute.xlu0 %3938 }
 0x687   : > { %v3934_v51 = vpop.permute.xlu1 %3933  ;;  %v3940_v33 = vunpack.i.l.bf16 %v3939_v52 }
 0x688   : > { %v3935_v62 = vunpack.i.l.bf16 %v3934_v51 }
 0x6f4   : > { %v2680_v58 = vpop.f32.mrb[12].mxu0 }
 0x6f5   : > { %v2681_v60 = vadd.f32 %v2680_v58, %v2601_v57  ;;  %v2682_v22 = vpop.f32.mrb[13].mxu0 }
 0x6f6   : > { %v2683_v59 = vadd.f32 %v2682_v22, %v2601_v57 }
 0x6f7   : > { %v2766_v55 = vmul.f32 0.1, %v2681_v60 }
 0x6f8   : > { %v2757_v49 = vpop.f32.mrb[12].mxu1  ;;  %v2767_v56 = vmul.f32 0.1, %v2683_v59  ;;  %v2686_v48 = vpop.f32.mrb[14].mxu0 }
 0x6f9   : > { %v2758_v40 = vadd.f32 %v2757_v49, %v2601_v57  ;;  %v2759_v10 = vpop.f32.mrb[13].mxu1  ;;  %v2772_v11 = vmax.f32 %v2681_v60, %v2766_v55  ;;  %v2687_v29 = vadd.f32 %v2686_v48, %v2606_v0  ;;  %v2688_v4 = vpop.f32.mrb[15].mxu0 }
 0x6fa   : > { %v2773_v34 = vmax.f32 %v2683_v59, %v2767_v56  ;;  %v2689_v45 = vadd.f32 %v2688_v4, %v2606_v0 }
 0x6fb   : > { %v2768_v63 = vmul.f32 0.1, %v2758_v40  ;;  %v5133_v8 = vmul.f32 %v4853_v6, %v2772_v11  ;;  %v2769_v5 = vmul.f32 0.1, %v2687_v29 }
 0x6fc   : > { %v2762_v2 = vpop.f32.mrb[14].mxu1  ;;  %v5136_v14 = vmul.f32 %v4869_v17, %v2773_v34  ;;  %v2770_v44 = vmul.f32 0.1, %v2689_v45 }
 0x6fd   : > { %v2774_v30 = vmax.f32 %v2758_v40, %v2768_v63  ;;  %v2763_v19 = vadd.f32 %v2762_v2, %v2606_v0  ;;  %v2775_v32 = vmax.f32 %v2687_v29, %v2769_v5  ;;  %v2764_v38 = vpop.f32.mrb[15].mxu1 }
 0x6fe   : > { %v2776_v31 = vmax.f32 %v2689_v45, %v2770_v44 }
 0x6ff   : > { %v2780_v54 = vmul.f32 %v4819_v37, %v2774_v30  ;;  %v2771_v46 = vmul.f32 0.1, %v2763_v19  ;;  %v5140_v15 = vmul.f32 %v4901_v41, %v2775_v32  ;;  %v3931_v30 = vunpack.i.h.bf16 %v3929_v12 }
 0x700   : > { %v5143_v6 = vmul.f32 %v4921_v35, %v2776_v31  ;;  %v3217_v35 = vld [vmem:[%s5368_s4] sm:$0x3] }
 0x701   : > { %2786 = vst.msk [vmem:[#allocation2 + $0x18] sm:$0xff] %vm268_vm0, %v2780_v54  ;;  %v2777_v47 = vmax.f32 %v2763_v19, %v2771_v46  ;;  %v3926_v19 = vunpack.i.h.bf16 %v3924_v27  ;;  %v3941_v46 = vunpack.i.h.bf16 %v3939_v52 }
 0x703   : > { %v2783_v17 = vmul.f32 %v4826_v53, %v2777_v47  ;;  %v5223_v53 = vld.sshfl [vmem:[%s5367_s3] sm:$0x33 pattern:$0x76325410]  ;;  %v3936_v47 = vunpack.i.h.bf16 %v3934_v51 }
 0x704   : > { %v3231_v41 = vcombine.high %v5223_v53, %v5223_v53 }
 0x705   : > { %2789 = vst.msk [vmem:[#allocation2 + $0x38] sm:$0xff] %vm268_vm0, %v2783_v17 }
 0x706   : > { %3500 = vmatprep.mubr.msk.f32.mxu1 %vm729_vm1, %v3231_v41  ;;  %3499 = vmatprep.mubr.msk.f32.mxu0 %vm729_vm1, %v3231_v41 }
 0x708   : > { %v2843_v26 = vld [vmem:[#allocation2 + $0x18] sm:$0xff] }
 0x709   : > { %2862 = vrot.lane.b32.xlu1 %v2843_v26, %s3959_s23  ;;  %2812 = vrot.lane.b32.xlu0 %v2843_v26, %s3960_s24  ;;  %2998 = vst.msk [vmem:[#allocation3 + $0xd0] sm:$0xff] %vm268_vm0, %v2843_v26 }
 0x70c   : > { %v2847_v37 = vld [vmem:[#allocation2 + $0x38] sm:$0xff] }
 0x70d   : > { %2962 = vrot.lane.b32.xlu1 %v2843_v26, %s3963_s30  ;;  %2912 = vrot.lane.b32.xlu0 %v2843_v26, %s3961_s29  ;;  %3001 = vst.msk [vmem:[#allocation3 + $0xe8] sm:$0xff] %vm268_vm0, %v2847_v37 }
 0x711   : > { %3018 = vrot.lane.b32.xlu0 %v2843_v26, %s3964_s7  ;;  %2808 = vrot.lane.b32.xlu1 %v5133_v8, %s3960_s24 }
 0x715   : > { %3058 = vrot.lane.b32.xlu0 %v2843_v26, %s3965_s8  ;;  %2908 = vrot.lane.b32.xlu1 %v5133_v8, %s3961_s29 }
 0x719   : > { %2858 = vrot.lane.b32.xlu0 %v5133_v8, %s3959_s23  ;;  %3014 = vrot.lane.b32.xlu1 %v5133_v8, %s3964_s7 }
 0x71d   : > { %2958 = vrot.lane.b32.xlu0 %v5133_v8, %s3963_s30  ;;  %2860 = vrot.lane.b32.xlu1 %v5136_v14, %s3959_s23 }
 0x721   : > { %2810 = vrot.lane.b32.xlu0 %v5136_v14, %s3960_s24  ;;  %2960 = vrot.lane.b32.xlu1 %v5136_v14, %s3963_s30 }
 0x725   : > { %2910 = vrot.lane.b32.xlu0 %v5136_v14, %s3961_s29  ;;  %3016 = vrot.lane.b32.xlu1 %v5136_v14, %s3964_s7 }
 0x729   : > { %2870 = vrot.lane.b32.xlu0 %v2847_v37, %s3959_s23  ;;  %3056 = vrot.lane.b32.xlu1 %v5136_v14, %s3965_s8 }
 0x72d   : > { %2970 = vrot.lane.b32.xlu0 %v2847_v37, %s3963_s30  ;;  %2820 = vrot.lane.b32.xlu1 %v2847_v37, %s3960_s24 }
 0x731   : > { %3024 = vrot.lane.b32.xlu0 %v2847_v37, %s3964_s7  ;;  %2920 = vrot.lane.b32.xlu1 %v2847_v37, %s3961_s29 }
 0x735   : > { %2866 = vrot.lane.b32.xlu0 %v5140_v15, %s3959_s23  ;;  %2816 = vrot.lane.b32.xlu1 %v5140_v15, %s3960_s24 }
 0x739   : > { %2966 = vrot.lane.b32.xlu0 %v5140_v15, %s3963_s30  ;;  %2916 = vrot.lane.b32.xlu1 %v5140_v15, %s3961_s29 }
 0x73d   : > { %3020 = vrot.lane.b32.xlu0 %v5140_v15, %s3964_s7  ;;  %3054 = vrot.lane.b32.xlu1 %v5133_v8, %s3965_s8 }
 0x741   : > { %2818 = vrot.lane.b32.xlu0 %v5143_v6, %s3960_s24  ;;  %2868 = vrot.lane.b32.xlu1 %v5143_v6, %s3959_s23 }
 0x745   : > { %3064 = vrot.lane.b32.xlu0 %v2847_v37, %s3965_s8  ;;  %3096 = vrot.lane.b32.xlu1 %v5136_v14, %s3966_s9 }
 0x749   : > { %2918 = vrot.lane.b32.xlu0 %v5143_v6, %s3961_s29  ;;  %3094 = vrot.lane.b32.xlu1 %v5133_v8, %s3966_s9 }
 0x74d   : > { %3060 = vrot.lane.b32.xlu0 %v5140_v15, %s3965_s8  ;;  %2968 = vrot.lane.b32.xlu1 %v5143_v6, %s3963_s30 }
 0x751   : > { %3098 = vrot.lane.b32.xlu0 %v2843_v26, %s3966_s9  ;;  %3136 = vrot.lane.b32.xlu1 %v5136_v14, %s3967_s12 }
 0x755   : > { %3104 = vrot.lane.b32.xlu0 %v2847_v37, %s3966_s9  ;;  %3022 = vrot.lane.b32.xlu1 %v5143_v6, %s3964_s7  ;;  %s3819_s7 = smul.u32 6, %s5372_s22 }
 0x759   : > { %3100 = vrot.lane.b32.xlu0 %v5140_v15, %s3966_s9  ;;  %3062 = vrot.lane.b32.xlu1 %v5143_v6, %s3965_s8 }
 0x75d   : > { %3138 = vrot.lane.b32.xlu0 %v2843_v26, %s3967_s12  ;;  %3102 = vrot.lane.b32.xlu1 %v5143_v6, %s3966_s9 }
 0x761   : > { %3144 = vrot.lane.b32.xlu0 %v2847_v37, %s3967_s12  ;;  %3142 = vrot.lane.b32.xlu1 %v5143_v6, %s3967_s12 }
 0x765   : > { %3140 = vrot.lane.b32.xlu0 %v5140_v15, %s3967_s12  ;;  %3134 = vrot.lane.b32.xlu1 %v5133_v8, %s3967_s12  ;;  %s251_s12 = scalar_lea.vmem %s5370_s6, %s3819_s7 }
 0x769   : > { %3220 = vperm.xlu1 %3861, %v3217_v35  }
 0x77b   : > { %v2813_v16 = vpop.permute.xlu0 %2812  ;;  %v2863_v43 = vpop.permute.xlu1 %2862 }
 0x77f   : > { %v2913_v3 = vpop.permute.xlu0 %2912  ;;  %v2963_v61 = vpop.permute.xlu1 %2962 }
 0x783   : > { %v3019_v18 = vpop.permute.xlu0 %3018  ;;  %v2809_v13 = vpop.permute.xlu1 %2808 }
 0x784   : > { %3038 = vst.msk [vmem:[#allocation3 + $0x100] sm:$0xff] %vm268_vm0, %v3019_v18  ;;  %v5244_v25 = vsel %vm311_vm2, %v3925_v39, %v2809_v13 }
 0x787   : > { %v3059_v24 = vpop.permute.xlu0 %3058  ;;  %v2909_v28 = vpop.permute.xlu1 %2908 }
 0x788   : > { %3078 = vst.msk [vmem:[#allocation3 + $0x130] sm:$0xff] %vm268_vm0, %v3059_v24  ;;  %v5248_v42 = vsel %vm413_vm4, %v3935_v62, %v2909_v28 }
 0x78b   : > { %v2859_v7 = vpop.permute.xlu0 %2858  ;;  %v3015_v21 = vpop.permute.xlu1 %3014 }
 0x78c   : > { %v5251_v20 = vsel %vm362_vm3, %v3930_v36, %v2859_v7 }
 0x78f   : > { %v2959_v1 = vpop.permute.xlu0 %2958  ;;  %v2861_v23 = vpop.permute.xlu1 %2860 }
 0x790   : > { %v5254_v50 = vsel %vm464_vm5, %v3940_v33, %v2959_v1  ;;  %v2873_v57 = vsel %vm362_vm3, %v2859_v7, %v2861_v23  ;;  %v2874_v58 = vsel %vm362_vm3, %v2861_v23, %v2863_v43 }
 0x791   : > { %2886 = vst.msk [vmem:[#allocation3 + $0x40] sm:$0xff] %vm268_vm0, %v2874_v58 }
 0x793   : > { %v2811_v60 = vpop.permute.xlu0 %2810  ;;  %v2961_v22 = vpop.permute.xlu1 %2960 }
 0x794   : > { %v2823_v59 = vsel %vm311_vm2, %v2809_v13, %v2811_v60  ;;  %v2824_v0 = vsel %vm311_vm2, %v2811_v60, %v2813_v16  ;;  %v5262_v55 = vsel %vm464_vm5, %v2959_v1, %v2961_v22  ;;  %v2974_v49 = vsel %vm464_vm5, %v2961_v22, %v2963_v61 }
 0x795   : > { %2836 = vst.msk [vmem:[#allocation3 + $0x10] sm:$0xff] %vm268_vm0, %v2824_v0  ;;  %2986 = vst.msk [vmem:[#allocation3 + $0xa0] sm:$0xff] %vm268_vm0, %v2974_v49 }
 0x797   : > { %v2911_v56 = vpop.permute.xlu0 %2910  ;;  %v3017_v48 = vpop.permute.xlu1 %3016 }
 0x798   : > { %v2923_v40 = vsel %vm413_vm4, %v2909_v28, %v2911_v56  ;;  %v2924_v10 = vsel %vm413_vm4, %v2911_v56, %v2913_v3  ;;  %v5270_v11 = vsel %vm519_vm6, %v3015_v21, %v3017_v48  ;;  %v5273_v29 = vsel %vm519_vm6, %v3017_v48, %v3019_v18  ;;  %v3170_v56 = vld [vmem:[#allocation3 + $0x40] sm:$0xff] }
 0x799   : > { %2936 = vst.msk [vmem:[#allocation3 + $0x70] sm:$0xff] %vm268_vm0, %v2924_v10 }
 0x79b   : > { %v2871_v4 = vpop.permute.xlu0 %2870  ;;  %v3057_v34 = vpop.permute.xlu1 %3056 }
 0x79c   : > { %v5277_v45 = vsel %vm560_vm7, %v3057_v34, %v3059_v24  ;;  %v3164_v1 = vld [vmem:[#allocation3 + $0x10] sm:$0xff] }
 0x79f   : > { %v2971_v63 = vpop.permute.xlu0 %2970  ;;  %v2821_v5 = vpop.permute.xlu1 %2820 }
 0x7a3   : > { %v5279_v2 = vpop.permute.xlu0 %3024  ;;  %v2921_v44 = vpop.permute.xlu1 %2920 }
 0x7a4   : > { %3041 = vst.msk [vmem:[#allocation3 + $0x118] sm:$0xff] %vm268_vm0, %v5279_v2 }
 0x7a7   : > { %v2867_v32 = vpop.permute.xlu0 %2866  ;;  %v2817_v38 = vpop.permute.xlu1 %2816 }
 0x7a8   : > { %v2875_v31 = vsel %vm362_vm3, %v3931_v30, %v2867_v32  ;;  %v2825_v54 = vsel %vm311_vm2, %v3926_v19, %v2817_v38 }
 0x7a9   : > { %v3757_v18 = vpack.c.bf16 %v2825_v54, %v5244_v25  ;;  %v3761_v28 = vpack.c.bf16 %v2875_v31, %v5251_v20 }
 0x7ab   : > { %v2967_v17 = vpop.permute.xlu0 %2966  ;;  %v2917_v26 = vpop.permute.xlu1 %2916 }
 0x7ac   : > { %v2975_v37 = vsel %vm464_vm5, %v3941_v46, %v2967_v17  ;;  %v2925_v41 = vsel %vm413_vm4, %v3936_v47, %v2917_v26 }
 0x7ad   : > { %v3765_v22 = vpack.c.bf16 %v2925_v41, %v5248_v42  ;;  %v3769_v10 = vpack.c.bf16 %v2975_v37, %v5254_v50  ;;  %v3773_v50 = vpack.c.bf16 %v5140_v15, %v5133_v8  ;;  %v3191_v15 = vld [vmem:[#allocation3 + $0xe8] sm:$0xff] }
 0x7af   : > { %v5287_v35 = vpop.permute.xlu0 %3020  ;;  %v3055_v16 = vpop.permute.xlu1 %3054 }
 0x7b0   : > { %v5290_v12 = vsel %vm560_vm7, %v3055_v16, %v3057_v34  ;;  %v3771_v34 = vpack.c.bf16 %v5143_v6, %v5136_v14 }
 0x7b3   : > { %v2819_v27 = vpop.permute.xlu0 %2818  ;;  %v2869_v43 = vpop.permute.xlu1 %2868 }
 0x7b4   : > { %v2826_v3 = vsel %vm311_vm2, %v2817_v38, %v2819_v27  ;;  %v2827_v61 = vsel %vm311_vm2, %v2819_v27, %v2821_v5  ;;  %v2876_v52 = vsel %vm362_vm3, %v2867_v32, %v2869_v43  ;;  %v2877_v51 = vsel %vm362_vm3, %v2869_v43, %v2871_v4  ;;  %v3176_v5 = vld [vmem:[#allocation3 + $0x70] sm:$0xff]  ;;  %v3182_v32 = vld [vmem:[#allocation3 + $0xa0] sm:$0xff] }
 0x7b5   : > { %2839 = vst.msk [vmem:[#allocation3 + $0x28] sm:$0xff] %vm268_vm0, %v2827_v61  ;;  %2889 = vst.msk [vmem:[#allocation3 + $0x58] sm:$0xff] %vm268_vm0, %v2877_v51  ;;  %v3755_v39 = vpack.c.bf16 %v2826_v3, %v2823_v59  ;;  %v3759_v24 = vpack.c.bf16 %v2876_v52, %v2873_v57  ;;  %v3194_v61 = vld [vmem:[#allocation3 + $0x100] sm:$0xff] }
 0x7b7   : > { %v5299_v13 = vpop.permute.xlu0 %3064  ;;  %v3097_v62 = vpop.permute.xlu1 %3096  ;;  %3756 = vmatprep.subr.bf16.mxu0 %v3755_v39 }
 0x7b8   : > { %3081 = vst.msk [vmem:[#allocation3 + $0x148] sm:$0xff] %vm268_vm0, %v5299_v13  ;;  %3758 = vmatpush1.bf16.msra.mxu0 %v3757_v18 }
 0x7b9   : > { %3760 = vmatprep.subr.bf16.mxu0 %v3759_v24 }
 0x7bb   : > { %v2919_v36 = vpop.permute.xlu0 %2918  ;;  %v3095_v7 = vpop.permute.xlu1 %3094 }
 0x7bc   : > { %v2926_v21 = vsel %vm413_vm4, %v2917_v26, %v2919_v36  ;;  %v2927_v33 = vsel %vm413_vm4, %v2919_v36, %v2921_v44  ;;  %v5307_v25 = vsel %vm601_vm8, %v3095_v7, %v3097_v62  ;;  %v3167_v23 = vld [vmem:[#allocation3 + $0x28] sm:$0xff]  ;;  %3762 = vmatpush1.bf16.msra.mxu0 %v3761_v28  ;;  %v3173_v60 = vld [vmem:[#allocation3 + $0x58] sm:$0xff]  ;;  %v3188_v26 = vld [vmem:[#allocation3 + $0xd0] sm:$0xff] }
 0x7bd   : > { %2939 = vst.msk [vmem:[#allocation3 + $0x88] sm:$0xff] %vm268_vm0, %v2927_v33  ;;  %v3792_v57 = vpack.c.bf16 %v3167_v23, %v3164_v1  ;;  %v3763_v58 = vpack.c.bf16 %v2926_v21, %v2923_v40  ;;  %v3795_v48 = vpack.c.bf16 %v3173_v60, %v3170_v56  ;;  %v3804_v37 = vpack.c.bf16 %v3191_v15, %v3188_v26 }
 0x7bf   : > { %v3061_v20 = vpop.permute.xlu0 %3060  ;;  %3793 = vmatpush1.bf16.msra.mxu1 %v3792_v57  ;;  %v2969_v59 = vpop.permute.xlu1 %2968  ;;  %3764 = vmatprep.subr.bf16.mxu0 %v3763_v58  ;;  %v3203_v51 = vld [vmem:[#allocation3 + $0x148] sm:$0xff] }
 0x7c0   : > { %v2976_v0 = vsel %vm464_vm5, %v2967_v17, %v2969_v59  ;;  %v2977_v49 = vsel %vm464_vm5, %v2969_v59, %v2971_v63  ;;  %3794 = vmatprep.subr.bf16.mxu1 %v3962_v9  ;;  %3766 = vmatpush1.bf16.msra.mxu0 %v3765_v22 }
 0x7c1   : > { %2989 = vst.msk [vmem:[#allocation3 + $0xb8] sm:$0xff] %vm268_vm0, %v2977_v49  ;;  %v3767_v40 = vpack.c.bf16 %v2976_v0, %v5262_v55  ;;  %v3383_v0 = vlaneseq }
 0x7c3   : > { %v3099_v42 = vpop.permute.xlu0 %3098  ;;  %3796 = vmatpush1.bf16.msra.mxu1 %v3795_v48  ;;  %v5317_v4 = vpop.permute.xlu1 %3136  ;;  %3768 = vmatprep.subr.bf16.mxu0 %v3767_v40  ;;  %v3384_v56 = vshrl.u32 %v3383_v0, 7 }
 0x7c4   : > { %v3107_v63 = vsel %vm601_vm8, %v3097_v62, %v3099_v42  ;;  %3118 = vst.msk [vmem:[#allocation3 + $0x160] sm:$0xff] %vm268_vm0, %v3099_v42  ;;  %3797 = vmatprep.subr.bf16.mxu1 %v3962_v9  ;;  %v3179_v44 = vld [vmem:[#allocation3 + $0x88] sm:$0xff]  ;;  %3770 = vmatpush1.bf16.msra.mxu0 %v3769_v10  ;;  %v3200_v62 = vld [vmem:[#allocation3 + $0x130] sm:$0xff] }
 0x7c5   : > { %v3798_v55 = vpack.c.bf16 %v3179_v44, %v3176_v5  ;;  %3772 = vmatprep.subr.bf16.mxu0 %v3771_v34  ;;  %v3810_v24 = vpack.c.bf16 %v3203_v51, %v3200_v62 }
 0x7c7   : > { %v3105_v30 = vpop.permute.xlu0 %3104  ;;  %3799 = vmatpush1.bf16.msra.mxu1 %v3798_v55  ;;  %v3023_v19 = vpop.permute.xlu1 %3022 }
 0x7c8   : > { %3121 = vst.msk [vmem:[#allocation3 + $0x178] sm:$0xff] %vm268_vm0, %v3105_v30  ;;  %v3028_v14 = vsel %vm519_vm6, %v5287_v35, %v3023_v19  ;;  %v3029_v6 = vsel %vm519_vm6, %v3023_v19, %v5279_v2  ;;  %3800 = vmatprep.subr.bf16.mxu1 %v3962_v9  ;;  %v3185_v38 = vld [vmem:[#allocation3 + $0xb8] sm:$0xff]  ;;  %3774 = vmatpush1.bf16.msra.mxu0 %v3773_v50 }
 0x7c9   : > { %v3801_v31 = vpack.c.bf16 %v3185_v38, %v3182_v32  ;;  %v3775_v54 = vpack.c.bf16 %v3029_v6, %v5273_v29  ;;  %v3777_v8 = vpack.c.bf16 %v3028_v14, %v5270_v11  ;;  %v3197_v11 = vld [vmem:[#allocation3 + $0x118] sm:$0xff] }
 0x7cb   : > { %v3101_v46 = vpop.permute.xlu0 %3100  ;;  %3802 = vmatpush1.bf16.msra.mxu1 %v3801_v31  ;;  %v3063_v47 = vpop.permute.xlu1 %3062  ;;  %3776 = vmatprep.subr.bf16.mxu0 %v3775_v54  ;;  %v3206_v1 = vld [vmem:[#allocation3 + $0x160] sm:$0xff] }
 0x7cc   : > { %v3068_v17 = vsel %vm560_vm7, %v3061_v20, %v3063_v47  ;;  %v3069_v2 = vsel %vm560_vm7, %v3063_v47, %v5299_v13  ;;  %3803 = vmatprep.subr.bf16.mxu1 %v3962_v9  ;;  %3778 = vmatpush1.bf16.msra.mxu0 %v3777_v8  ;;  %v3969_v20 = vmov 1983009808  }
 0x7cd   : > { %v3779_v41 = vpack.c.bf16 %v3069_v2, %v5277_v45  ;;  %v3781_v29 = vpack.c.bf16 %v3068_v17, %v5290_v12  ;;  %v3807_v45 = vpack.c.bf16 %v3197_v11, %v3194_v61  ;;  %v3381_v59 = vunpack.c.l.s4 %v3969_v20 }
 0x7cf   : > { %v3139_v35 = vpop.permute.xlu0 %3138  ;;  %3805 = vmatpush1.bf16.msra.mxu1 %v3804_v37  ;;  %v3103_v16 = vpop.permute.xlu1 %3102  ;;  %3780 = vmatprep.subr.bf16.mxu0 %v3779_v41  ;;  %v3209_v36 = vld [vmem:[#allocation3 + $0x178] sm:$0xff]  ;;  %v3382_v49 = vunpack.c.0.s8 %v3381_v59 }
 0x7d0   : > { %v3147_v27 = vsel %vm642_vm9, %v5317_v4, %v3139_v35  ;;  %3158 = vst.msk [vmem:[#allocation3 + $0x190] sm:$0xff] %vm268_vm0, %v3139_v35  ;;  %v3108_v43 = vsel %vm601_vm8, %v3101_v46, %v3103_v16  ;;  %v3109_v3 = vsel %vm601_vm8, %v3103_v16, %v3105_v30  ;;  %3806 = vmatprep.subr.bf16.mxu1 %v3962_v9 }
 0x7d1   : > { %3782 = vmatpush1.bf16.msra.mxu0 %v3781_v29  ;;  %v3783_v12 = vpack.c.bf16 %v3109_v3, %v3107_v63  ;;  %v3785_v52 = vpack.c.bf16 %v3108_v43, %v5307_v25  ;;  %v3813_v23 = vpack.c.bf16 %v3209_v36, %v3206_v1 }
 0x7d3   : > { %v3145_v39 = vpop.permute.xlu0 %3144  ;;  %3808 = vmatpush1.bf16.msra.mxu1 %v3807_v45  ;;  %v3143_v18 = vpop.permute.xlu1 %3142  ;;  %3784 = vmatprep.subr.bf16.mxu0 %v3783_v12 }
 0x7d4   : > { %3161 = vst.msk [vmem:[#allocation3 + $0x1a8] sm:$0xff] %vm268_vm0, %v3145_v39  ;;  %v3149_v13 = vsel %vm642_vm9, %v3143_v18, %v3145_v39  ;;  %3809 = vmatprep.subr.bf16.mxu1 %v3962_v9 }
 0x7d5   : > { %3786 = vmatpush1.bf16.msra.mxu0 %v3785_v52  ;;  %v3787_v28 = vpack.c.bf16 %v3149_v13, %v3147_v27 }
 0x7d7   : > { %v3141_v7 = vpop.permute.xlu0 %3140  ;;  %3811 = vmatpush1.bf16.msra.mxu1 %v3810_v24  ;;  %v3135_v21 = vpop.permute.xlu1 %3134  ;;  %3788 = vmatprep.subr.bf16.mxu0 %v3787_v28  ;;  %v3212_v58 = vld [vmem:[#allocation3 + $0x190] sm:$0xff] }
 0x7d8   : > { %v3148_v33 = vsel %vm642_vm9, %v3141_v7, %v3143_v18  ;;  %v3146_v25 = vsel %vm642_vm9, %v3135_v21, %v5317_v4  ;;  %3812 = vmatprep.subr.bf16.mxu1 %v3962_v9  ;;  %v3385_v4 = vsub.s32 %v3382_v49, %v3384_v56 }
 0x7d9   : > { %v3789_v57 = vpack.c.bf16 %v3148_v33, %v3146_v25 }
 0x7db   : > { %3814 = vmatpush1.bf16.msra.mxu1 %v3813_v23  ;;  %v3215_v60 = vld [vmem:[#allocation3 + $0x1a8] sm:$0xff]  ;;  %3790 = vmatpush1.bf16.msra.mxu0 %v3789_v57 }
 0x7dc   : > { %3815 = vmatprep.subr.bf16.mxu1 %v3962_v9  ;;  %v3816_v22 = vpack.c.bf16 %v3215_v60, %v3212_v58 }
 0x7de   : > { %3300 = vmatmul.mubr.f32.vlgmr.msra.gmra.mrb[16].mxu0 %v5223_v53 }
 0x7df   : > { %3817 = vmatpush1.bf16.msra.mxu1 %v3816_v22 }
 0x7e2   : > { %3371 = vmatmul.mubr.f32.vlgmr.msra.gmra.mrb[16].mxu1 %v5223_v53 }
 0x7e8   : > { %v3221_v48 = vpop.permute.xlu1 %3220 }
 0x8b1   : > { %v3301_v40 = vpop.f32.mrb[16].mxu0 }
 0x8b2   : > { %v3302_v10 = vadd.f32 %v3301_v40, %v3221_v48  ;;  %v3303_v42 = vpop.f32.mrb[17].mxu0 }
 0x8b3   : > { %v3304_v34 = vadd.f32 %v3303_v42, %v3221_v48 }
 0x8b5   : > { %v3372_v9 = vpop.f32.mrb[16].mxu1  ;;  %v3379_v63 = vcombine.low %v3302_v10, %v3304_v34 }
 0x8b6   : > { %v3373_v5 = vadd.f32 %v3372_v9, %v3221_v48  ;;  %v3374_v53 = vpop.f32.mrb[17].mxu1 }
 0x8b7   : > { %v3386_v44 = vrot.slane %v3379_v63, %v3385_v4 }
 0x8b8   : > { %v3393_v55 = vrot.slane %v3373_v5, %v3385_v4 }
 0x8ba   : > { %v3394_v50 = vcombine.low %v3386_v44, %v3393_v55 }
 0x8bc   : > { %3401 = vst.msk [vmem:[%s251_s12] sm:$0x3f] %vm3400_vm14, %v3394_v50 }
 0x8bd PF: > { %s16_s21 = sadd.s32 1, %s3956_s21  }
 0x8be   : > { %p13_p4 = scmp.ge.s32.totalorder %s16_s21, 4  }
 0x8c0   :  { %15 = sbr.rel (!%p13_p4) target bundleno = 1 (0x1), region = 80 }

</bundles_post_ra>
